<compile_context>
chip_gen: v5e
topology: v5e:2x2
jax: 0.10.0
libtpu: 0.0.40
codegen_flags: <defaults>
</compile_context>

<pallas_src>
import numpy as np
import jax
import jax.numpy as jnp
from jax.experimental import pallas as pl
from jax.experimental.pallas import tpu as pltpu

EPS = 1e-5
LANE = 128
MATMUL_DTYPE = jnp.bfloat16   # MXU operand dtype (f32 accumulation); set to jnp.float32 for exact


def _round_up(x, m):
    return (x + m - 1) // m * m


def _vmem_limit_bytes():
    # Per-generation VMEM ceiling (v5e/v6e: 128 MiB phys, v7x: 64 MiB). Leave headroom.
    try:
        cap = int(pltpu.get_tpu_info().vmem_capacity_bytes)
        if cap <= 0:
            raise ValueError
    except Exception:
        cap = 64 * 1024 * 1024
    return int(min(cap * 0.85, 100 * 1024 * 1024))


def _compiler_params():
    return pltpu.CompilerParams(
        dimension_semantics=("parallel",),      # batch tiles are independent -> megacore-friendly
        vmem_limit_bytes=_vmem_limit_bytes(),
    )


# --------------------------------------------------------------------------------------------
# Kernel A: 3x3 conv (stride s) as 9 shifted accumulated matmuls + per-image partial BN stats.
# --------------------------------------------------------------------------------------------
def _make_conv3x3_stats_kernel(Ho, Wo, Cin, Cp, stride):
    def tap(ref, ky, kx):
        if stride == 1:
            return ref[0, pl.ds(ky, Ho), pl.ds(kx, Wo), :]
        return ref[0, pl.ds(ky, Ho, stride), pl.ds(kx, Wo, stride), :]

    def kernel(xp_ref, w_ref, y_ref, s_ref):
        acc = None
        for ky in range(3):
            for kx in range(3):
                a = tap(xp_ref, ky, kx).reshape(Ho * Wo, Cin).astype(MATMUL_DTYPE)
                p = jnp.dot(a, w_ref[ky, kx], preferred_element_type=jnp.float32)
                acc = p if acc is None else acc + p
        y_ref[...] = acc.reshape(1, Ho, Wo, Cp)
        ssum = jnp.sum(acc, axis=0, keepdims=True)
        ssq = jnp.sum(acc * acc, axis=0, keepdims=True)
        s_ref[...] = jnp.concatenate([ssum, ssq], axis=0).reshape(1, 2, Cp)

    return kernel


# --------------------------------------------------------------------------------------------
# Kernel B: BN1 affine + ReLU (fused epilogue of conv1) -> 3x3 conv2 (stride 1) + partial stats.
#           For the projection shortcut it also emits the 1x1-conv partial stats.
# --------------------------------------------------------------------------------------------
def _make_bnrelu_conv3x3_kernel(Ho, Wo, Cp, Cin_sc, with_proj):
    def kernel(y1_ref, sc_ref, sh_ref, w_ref, *rest):
        if with_proj:
            xs_ref, ws_ref, y2_ref, s2_ref, ssc_ref, pad_ref = rest
        else:
            y2_ref, s2_ref, pad_ref = rest

        # BN1 affine + ReLU in VMEM (never written back to HBM in normalized form).
        out1 = jnp.maximum(y1_ref[0] * sc_ref[...] + sh_ref[...], 0.0)   # (Ho, Wo, Cp) f32

        # Zero-padded copy of out1 in VMEM scratch (conv2 has padding=1).
        pad_ref[...] = jnp.zeros_like(pad_ref)
        pad_ref[pl.ds(1, Ho), pl.ds(1, Wo), :] = out1

        acc = None
        for ky in range(3):
            for kx in range(3):
                a = pad_ref[pl.ds(ky, Ho), pl.ds(kx, Wo), :]
                a = a.reshape(Ho * Wo, Cp).astype(MATMUL_DTYPE)
                p = jnp.dot(a, w_ref[ky, kx], preferred_element_type=jnp.float32)
                acc = p if acc is None else acc + p
        y2_ref[...] = acc.reshape(1, Ho, Wo, Cp)
        s2_ref[...] = jnp.concatenate(
            [jnp.sum(acc, axis=0, keepdims=True),
             jnp.sum(acc * acc, axis=0, keepdims=True)], axis=0).reshape(1, 2, Cp)

        if with_proj:
            # 1x1 projection shortcut: only its BN statistics are needed in this pass
            # (the cheap K=Cin matmul is recomputed in the tail kernel instead of storing
            #  the full f32 shortcut activation to HBM).
            a_s = xs_ref[0].reshape(Ho * Wo, Cin_sc).astype(MATMUL_DTYPE)
            ysc = jnp.dot(a_s, ws_ref[...], preferred_element_type=jnp.float32)
            ssc_ref[...] = jnp.concatenate(
                [jnp.sum(ysc, axis=0, keepdims=True),
                 jnp.sum(ysc * ysc, axis=0, keepdims=True)], axis=0).reshape(1, 2, Cp)

    return kernel


# --------------------------------------------------------------------------------------------
# Kernel C: BN2 affine + (1x1 shortcut matmul -> affine) + add + ReLU.
#           Identity shortcut reuses the same kernel with ws = lane-padded identity matrix
#           and scale=1 / shift=0 (avoids padding x in HBM and unaligned lane concatenation).
# --------------------------------------------------------------------------------------------
def _make_tail_kernel(Ho, Wo, Cs, Cp, lhs_dtype):
    def kernel(y2_ref, sc2_ref, sh2_ref, xs_ref, ws_ref, scs_ref, shs_ref, o_ref):
        main = y2_ref[0] * sc2_ref[...] + sh2_ref[...]
        a = xs_ref[0].reshape(Ho * Wo, Cs).astype(lhs_dtype)
        ysc = jnp.dot(a, ws_ref[...], preferred_element_type=jnp.float32)
        short = ysc.reshape(Ho, Wo, Cp) * scs_ref[...] + shs_ref[...]
        o_ref[...] = jnp.maximum(main + short, 0.0).reshape(1, Ho, Wo, Cp)

    return kernel


# --------------------------------------------------------------------------------------------
# Host-side helpers (tiny, per-channel work).
# --------------------------------------------------------------------------------------------
def _prep_weight_3x3(w_oihw, cin_pad, cout_pad):
    """PyTorch (Cout, Cin, 3, 3) -> (3, 3, cin_pad, cout_pad) in the matmul dtype."""
    co, ci, kh, kw = w_oihw.shape
    w = jnp.transpose(w_oihw, (2, 3, 1, 0))
    w = jnp.pad(w, ((0, 0), (0, 0), (0, cin_pad - ci), (0, cout_pad - co)))
    return w.astype(MATMUL_DTYPE)


def _scale_shift(stats, gamma_p, beta_p, count):
    """Combine per-image partial (sum, sumsq) -> per-channel BN scale/shift (training mode)."""
    s = jnp.sum(stats, axis=0)                       # (2, Cp)
    mean = s[0] / count
    var = jnp.maximum(s[1] / count - mean * mean, 0.0)
    scale = gamma_p * jax.lax.rsqrt(var + EPS)
    shift = beta_p - mean * scale
    return scale.reshape(1, -1), shift.reshape(1, -1)


# --------------------------------------------------------------------------------------------
# Forward pass.
# --------------------------------------------------------------------------------------------
def resblock_forward(x_nchw, params, stride=1):
    x = jnp.transpose(x_nchw, (0, 2, 3, 1)).astype(jnp.float32)      # NCHW -> NHWC (boundary only)
    N, H, W, Cin = x.shape
    Cout = params["w1"].shape[0]
    Cp = _round_up(Cout, LANE)                                       # lane-dense channel padding
    Ho = (H - 1) // stride + 1
    Wo = (W - 1) // stride + 1
    M = N * Ho * Wo
    use_proj = (stride != 1) or (Cin != Cout)
    cparams = _compiler_params()

    # Weights / BN parameters, channel-padded (padded gamma/beta = 0 keeps pad lanes exactly 0).
    w1 = _prep_weight_3x3(params["w1"], Cin, Cp)                     # (3,3,Cin,Cp)
    w2 = _prep_weight_3x3(params["w2"], Cp, Cp)                      # (3,3,Cp,Cp)
    g1 = jnp.pad(params["g1"], (0, Cp - Cout)).astype(jnp.float32)
    b1 = jnp.pad(params["b1"], (0, Cp - Cout)).astype(jnp.float32)
    g2 = jnp.pad(params["g2"], (0, Cp - Cout)).astype(jnp.float32)
    b2 = jnp.pad(params["b2"], (0, Cp - Cout)).astype(jnp.float32)

    # ---------------- Kernel A: conv1 + partial BN1 stats --------------------------------
    xp = jnp.pad(x, ((0, 0), (1, 1), (1, 1), (0, 0)))                # spatial pad=1
    Hp, Wp = H + 2, W + 2
    kA = _make_conv3x3_stats_kernel(Ho, Wo, Cin, Cp, stride)
    y1, s1 = pl.pallas_call(
        kA,
        grid=(N,),
        in_specs=[
            pl.BlockSpec((1, Hp, Wp, Cin), lambda n: (n, 0, 0, 0)),          # one padded image
            pl.BlockSpec((3, 3, Cin, Cp), lambda n: (0, 0, 0, 0)),           # resident weights
        ],
        out_specs=[
            pl.BlockSpec((1, Ho, Wo, Cp), lambda n: (n, 0, 0, 0)),
            pl.BlockSpec((1, 2, Cp), lambda n: (n, 0, 0)),
        ],
        out_shape=[
            jax.ShapeDtypeStruct((N, Ho, Wo, Cp), jnp.float32),
            jax.ShapeDtypeStruct((N, 2, Cp), jnp.float32),
        ],
        compiler_params=cparams,
        cost_estimate=pl.CostEstimate(
            flops=2 * M * (9 * Cin) * Cp,
            transcendentals=0,
            bytes_accessed=4 * (xp.size + N * Ho * Wo * Cp + N * 2 * Cp) + 2 * w1.size),
    )(xp, w1)

    scale1, shift1 = _scale_shift(s1, g1, b1, float(M))

    # ---------------- Kernel B: BN1+ReLU -> conv2 + partial stats (+ shortcut stats) -----
    kB = _make_bnrelu_conv3x3_kernel(Ho, Wo, Cp, Cin, use_proj)
    common_in = [
        pl.BlockSpec((1, Ho, Wo, Cp), lambda n: (n, 0, 0, 0)),               # y1
        pl.BlockSpec((1, Cp), lambda n: (0, 0)),                             # scale1
        pl.BlockSpec((1, Cp), lambda n: (0, 0)),                             # shift1
        pl.BlockSpec((3, 3, Cp, Cp), lambda n: (0, 0, 0, 0)),                # w2 (resident)
    ]
    out_specs_B = [
        pl.BlockSpec((1, Ho, Wo, Cp), lambda n: (n, 0, 0, 0)),               # y2 (pre-BN)
        pl.BlockSpec((1, 2, Cp), lambda n: (n, 0, 0)),                       # stats2
    ]
    out_shape_B = [
        jax.ShapeDtypeStruct((N, Ho, Wo, Cp), jnp.float32),
        jax.ShapeDtypeStruct((N, 2, Cp), jnp.float32),
    ]
    scratch_B = [pltpu.VMEM((Ho + 2, Wo + 2, Cp), jnp.float32)]              # padded out1 tile
    flops_B = 2 * M * (9 * Cp) * Cp

    if use_proj:
        xs = x[:, ::stride, ::stride, :]                                     # (N, Ho, Wo, Cin)
        ws = params["ws"].reshape(Cout, Cin).T                               # (Cin, Cout)
        ws = jnp.pad(ws, ((0, 0), (0, Cp - Cout))).astype(MATMUL_DTYPE)
        gs = jnp.pad(params["gs"], (0, Cp - Cout)).astype(jnp.float32)
        bs = jnp.pad(params["bs"], (0, Cp - Cout)).astype(jnp.float32)

        y2, s2, ssc = pl.pallas_call(
            kB,
            grid=(N,),
            in_specs=common_in + [
                pl.BlockSpec((1, Ho, Wo, Cin), lambda n: (n, 0, 0, 0)),      # xs
                pl.BlockSpec((Cin, Cp), lambda n: (0, 0)),                   # ws (resident)
            ],
            out_specs=out_specs_B + [pl.BlockSpec((1, 2, Cp), lambda n: (n, 0, 0))],
            out_shape=out_shape_B + [jax.ShapeDtypeStruct((N, 2, Cp), jnp.float32)],
            scratch_shapes=scratch_B,
            compiler_params=cparams,
            cost_estimate=pl.CostEstimate(
                flops=flops_B + 2 * M * Cin * Cp,
                transcendentals=0,
                bytes_accessed=4 * (2 * N * Ho * Wo * Cp + xs.size) + 2 * w2.size),
        )(y1, scale1, shift1, w2, xs, ws)
        scale_s, shift_s = _scale_shift(ssc, gs, bs, float(M))
        xs_tail, ws_tail, Cs_tail, lhs_dtype = xs, ws, Cin, MATMUL_DTYPE
    else:
        y2, s2 = pl.pallas_call(
            kB,
            grid=(N,),
            in_specs=common_in,
            out_specs=out_specs_B,
            out_shape=out_shape_B,
            scratch_shapes=scratch_B,
            compiler_params=cparams,
            cost_estimate=pl.CostEstimate(
                flops=flops_B, transcendentals=0,
                bytes_accessed=4 * 2 * N * Ho * Wo * Cp + 2 * w2.size),
        )(y1, scale1, shift1, w2)
        # Identity shortcut: add x via a lane-padded identity matmul (widens Cout -> Cp lanes).
        ws_tail = jnp.pad(jnp.eye(Cout, dtype=jnp.float32), ((0, 0), (0, Cp - Cout)))
        scale_s = jnp.ones((1, Cp), jnp.float32)
        shift_s = jnp.zeros((1, Cp), jnp.float32)
        xs_tail, Cs_tail, lhs_dtype = x, Cout, jnp.float32

    scale2, shift2 = _scale_shift(s2, g2, b2, float(M))

    # ---------------- Kernel C: BN2 + shortcut + add + ReLU ------------------------------
    kC = _make_tail_kernel(Ho, Wo, Cs_tail, Cp, lhs_dtype)
    out = pl.pallas_call(
        kC,
        grid=(N,),
        in_specs=[
            pl.BlockSpec((1, Ho, Wo, Cp), lambda n: (n, 0, 0, 0)),           # y2
            pl.BlockSpec((1, Cp), lambda n: (0, 0)),                         # scale2
            pl.BlockSpec((1, Cp), lambda n: (0, 0)),                         # shift2
            pl.BlockSpec((1, Ho, Wo, Cs_tail), lambda n: (n, 0, 0, 0)),      # shortcut input
            pl.BlockSpec((Cs_tail, Cp), lambda n: (0, 0)),                   # shortcut weight
            pl.BlockSpec((1, Cp), lambda n: (0, 0)),                         # shortcut scale
            pl.BlockSpec((1, Cp), lambda n: (0, 0)),                         # shortcut shift
        ],
        out_specs=pl.BlockSpec((1, Ho, Wo, Cp), lambda n: (n, 0, 0, 0)),
        out_shape=jax.ShapeDtypeStruct((N, Ho, Wo, Cp), jnp.float32),
        compiler_params=cparams,
    )(y2, scale2, shift2, xs_tail, ws_tail, scale_s, shift_s)

    out = out[..., :Cout]                                                    # drop channel pad
    return jnp.transpose(out, (0, 3, 1, 2))                                  # NHWC -> NCHW


# --------------------------------------------------------------------------------------------
# Pure-JAX reference (PyTorch semantics: training-mode BN, biased variance, eps=1e-5).
# --------------------------------------------------------------------------------------------
def ref_resblock(x, p, stride):
    dn = ("NCHW", "OIHW", "NCHW")

    def conv(y, w, s, pad):
        return jax.lax.conv_general_dilated(
            y, w, (s, s), ((pad, pad), (pad, pad)),
            dimension_numbers=dn, precision=jax.lax.Precision.HIGHEST)

    def bn(y, g, b):
        m = jnp.mean(y, axis=(0, 2, 3), keepdims=True)
        v = jnp.mean((y - m) ** 2, axis=(0, 2, 3), keepdims=True)
        return (y - m) / jnp.sqrt(v + EPS) * g.reshape(1, -1, 1, 1) + b.reshape(1, -1, 1, 1)

    out = jax.nn.relu(bn(conv(x, p["w1"], stride, 1), p["g1"], p["b1"]))
    out = bn(conv(out, p["w2"], 1, 1), p["g2"], p["b2"])
    if stride != 1 or x.shape[1] != p["w1"].shape[0]:
        sc = bn(conv(x, p["ws"], stride, 0), p["gs"], p["bs"])
    else:
        sc = x
    return jax.nn.relu(out + sc)


if __name__ == "__main__":
    key = jax.random.PRNGKey(0)
    k_proj, k_id = jax.random.split(key)

    fwd = jax.jit(resblock_forward, static_argnames=("stride",))

    def make_case(k, cin, cout, h, w, n, with_proj):
        ks = jax.random.split(k, 10)
        p = {
            "w1": 0.2 * jax.random.normal(ks[0], (cout, cin, 3, 3), jnp.float32),
            "g1": 1.0 + 0.1 * jax.random.normal(ks[1], (cout,), jnp.float32),
            "b1": 0.1 * jax.random.normal(ks[2], (cout,), jnp.float32),
            "w2": 0.2 * jax.random.normal(ks[3], (cout, cout, 3, 3), jnp.float32),
            "g2": 1.0 + 0.1 * jax.random.normal(ks[4], (cout,), jnp.float32),
            "b2": 0.1 * jax.random.normal(ks[5], (cout,), jnp.float32),
        }
        if with_proj:
            p["ws"] = 0.2 * jax.random.normal(ks[6], (cout, cin, 1, 1), jnp.float32)
            p["gs"] = 1.0 + 0.1 * jax.random.normal(ks[7], (cout,), jnp.float32)
            p["bs"] = 0.1 * jax.random.normal(ks[8], (cout,), jnp.float32)
        x = jax.random.normal(ks[9], (n, cin, h, w), jnp.float32)
        return p, x

    # Tolerance reflects bf16 MXU operands (f32 accumulation); f32 operands match at 2e-3.
    tol = 2e-2 if MATMUL_DTYPE == jnp.bfloat16 else 2e-3

    # Case 1: projection shortcut (in_channels != out_channels), stride=1.
    p, x = make_case(k_proj, 4, 8, 16, 16, 2, True)
    out = jax.block_until_ready(fwd(x, p, stride=1))
    ref = jax.block_until_ready(ref_resblock(x, p, 1))
    assert out.shape == ref.shape == (2, 8, 16, 16)
    err = float(np.max(np.abs(np.asarray(out) - np.asarray(ref))))
    if not np.allclose(np.asarray(out), np.asarray(ref), atol=tol, rtol=tol):
        raise AssertionError(f"projection-shortcut ResBlock mismatch (max abs err {err:.3e})")

    # Case 2: identity shortcut (in_channels == out_channels), stride=1.
    p, x = make_case(k_id, 8, 8, 16, 16, 2, False)
    out = jax.block_until_ready(fwd(x, p, stride=1))
    ref = jax.block_until_ready(ref_resblock(x, p, 1))
    assert out.shape == ref.shape == (2, 8, 16, 16)
    err = float(np.max(np.abs(np.asarray(out) - np.asarray(ref))))
    if not np.allclose(np.asarray(out), np.asarray(ref), atol=tol, rtol=tol):
        raise AssertionError(f"identity-shortcut ResBlock mismatch (max abs err {err:.3e})")

    print("KERNEL_OK")
</pallas_src>

<mosaic_0001>
module attributes {stable_mosaic.version = 11 : i64} {
  func.func @kernel(%arg0: i32, %arg1: memref<1x18x18x4xf32, #tpu.memory_space<vmem>>, %arg2: memref<3x3x4x128xbf16, #tpu.memory_space<vmem>>, %arg3: memref<1x16x16x128xf32, #tpu.memory_space<vmem>>, %arg4: memref<1x2x128xf32, #tpu.memory_space<vmem>>) attributes {dimension_semantics = [#tpu.dimension_semantics<parallel>], iteration_bounds = array<i64: 2>, scalar_prefetch = 0 : i64, scratch_operands = 0 : i64, tpu.core_type = #tpu.core_type<tc>, window_params = [{transform_indices = @transform_0, window_bounds = array<i64: 1, 18, 18, 4>}, {pipeline_mode = #tpu.pipeline_mode<synchronous>, transform_indices = @transform_1, window_bounds = array<i64: 3, 3, 4, 128>}, {transform_indices = @transform_2, window_bounds = array<i64: 1, 16, 16, 128>}, {transform_indices = @transform_3, window_bounds = array<i64: 1, 2, 128>}]} {
    %c0 = arith.constant 0 : index
    %c0_0 = arith.constant 0 : index
    %c0_1 = arith.constant 0 : index
    %c0_2 = arith.constant 0 : index
    %0 = vector.load %arg1[%c0, %c0_0, %c0_1, %c0_2] : memref<1x18x18x4xf32, #tpu.memory_space<vmem>>, vector<1x16x16x4xf32>
    %1 = vector.shape_cast %0 : vector<1x16x16x4xf32> to vector<16x16x4xf32>
    %2 = vector.shape_cast %1 : vector<16x16x4xf32> to vector<256x4xf32>
    %3 = arith.truncf %2 : vector<256x4xf32> to vector<256x4xbf16>
    %c0_3 = arith.constant 0 : index
    %c0_4 = arith.constant 0 : index
    %c0_5 = arith.constant 0 : index
    %c0_6 = arith.constant 0 : index
    %4 = vector.load %arg2[%c0_3, %c0_4, %c0_5, %c0_6] : memref<3x3x4x128xbf16, #tpu.memory_space<vmem>>, vector<1x1x4x128xbf16>
    %5 = vector.shape_cast %4 : vector<1x1x4x128xbf16> to vector<4x128xbf16>
    %cst = arith.constant dense<0.000000e+00> : vector<256x128xf32>
    %6 = tpu.matmul %3, %5, %cst {dimension_numbers = #tpu.dot_dimension_numbers<[1], [0], [0], [1], [0, 0, 1, 1], [], []>} : vector<256x4xbf16>, vector<4x128xbf16>, vector<256x128xf32> -> vector<256x128xf32>
    %c0_7 = arith.constant 0 : index
    %c0_8 = arith.constant 0 : index
    %c1 = arith.constant 1 : index
    %c0_9 = arith.constant 0 : index
    %7 = vector.load %arg1[%c0_7, %c0_8, %c1, %c0_9] : memref<1x18x18x4xf32, #tpu.memory_space<vmem>>, vector<1x16x16x4xf32>
    %8 = vector.shape_cast %7 : vector<1x16x16x4xf32> to vector<16x16x4xf32>
    %9 = vector.shape_cast %8 : vector<16x16x4xf32> to vector<256x4xf32>
    %10 = arith.truncf %9 : vector<256x4xf32> to vector<256x4xbf16>
    %c0_10 = arith.constant 0 : index
    %c1_11 = arith.constant 1 : index
    %c0_12 = arith.constant 0 : index
    %c0_13 = arith.constant 0 : index
    %11 = vector.load %arg2[%c0_10, %c1_11, %c0_12, %c0_13] : memref<3x3x4x128xbf16, #tpu.memory_space<vmem>>, vector<1x1x4x128xbf16>
    %12 = vector.shape_cast %11 : vector<1x1x4x128xbf16> to vector<4x128xbf16>
    %cst_14 = arith.constant dense<0.000000e+00> : vector<256x128xf32>
    %13 = tpu.matmul %10, %12, %cst_14 {dimension_numbers = #tpu.dot_dimension_numbers<[1], [0], [0], [1], [0, 0, 1, 1], [], []>} : vector<256x4xbf16>, vector<4x128xbf16>, vector<256x128xf32> -> vector<256x128xf32>
    %14 = arith.addf %6, %13 : vector<256x128xf32>
    %c0_15 = arith.constant 0 : index
    %c0_16 = arith.constant 0 : index
    %c2 = arith.constant 2 : index
    %c0_17 = arith.constant 0 : index
    %15 = vector.load %arg1[%c0_15, %c0_16, %c2, %c0_17] : memref<1x18x18x4xf32, #tpu.memory_space<vmem>>, vector<1x16x16x4xf32>
    %16 = vector.shape_cast %15 : vector<1x16x16x4xf32> to vector<16x16x4xf32>
    %17 = vector.shape_cast %16 : vector<16x16x4xf32> to vector<256x4xf32>
    %18 = arith.truncf %17 : vector<256x4xf32> to vector<256x4xbf16>
    %c0_18 = arith.constant 0 : index
    %c2_19 = arith.constant 2 : index
    %c0_20 = arith.constant 0 : index
    %c0_21 = arith.constant 0 : index
    %19 = vector.load %arg2[%c0_18, %c2_19, %c0_20, %c0_21] : memref<3x3x4x128xbf16, #tpu.memory_space<vmem>>, vector<1x1x4x128xbf16>
    %20 = vector.shape_cast %19 : vector<1x1x4x128xbf16> to vector<4x128xbf16>
    %cst_22 = arith.constant dense<0.000000e+00> : vector<256x128xf32>
    %21 = tpu.matmul %18, %20, %cst_22 {dimension_numbers = #tpu.dot_dimension_numbers<[1], [0], [0], [1], [0, 0, 1, 1], [], []>} : vector<256x4xbf16>, vector<4x128xbf16>, vector<256x128xf32> -> vector<256x128xf32>
    %22 = arith.addf %14, %21 : vector<256x128xf32>
    %c0_23 = arith.constant 0 : index
    %c1_24 = arith.constant 1 : index
    %c0_25 = arith.constant 0 : index
    %c0_26 = arith.constant 0 : index
    %23 = vector.load %arg1[%c0_23, %c1_24, %c0_25, %c0_26] : memref<1x18x18x4xf32, #tpu.memory_space<vmem>>, vector<1x16x16x4xf32>
    %24 = vector.shape_cast %23 : vector<1x16x16x4xf32> to vector<16x16x4xf32>
    %25 = vector.shape_cast %24 : vector<16x16x4xf32> to vector<256x4xf32>
    %26 = arith.truncf %25 : vector<256x4xf32> to vector<256x4xbf16>
    %c1_27 = arith.constant 1 : index
    %c0_28 = arith.constant 0 : index
    %c0_29 = arith.constant 0 : index
    %c0_30 = arith.constant 0 : index
    %27 = vector.load %arg2[%c1_27, %c0_28, %c0_29, %c0_30] : memref<3x3x4x128xbf16, #tpu.memory_space<vmem>>, vector<1x1x4x128xbf16>
    %28 = vector.shape_cast %27 : vector<1x1x4x128xbf16> to vector<4x128xbf16>
    %cst_31 = arith.constant dense<0.000000e+00> : vector<256x128xf32>
    %29 = tpu.matmul %26, %28, %cst_31 {dimension_numbers = #tpu.dot_dimension_numbers<[1], [0], [0], [1], [0, 0, 1, 1], [], []>} : vector<256x4xbf16>, vector<4x128xbf16>, vector<256x128xf32> -> vector<256x128xf32>
    %30 = arith.addf %22, %29 : vector<256x128xf32>
    %c0_32 = arith.constant 0 : index
    %c1_33 = arith.constant 1 : index
    %c1_34 = arith.constant 1 : index
    %c0_35 = arith.constant 0 : index
    %31 = vector.load %arg1[%c0_32, %c1_33, %c1_34, %c0_35] : memref<1x18x18x4xf32, #tpu.memory_space<vmem>>, vector<1x16x16x4xf32>
    %32 = vector.shape_cast %31 : vector<1x16x16x4xf32> to vector<16x16x4xf32>
    %33 = vector.shape_cast %32 : vector<16x16x4xf32> to vector<256x4xf32>
    %34 = arith.truncf %33 : vector<256x4xf32> to vector<256x4xbf16>
    %c1_36 = arith.constant 1 : index
    %c1_37 = arith.constant 1 : index
    %c0_38 = arith.constant 0 : index
    %c0_39 = arith.constant 0 : index
    %35 = vector.load %arg2[%c1_36, %c1_37, %c0_38, %c0_39] : memref<3x3x4x128xbf16, #tpu.memory_space<vmem>>, vector<1x1x4x128xbf16>
    %36 = vector.shape_cast %35 : vector<1x1x4x128xbf16> to vector<4x128xbf16>
    %cst_40 = arith.constant dense<0.000000e+00> : vector<256x128xf32>
    %37 = tpu.matmul %34, %36, %cst_40 {dimension_numbers = #tpu.dot_dimension_numbers<[1], [0], [0], [1], [0, 0, 1, 1], [], []>} : vector<256x4xbf16>, vector<4x128xbf16>, vector<256x128xf32> -> vector<256x128xf32>
    %38 = arith.addf %30, %37 : vector<256x128xf32>
    %c0_41 = arith.constant 0 : index
    %c1_42 = arith.constant 1 : index
    %c2_43 = arith.constant 2 : index
    %c0_44 = arith.constant 0 : index
    %39 = vector.load %arg1[%c0_41, %c1_42, %c2_43, %c0_44] : memref<1x18x18x4xf32, #tpu.memory_space<vmem>>, vector<1x16x16x4xf32>
    %40 = vector.shape_cast %39 : vector<1x16x16x4xf32> to vector<16x16x4xf32>
    %41 = vector.shape_cast %40 : vector<16x16x4xf32> to vector<256x4xf32>
    %42 = arith.truncf %41 : vector<256x4xf32> to vector<256x4xbf16>
    %c1_45 = arith.constant 1 : index
    %c2_46 = arith.constant 2 : index
    %c0_47 = arith.constant 0 : index
    %c0_48 = arith.constant 0 : index
    %43 = vector.load %arg2[%c1_45, %c2_46, %c0_47, %c0_48] : memref<3x3x4x128xbf16, #tpu.memory_space<vmem>>, vector<1x1x4x128xbf16>
    %44 = vector.shape_cast %43 : vector<1x1x4x128xbf16> to vector<4x128xbf16>
    %cst_49 = arith.constant dense<0.000000e+00> : vector<256x128xf32>
    %45 = tpu.matmul %42, %44, %cst_49 {dimension_numbers = #tpu.dot_dimension_numbers<[1], [0], [0], [1], [0, 0, 1, 1], [], []>} : vector<256x4xbf16>, vector<4x128xbf16>, vector<256x128xf32> -> vector<256x128xf32>
    %46 = arith.addf %38, %45 : vector<256x128xf32>
    %c0_50 = arith.constant 0 : index
    %c2_51 = arith.constant 2 : index
    %c0_52 = arith.constant 0 : index
    %c0_53 = arith.constant 0 : index
    %47 = vector.load %arg1[%c0_50, %c2_51, %c0_52, %c0_53] : memref<1x18x18x4xf32, #tpu.memory_space<vmem>>, vector<1x16x16x4xf32>
    %48 = vector.shape_cast %47 : vector<1x16x16x4xf32> to vector<16x16x4xf32>
    %49 = vector.shape_cast %48 : vector<16x16x4xf32> to vector<256x4xf32>
    %50 = arith.truncf %49 : vector<256x4xf32> to vector<256x4xbf16>
    %c2_54 = arith.constant 2 : index
    %c0_55 = arith.constant 0 : index
    %c0_56 = arith.constant 0 : index
    %c0_57 = arith.constant 0 : index
    %51 = vector.load %arg2[%c2_54, %c0_55, %c0_56, %c0_57] : memref<3x3x4x128xbf16, #tpu.memory_space<vmem>>, vector<1x1x4x128xbf16>
    %52 = vector.shape_cast %51 : vector<1x1x4x128xbf16> to vector<4x128xbf16>
    %cst_58 = arith.constant dense<0.000000e+00> : vector<256x128xf32>
    %53 = tpu.matmul %50, %52, %cst_58 {dimension_numbers = #tpu.dot_dimension_numbers<[1], [0], [0], [1], [0, 0, 1, 1], [], []>} : vector<256x4xbf16>, vector<4x128xbf16>, vector<256x128xf32> -> vector<256x128xf32>
    %54 = arith.addf %46, %53 : vector<256x128xf32>
    %c0_59 = arith.constant 0 : index
    %c2_60 = arith.constant 2 : index
    %c1_61 = arith.constant 1 : index
    %c0_62 = arith.constant 0 : index
    %55 = vector.load %arg1[%c0_59, %c2_60, %c1_61, %c0_62] : memref<1x18x18x4xf32, #tpu.memory_space<vmem>>, vector<1x16x16x4xf32>
    %56 = vector.shape_cast %55 : vector<1x16x16x4xf32> to vector<16x16x4xf32>
    %57 = vector.shape_cast %56 : vector<16x16x4xf32> to vector<256x4xf32>
    %58 = arith.truncf %57 : vector<256x4xf32> to vector<256x4xbf16>
    %c2_63 = arith.constant 2 : index
    %c1_64 = arith.constant 1 : index
    %c0_65 = arith.constant 0 : index
    %c0_66 = arith.constant 0 : index
    %59 = vector.load %arg2[%c2_63, %c1_64, %c0_65, %c0_66] : memref<3x3x4x128xbf16, #tpu.memory_space<vmem>>, vector<1x1x4x128xbf16>
    %60 = vector.shape_cast %59 : vector<1x1x4x128xbf16> to vector<4x128xbf16>
    %cst_67 = arith.constant dense<0.000000e+00> : vector<256x128xf32>
    %61 = tpu.matmul %58, %60, %cst_67 {dimension_numbers = #tpu.dot_dimension_numbers<[1], [0], [0], [1], [0, 0, 1, 1], [], []>} : vector<256x4xbf16>, vector<4x128xbf16>, vector<256x128xf32> -> vector<256x128xf32>
    %62 = arith.addf %54, %61 : vector<256x128xf32>
    %c0_68 = arith.constant 0 : index
    %c2_69 = arith.constant 2 : index
    %c2_70 = arith.constant 2 : index
    %c0_71 = arith.constant 0 : index
    %63 = vector.load %arg1[%c0_68, %c2_69, %c2_70, %c0_71] : memref<1x18x18x4xf32, #tpu.memory_space<vmem>>, vector<1x16x16x4xf32>
    %64 = vector.shape_cast %63 : vector<1x16x16x4xf32> to vector<16x16x4xf32>
    %65 = vector.shape_cast %64 : vector<16x16x4xf32> to vector<256x4xf32>
    %66 = arith.truncf %65 : vector<256x4xf32> to vector<256x4xbf16>
    %c2_72 = arith.constant 2 : index
    %c2_73 = arith.constant 2 : index
    %c0_74 = arith.constant 0 : index
    %c0_75 = arith.constant 0 : index
    %67 = vector.load %arg2[%c2_72, %c2_73, %c0_74, %c0_75] : memref<3x3x4x128xbf16, #tpu.memory_space<vmem>>, vector<1x1x4x128xbf16>
    %68 = vector.shape_cast %67 : vector<1x1x4x128xbf16> to vector<4x128xbf16>
    %cst_76 = arith.constant dense<0.000000e+00> : vector<256x128xf32>
    %69 = tpu.matmul %66, %68, %cst_76 {dimension_numbers = #tpu.dot_dimension_numbers<[1], [0], [0], [1], [0, 0, 1, 1], [], []>} : vector<256x4xbf16>, vector<4x128xbf16>, vector<256x128xf32> -> vector<256x128xf32>
    %70 = arith.addf %62, %69 : vector<256x128xf32>
    %71 = vector.shape_cast %70 : vector<256x128xf32> to vector<1x16x16x128xf32>
    %c0_77 = arith.constant 0 : index
    %c0_78 = arith.constant 0 : index
    %c0_79 = arith.constant 0 : index
    %c0_80 = arith.constant 0 : index
    %72 = vector.load %arg3[%c0_77, %c0_78, %c0_79, %c0_80] : memref<1x16x16x128xf32, #tpu.memory_space<vmem>>, vector<1x16x16x128xf32>
    tpu.vector_store %arg3[%c0_77, %c0_78, %c0_79, %c0_80], %71 {strides = array<i32>} : memref<1x16x16x128xf32, #tpu.memory_space<vmem>>, vector<1x16x16x128xf32>,
    %cst_81 = arith.constant dense<0.000000e+00> : vector<128xf32>
    %73 = vector.multi_reduction <add>, %70, %cst_81 [0] : vector<256x128xf32> to vector<128xf32>
    %74 = vector.shape_cast %73 : vector<128xf32> to vector<1x128xf32>
    %75 = arith.mulf %70, %70 : vector<256x128xf32>
    %cst_82 = arith.constant dense<0.000000e+00> : vector<128xf32>
    %76 = vector.multi_reduction <add>, %75, %cst_82 [0] : vector<256x128xf32> to vector<128xf32>
    %77 = vector.shape_cast %76 : vector<128xf32> to vector<1x128xf32>
    %78 = tpu.concatenate %74, %77 in 0 : vector<1x128xf32>, vector<1x128xf32> -> vector<2x128xf32>
    %79 = vector.shape_cast %78 : vector<2x128xf32> to vector<1x2x128xf32>
    %c0_83 = arith.constant 0 : index
    %c0_84 = arith.constant 0 : index
    %c0_85 = arith.constant 0 : index
    %80 = vector.load %arg4[%c0_83, %c0_84, %c0_85] : memref<1x2x128xf32, #tpu.memory_space<vmem>>, vector<1x2x128xf32>
    tpu.vector_store %arg4[%c0_83, %c0_84, %c0_85], %79 {strides = array<i32>} : memref<1x2x128xf32, #tpu.memory_space<vmem>>, vector<1x2x128xf32>,
    return
  }
  func.func @transform_0(%arg0: i32) -> (i32, i32, i32, i32) {
    %c0_i32 = arith.constant 0 : i32
    %c0_i32_0 = arith.constant 0 : i32
    %c0_i32_1 = arith.constant 0 : i32
    %c0_i32_2 = arith.constant 0 : i32
    return %arg0, %c0_i32, %c0_i32_0, %c0_i32_1 : i32, i32, i32, i32
  }
  func.func @transform_1(%arg0: i32) -> (i32, i32, i32, i32) {
    %c0_i32 = arith.constant 0 : i32
    %c0_i32_0 = arith.constant 0 : i32
    %c0_i32_1 = arith.constant 0 : i32
    %c0_i32_2 = arith.constant 0 : i32
    %c0_i32_3 = arith.constant 0 : i32
    return %c0_i32, %c0_i32_0, %c0_i32_1, %c0_i32_2 : i32, i32, i32, i32
  }
  func.func @transform_2(%arg0: i32) -> (i32, i32, i32, i32) {
    %c0_i32 = arith.constant 0 : i32
    %c0_i32_0 = arith.constant 0 : i32
    %c0_i32_1 = arith.constant 0 : i32
    %c0_i32_2 = arith.constant 0 : i32
    return %arg0, %c0_i32, %c0_i32_0, %c0_i32_1 : i32, i32, i32, i32
  }
  func.func @transform_3(%arg0: i32) -> (i32, i32, i32) {
    %c0_i32 = arith.constant 0 : i32
    %c0_i32_0 = arith.constant 0 : i32
    %c0_i32_1 = arith.constant 0 : i32
    return %arg0, %c0_i32, %c0_i32_0 : i32, i32, i32
  }
}

module attributes {stable_mosaic.version = 11 : i64} {
  func.func @kernel(%arg0: i32, %arg1: memref<1x16x16x128xf32, #tpu.memory_space<vmem>>, %arg2: memref<1x128xf32, #tpu.memory_space<vmem>>, %arg3: memref<1x128xf32, #tpu.memory_space<vmem>>, %arg4: memref<1x16x16x4xf32, #tpu.memory_space<vmem>>, %arg5: memref<4x128xbf16, #tpu.memory_space<vmem>>, %arg6: memref<1x128xf32, #tpu.memory_space<vmem>>, %arg7: memref<1x128xf32, #tpu.memory_space<vmem>>, %arg8: memref<1x16x16x128xf32, #tpu.memory_space<vmem>>) attributes {dimension_semantics = [#tpu.dimension_semantics<parallel>], iteration_bounds = array<i64: 2>, scalar_prefetch = 0 : i64, scratch_operands = 0 : i64, tpu.core_type = #tpu.core_type<tc>, window_params = [{transform_indices = @transform_0, window_bounds = array<i64: 1, 16, 16, 128>}, {pipeline_mode = #tpu.pipeline_mode<synchronous>, transform_indices = @transform_1, window_bounds = array<i64: 1, 128>}, {pipeline_mode = #tpu.pipeline_mode<synchronous>, transform_indices = @transform_2, window_bounds = array<i64: 1, 128>}, {transform_indices = @transform_3, window_bounds = array<i64: 1, 16, 16, 4>}, {pipeline_mode = #tpu.pipeline_mode<synchronous>, transform_indices = @transform_4, window_bounds = array<i64: 4, 128>}, {pipeline_mode = #tpu.pipeline_mode<synchronous>, transform_indices = @transform_5, window_bounds = array<i64: 1, 128>}, {pipeline_mode = #tpu.pipeline_mode<synchronous>, transform_indices = @transform_6, window_bounds = array<i64: 1, 128>}, {transform_indices = @transform_7, window_bounds = array<i64: 1, 16, 16, 128>}]} {
    %c0 = arith.constant 0 : index
    %c0_0 = arith.constant 0 : index
    %c0_1 = arith.constant 0 : index
    %c0_2 = arith.constant 0 : index
    %0 = vector.load %arg1[%c0, %c0_0, %c0_1, %c0_2] : memref<1x16x16x128xf32, #tpu.memory_space<vmem>>, vector<1x16x16x128xf32>
    %1 = vector.shape_cast %0 : vector<1x16x16x128xf32> to vector<16x16x128xf32>
    %c0_3 = arith.constant 0 : index
    %c0_4 = arith.constant 0 : index
    %2 = vector.load %arg2[%c0_3, %c0_4] : memref<1x128xf32, #tpu.memory_space<vmem>>, vector<1x128xf32>
    %3 = vector.shape_cast %2 : vector<1x128xf32> to vector<1x1x128xf32>
    %4 = vector.broadcast %3 : vector<1x1x128xf32> to vector<16x16x128xf32>
    %5 = arith.mulf %1, %4 : vector<16x16x128xf32>
    %c0_5 = arith.constant 0 : index
    %c0_6 = arith.constant 0 : index
    %6 = vector.load %arg3[%c0_5, %c0_6] : memref<1x128xf32, #tpu.memory_space<vmem>>, vector<1x128xf32>
    %7 = vector.shape_cast %6 : vector<1x128xf32> to vector<1x1x128xf32>
    %8 = vector.broadcast %7 : vector<1x1x128xf32> to vector<16x16x128xf32>
    %9 = arith.addf %5, %8 : vector<16x16x128xf32>
    %c0_7 = arith.constant 0 : index
    %c0_8 = arith.constant 0 : index
    %c0_9 = arith.constant 0 : index
    %c0_10 = arith.constant 0 : index
    %10 = vector.load %arg4[%c0_7, %c0_8, %c0_9, %c0_10] : memref<1x16x16x4xf32, #tpu.memory_space<vmem>>, vector<1x16x16x4xf32>
    %11 = vector.shape_cast %10 : vector<1x16x16x4xf32> to vector<16x16x4xf32>
    %12 = vector.shape_cast %11 : vector<16x16x4xf32> to vector<256x4xf32>
    %13 = arith.truncf %12 : vector<256x4xf32> to vector<256x4xbf16>
    %c0_11 = arith.constant 0 : index
    %c0_12 = arith.constant 0 : index
    %14 = vector.load %arg5[%c0_11, %c0_12] : memref<4x128xbf16, #tpu.memory_space<vmem>>, vector<4x128xbf16>
    %cst = arith.constant dense<0.000000e+00> : vector<256x128xf32>
    %15 = tpu.matmul %13, %14, %cst {dimension_numbers = #tpu.dot_dimension_numbers<[1], [0], [0], [1], [0, 0, 1, 1], [], []>} : vector<256x4xbf16>, vector<4x128xbf16>, vector<256x128xf32> -> vector<256x128xf32>
    %16 = vector.shape_cast %15 : vector<256x128xf32> to vector<16x16x128xf32>
    %c0_13 = arith.constant 0 : index
    %c0_14 = arith.constant 0 : index
    %17 = vector.load %arg6[%c0_13, %c0_14] : memref<1x128xf32, #tpu.memory_space<vmem>>, vector<1x128xf32>
    %18 = vector.shape_cast %17 : vector<1x128xf32> to vector<1x1x128xf32>
    %19 = vector.broadcast %18 : vector<1x1x128xf32> to vector<16x16x128xf32>
    %20 = arith.mulf %16, %19 : vector<16x16x128xf32>
    %c0_15 = arith.constant 0 : index
    %c0_16 = arith.constant 0 : index
    %21 = vector.load %arg7[%c0_15, %c0_16] : memref<1x128xf32, #tpu.memory_space<vmem>>, vector<1x128xf32>
    %22 = vector.shape_cast %21 : vector<1x128xf32> to vector<1x1x128xf32>
    %23 = vector.broadcast %22 : vector<1x1x128xf32> to vector<16x16x128xf32>
    %24 = arith.addf %20, %23 : vector<16x16x128xf32>
    %25 = arith.addf %9, %24 : vector<16x16x128xf32>
    %cst_17 = arith.constant 0.000000e+00 : f32
    %26 = vector.broadcast %cst_17 : f32 to vector<16x16x128xf32>
    %27 = arith.maximumf %25, %26 : vector<16x16x128xf32>
    %28 = vector.shape_cast %27 : vector<16x16x128xf32> to vector<1x16x16x128xf32>
    %c0_18 = arith.constant 0 : index
    %c0_19 = arith.constant 0 : index
    %c0_20 = arith.constant 0 : index
    %c0_21 = arith.constant 0 : index
    %29 = vector.load %arg8[%c0_18, %c0_19, %c0_20, %c0_21] : memref<1x16x16x128xf32, #tpu.memory_space<vmem>>, vector<1x16x16x128xf32>
    tpu.vector_store %arg8[%c0_18, %c0_19, %c0_20, %c0_21], %28 {strides = array<i32>} : memref<1x16x16x128xf32, #tpu.memory_space<vmem>>, vector<1x16x16x128xf32>,
    return
  }
  func.func @transform_0(%arg0: i32) -> (i32, i32, i32, i32) {
    %c0_i32 = arith.constant 0 : i32
    %c0_i32_0 = arith.constant 0 : i32
    %c0_i32_1 = arith.constant 0 : i32
    %c0_i32_2 = arith.constant 0 : i32
    return %arg0, %c0_i32, %c0_i32_0, %c0_i32_1 : i32, i32, i32, i32
  }
  func.func @transform_1(%arg0: i32) -> (i32, i32) {
    %c0_i32 = arith.constant 0 : i32
    %c0_i32_0 = arith.constant 0 : i32
    %c0_i32_1 = arith.constant 0 : i32
    return %c0_i32, %c0_i32_0 : i32, i32
  }
  func.func @transform_2(%arg0: i32) -> (i32, i32) {
    %c0_i32 = arith.constant 0 : i32
    %c0_i32_0 = arith.constant 0 : i32
    %c0_i32_1 = arith.constant 0 : i32
    return %c0_i32, %c0_i32_0 : i32, i32
  }
  func.func @transform_3(%arg0: i32) -> (i32, i32, i32, i32) {
    %c0_i32 = arith.constant 0 : i32
    %c0_i32_0 = arith.constant 0 : i32
    %c0_i32_1 = arith.constant 0 : i32
    %c0_i32_2 = arith.constant 0 : i32
    return %arg0, %c0_i32, %c0_i32_0, %c0_i32_1 : i32, i32, i32, i32
  }
  func.func @transform_4(%arg0: i32) -> (i32, i32) {
    %c0_i32 = arith.constant 0 : i32
    %c0_i32_0 = arith.constant 0 : i32
    %c0_i32_1 = arith.constant 0 : i32
    return %c0_i32, %c0_i32_0 : i32, i32
  }
  func.func @transform_5(%arg0: i32) -> (i32, i32) {
    %c0_i32 = arith.constant 0 : i32
    %c0_i32_0 = arith.constant 0 : i32
    %c0_i32_1 = arith.constant 0 : i32
    return %c0_i32, %c0_i32_0 : i32, i32
  }
  func.func @transform_6(%arg0: i32) -> (i32, i32) {
    %c0_i32 = arith.constant 0 : i32
    %c0_i32_0 = arith.constant 0 : i32
    %c0_i32_1 = arith.constant 0 : i32
    return %c0_i32, %c0_i32_0 : i32, i32
  }
  func.func @transform_7(%arg0: i32) -> (i32, i32, i32, i32) {
    %c0_i32 = arith.constant 0 : i32
    %c0_i32_0 = arith.constant 0 : i32
    %c0_i32_1 = arith.constant 0 : i32
    %c0_i32_2 = arith.constant 0 : i32
    return %arg0, %c0_i32, %c0_i32_0, %c0_i32_1 : i32, i32, i32, i32
  }
}

module attributes {stable_mosaic.version = 11 : i64} {
  func.func @kernel(%arg0: i32, %arg1: memref<1x16x16x128xf32, #tpu.memory_space<vmem>>, %arg2: memref<1x128xf32, #tpu.memory_space<vmem>>, %arg3: memref<1x128xf32, #tpu.memory_space<vmem>>, %arg4: memref<3x3x128x128xbf16, #tpu.memory_space<vmem>>, %arg5: memref<1x16x16x4xf32, #tpu.memory_space<vmem>>, %arg6: memref<4x128xbf16, #tpu.memory_space<vmem>>, %arg7: memref<1x16x16x128xf32, #tpu.memory_space<vmem>>, %arg8: memref<1x2x128xf32, #tpu.memory_space<vmem>>, %arg9: memref<1x2x128xf32, #tpu.memory_space<vmem>>, %arg10: memref<18x18x128xf32, #tpu.memory_space<vmem>>) attributes {dimension_semantics = [#tpu.dimension_semantics<parallel>], iteration_bounds = array<i64: 2>, scalar_prefetch = 0 : i64, scratch_operands = 1 : i64, tpu.core_type = #tpu.core_type<tc>, window_params = [{transform_indices = @transform_0, window_bounds = array<i64: 1, 16, 16, 128>}, {pipeline_mode = #tpu.pipeline_mode<synchronous>, transform_indices = @transform_1, window_bounds = array<i64: 1, 128>}, {pipeline_mode = #tpu.pipeline_mode<synchronous>, transform_indices = @transform_2, window_bounds = array<i64: 1, 128>}, {pipeline_mode = #tpu.pipeline_mode<synchronous>, transform_indices = @transform_3, window_bounds = array<i64: 3, 3, 128, 128>}, {transform_indices = @transform_4, window_bounds = array<i64: 1, 16, 16, 4>}, {pipeline_mode = #tpu.pipeline_mode<synchronous>, transform_indices = @transform_5, window_bounds = array<i64: 4, 128>}, {transform_indices = @transform_6, window_bounds = array<i64: 1, 16, 16, 128>}, {transform_indices = @transform_7, window_bounds = array<i64: 1, 2, 128>}, {transform_indices = @transform_8, window_bounds = array<i64: 1, 2, 128>}]} {
    %c0 = arith.constant 0 : index
    %c0_0 = arith.constant 0 : index
    %c0_1 = arith.constant 0 : index
    %c0_2 = arith.constant 0 : index
    %0 = vector.load %arg1[%c0, %c0_0, %c0_1, %c0_2] : memref<1x16x16x128xf32, #tpu.memory_space<vmem>>, vector<1x16x16x128xf32>
    %1 = vector.shape_cast %0 : vector<1x16x16x128xf32> to vector<16x16x128xf32>
    %c0_3 = arith.constant 0 : index
    %c0_4 = arith.constant 0 : index
    %2 = vector.load %arg2[%c0_3, %c0_4] : memref<1x128xf32, #tpu.memory_space<vmem>>, vector<1x128xf32>
    %3 = vector.shape_cast %2 : vector<1x128xf32> to vector<1x1x128xf32>
    %4 = vector.broadcast %3 : vector<1x1x128xf32> to vector<16x16x128xf32>
    %5 = arith.mulf %1, %4 : vector<16x16x128xf32>
    %c0_5 = arith.constant 0 : index
    %c0_6 = arith.constant 0 : index
    %6 = vector.load %arg3[%c0_5, %c0_6] : memref<1x128xf32, #tpu.memory_space<vmem>>, vector<1x128xf32>
    %7 = vector.shape_cast %6 : vector<1x128xf32> to vector<1x1x128xf32>
    %8 = vector.broadcast %7 : vector<1x1x128xf32> to vector<16x16x128xf32>
    %9 = arith.addf %5, %8 : vector<16x16x128xf32>
    %cst = arith.constant 0.000000e+00 : f32
    %10 = vector.broadcast %cst : f32 to vector<16x16x128xf32>
    %11 = arith.maximumf %9, %10 : vector<16x16x128xf32>
    %cst_7 = arith.constant 0.000000e+00 : f32
    %12 = vector.broadcast %cst_7 : f32 to vector<18x18x128xf32>
    %c0_8 = arith.constant 0 : index
    %c0_9 = arith.constant 0 : index
    %c0_10 = arith.constant 0 : index
    %13 = vector.load %arg10[%c0_8, %c0_9, %c0_10] : memref<18x18x128xf32, #tpu.memory_space<vmem>>, vector<18x18x128xf32>
    tpu.vector_store %arg10[%c0_8, %c0_9, %c0_10], %12 {strides = array<i32>} : memref<18x18x128xf32, #tpu.memory_space<vmem>>, vector<18x18x128xf32>,
    %c1 = arith.constant 1 : index
    %c1_11 = arith.constant 1 : index
    %c0_12 = arith.constant 0 : index
    %14 = vector.load %arg10[%c1, %c1_11, %c0_12] : memref<18x18x128xf32, #tpu.memory_space<vmem>>, vector<16x16x128xf32>
    tpu.vector_store %arg10[%c1, %c1_11, %c0_12], %11 {strides = array<i32>} : memref<18x18x128xf32, #tpu.memory_space<vmem>>, vector<16x16x128xf32>,
    %c0_13 = arith.constant 0 : index
    %c0_14 = arith.constant 0 : index
    %c0_15 = arith.constant 0 : index
    %15 = vector.load %arg10[%c0_13, %c0_14, %c0_15] : memref<18x18x128xf32, #tpu.memory_space<vmem>>, vector<16x16x128xf32>
    %16 = vector.shape_cast %15 : vector<16x16x128xf32> to vector<256x128xf32>
    %17 = arith.truncf %16 : vector<256x128xf32> to vector<256x128xbf16>
    %c0_16 = arith.constant 0 : index
    %c0_17 = arith.constant 0 : index
    %c0_18 = arith.constant 0 : index
    %c0_19 = arith.constant 0 : index
    %18 = vector.load %arg4[%c0_16, %c0_17, %c0_18, %c0_19] : memref<3x3x128x128xbf16, #tpu.memory_space<vmem>>, vector<1x1x128x128xbf16>
    %19 = vector.shape_cast %18 : vector<1x1x128x128xbf16> to vector<128x128xbf16>
    %cst_20 = arith.constant dense<0.000000e+00> : vector<256x128xf32>
    %20 = tpu.matmul %17, %19, %cst_20 {dimension_numbers = #tpu.dot_dimension_numbers<[1], [0], [0], [1], [0, 0, 1, 1], [], []>} : vector<256x128xbf16>, vector<128x128xbf16>, vector<256x128xf32> -> vector<256x128xf32>
    %c0_21 = arith.constant 0 : index
    %c1_22 = arith.constant 1 : index
    %c0_23 = arith.constant 0 : index
    %21 = vector.load %arg10[%c0_21, %c1_22, %c0_23] : memref<18x18x128xf32, #tpu.memory_space<vmem>>, vector<16x16x128xf32>
    %22 = vector.shape_cast %21 : vector<16x16x128xf32> to vector<256x128xf32>
    %23 = arith.truncf %22 : vector<256x128xf32> to vector<256x128xbf16>
    %c0_24 = arith.constant 0 : index
    %c1_25 = arith.constant 1 : index
    %c0_26 = arith.constant 0 : index
    %c0_27 = arith.constant 0 : index
    %24 = vector.load %arg4[%c0_24, %c1_25, %c0_26, %c0_27] : memref<3x3x128x128xbf16, #tpu.memory_space<vmem>>, vector<1x1x128x128xbf16>
    %25 = vector.shape_cast %24 : vector<1x1x128x128xbf16> to vector<128x128xbf16>
    %cst_28 = arith.constant dense<0.000000e+00> : vector<256x128xf32>
    %26 = tpu.matmul %23, %25, %cst_28 {dimension_numbers = #tpu.dot_dimension_numbers<[1], [0], [0], [1], [0, 0, 1, 1], [], []>} : vector<256x128xbf16>, vector<128x128xbf16>, vector<256x128xf32> -> vector<256x128xf32>
    %27 = arith.addf %20, %26 : vector<256x128xf32>
    %c0_29 = arith.constant 0 : index
    %c2 = arith.constant 2 : index
    %c0_30 = arith.constant 0 : index
    %28 = vector.load %arg10[%c0_29, %c2, %c0_30] : memref<18x18x128xf32, #tpu.memory_space<vmem>>, vector<16x16x128xf32>
    %29 = vector.shape_cast %28 : vector<16x16x128xf32> to vector<256x128xf32>
    %30 = arith.truncf %29 : vector<256x128xf32> to vector<256x128xbf16>
    %c0_31 = arith.constant 0 : index
    %c2_32 = arith.constant 2 : index
    %c0_33 = arith.constant 0 : index
    %c0_34 = arith.constant 0 : index
    %31 = vector.load %arg4[%c0_31, %c2_32, %c0_33, %c0_34] : memref<3x3x128x128xbf16, #tpu.memory_space<vmem>>, vector<1x1x128x128xbf16>
    %32 = vector.shape_cast %31 : vector<1x1x128x128xbf16> to vector<128x128xbf16>
    %cst_35 = arith.constant dense<0.000000e+00> : vector<256x128xf32>
    %33 = tpu.matmul %30, %32, %cst_35 {dimension_numbers = #tpu.dot_dimension_numbers<[1], [0], [0], [1], [0, 0, 1, 1], [], []>} : vector<256x128xbf16>, vector<128x128xbf16>, vector<256x128xf32> -> vector<256x128xf32>
    %34 = arith.addf %27, %33 : vector<256x128xf32>
    %c1_36 = arith.constant 1 : index
    %c0_37 = arith.constant 0 : index
    %c0_38 = arith.constant 0 : index
    %35 = vector.load %arg10[%c1_36, %c0_37, %c0_38] : memref<18x18x128xf32, #tpu.memory_space<vmem>>, vector<16x16x128xf32>
    %36 = vector.shape_cast %35 : vector<16x16x128xf32> to vector<256x128xf32>
    %37 = arith.truncf %36 : vector<256x128xf32> to vector<256x128xbf16>
    %c1_39 = arith.constant 1 : index
    %c0_40 = arith.constant 0 : index
    %c0_41 = arith.constant 0 : index
    %c0_42 = arith.constant 0 : index
    %38 = vector.load %arg4[%c1_39, %c0_40, %c0_41, %c0_42] : memref<3x3x128x128xbf16, #tpu.memory_space<vmem>>, vector<1x1x128x128xbf16>
    %39 = vector.shape_cast %38 : vector<1x1x128x128xbf16> to vector<128x128xbf16>
    %cst_43 = arith.constant dense<0.000000e+00> : vector<256x128xf32>
    %40 = tpu.matmul %37, %39, %cst_43 {dimension_numbers = #tpu.dot_dimension_numbers<[1], [0], [0], [1], [0, 0, 1, 1], [], []>} : vector<256x128xbf16>, vector<128x128xbf16>, vector<256x128xf32> -> vector<256x128xf32>
    %41 = arith.addf %34, %40 : vector<256x128xf32>
    %c1_44 = arith.constant 1 : index
    %c1_45 = arith.constant 1 : index
    %c0_46 = arith.constant 0 : index
    %42 = vector.load %arg10[%c1_44, %c1_45, %c0_46] : memref<18x18x128xf32, #tpu.memory_space<vmem>>, vector<16x16x128xf32>
    %43 = vector.shape_cast %42 : vector<16x16x128xf32> to vector<256x128xf32>
    %44 = arith.truncf %43 : vector<256x128xf32> to vector<256x128xbf16>
    %c1_47 = arith.constant 1 : index
    %c1_48 = arith.constant 1 : index
    %c0_49 = arith.constant 0 : index
    %c0_50 = arith.constant 0 : index
    %45 = vector.load %arg4[%c1_47, %c1_48, %c0_49, %c0_50] : memref<3x3x128x128xbf16, #tpu.memory_space<vmem>>, vector<1x1x128x128xbf16>
    %46 = vector.shape_cast %45 : vector<1x1x128x128xbf16> to vector<128x128xbf16>
    %cst_51 = arith.constant dense<0.000000e+00> : vector<256x128xf32>
    %47 = tpu.matmul %44, %46, %cst_51 {dimension_numbers = #tpu.dot_dimension_numbers<[1], [0], [0], [1], [0, 0, 1, 1], [], []>} : vector<256x128xbf16>, vector<128x128xbf16>, vector<256x128xf32> -> vector<256x128xf32>
    %48 = arith.addf %41, %47 : vector<256x128xf32>
    %c1_52 = arith.constant 1 : index
    %c2_53 = arith.constant 2 : index
    %c0_54 = arith.constant 0 : index
    %49 = vector.load %arg10[%c1_52, %c2_53, %c0_54] : memref<18x18x128xf32, #tpu.memory_space<vmem>>, vector<16x16x128xf32>
    %50 = vector.shape_cast %49 : vector<16x16x128xf32> to vector<256x128xf32>
    %51 = arith.truncf %50 : vector<256x128xf32> to vector<256x128xbf16>
    %c1_55 = arith.constant 1 : index
    %c2_56 = arith.constant 2 : index
    %c0_57 = arith.constant 0 : index
    %c0_58 = arith.constant 0 : index
    %52 = vector.load %arg4[%c1_55, %c2_56, %c0_57, %c0_58] : memref<3x3x128x128xbf16, #tpu.memory_space<vmem>>, vector<1x1x128x128xbf16>
    %53 = vector.shape_cast %52 : vector<1x1x128x128xbf16> to vector<128x128xbf16>
    %cst_59 = arith.constant dense<0.000000e+00> : vector<256x128xf32>
    %54 = tpu.matmul %51, %53, %cst_59 {dimension_numbers = #tpu.dot_dimension_numbers<[1], [0], [0], [1], [0, 0, 1, 1], [], []>} : vector<256x128xbf16>, vector<128x128xbf16>, vector<256x128xf32> -> vector<256x128xf32>
    %55 = arith.addf %48, %54 : vector<256x128xf32>
    %c2_60 = arith.constant 2 : index
    %c0_61 = arith.constant 0 : index
    %c0_62 = arith.constant 0 : index
    %56 = vector.load %arg10[%c2_60, %c0_61, %c0_62] : memref<18x18x128xf32, #tpu.memory_space<vmem>>, vector<16x16x128xf32>
    %57 = vector.shape_cast %56 : vector<16x16x128xf32> to vector<256x128xf32>
    %58 = arith.truncf %57 : vector<256x128xf32> to vector<256x128xbf16>
    %c2_63 = arith.constant 2 : index
    %c0_64 = arith.constant 0 : index
    %c0_65 = arith.constant 0 : index
    %c0_66 = arith.constant 0 : index
    %59 = vector.load %arg4[%c2_63, %c0_64, %c0_65, %c0_66] : memref<3x3x128x128xbf16, #tpu.memory_space<vmem>>, vector<1x1x128x128xbf16>
    %60 = vector.shape_cast %59 : vector<1x1x128x128xbf16> to vector<128x128xbf16>
    %cst_67 = arith.constant dense<0.000000e+00> : vector<256x128xf32>
    %61 = tpu.matmul %58, %60, %cst_67 {dimension_numbers = #tpu.dot_dimension_numbers<[1], [0], [0], [1], [0, 0, 1, 1], [], []>} : vector<256x128xbf16>, vector<128x128xbf16>, vector<256x128xf32> -> vector<256x128xf32>
    %62 = arith.addf %55, %61 : vector<256x128xf32>
    %c2_68 = arith.constant 2 : index
    %c1_69 = arith.constant 1 : index
    %c0_70 = arith.constant 0 : index
    %63 = vector.load %arg10[%c2_68, %c1_69, %c0_70] : memref<18x18x128xf32, #tpu.memory_space<vmem>>, vector<16x16x128xf32>
    %64 = vector.shape_cast %63 : vector<16x16x128xf32> to vector<256x128xf32>
    %65 = arith.truncf %64 : vector<256x128xf32> to vector<256x128xbf16>
    %c2_71 = arith.constant 2 : index
    %c1_72 = arith.constant 1 : index
    %c0_73 = arith.constant 0 : index
    %c0_74 = arith.constant 0 : index
    %66 = vector.load %arg4[%c2_71, %c1_72, %c0_73, %c0_74] : memref<3x3x128x128xbf16, #tpu.memory_space<vmem>>, vector<1x1x128x128xbf16>
    %67 = vector.shape_cast %66 : vector<1x1x128x128xbf16> to vector<128x128xbf16>
    %cst_75 = arith.constant dense<0.000000e+00> : vector<256x128xf32>
    %68 = tpu.matmul %65, %67, %cst_75 {dimension_numbers = #tpu.dot_dimension_numbers<[1], [0], [0], [1], [0, 0, 1, 1], [], []>} : vector<256x128xbf16>, vector<128x128xbf16>, vector<256x128xf32> -> vector<256x128xf32>
    %69 = arith.addf %62, %68 : vector<256x128xf32>
    %c2_76 = arith.constant 2 : index
    %c2_77 = arith.constant 2 : index
    %c0_78 = arith.constant 0 : index
    %70 = vector.load %arg10[%c2_76, %c2_77, %c0_78] : memref<18x18x128xf32, #tpu.memory_space<vmem>>, vector<16x16x128xf32>
    %71 = vector.shape_cast %70 : vector<16x16x128xf32> to vector<256x128xf32>
    %72 = arith.truncf %71 : vector<256x128xf32> to vector<256x128xbf16>
    %c2_79 = arith.constant 2 : index
    %c2_80 = arith.constant 2 : index
    %c0_81 = arith.constant 0 : index
    %c0_82 = arith.constant 0 : index
    %73 = vector.load %arg4[%c2_79, %c2_80, %c0_81, %c0_82] : memref<3x3x128x128xbf16, #tpu.memory_space<vmem>>, vector<1x1x128x128xbf16>
    %74 = vector.shape_cast %73 : vector<1x1x128x128xbf16> to vector<128x128xbf16>
    %cst_83 = arith.constant dense<0.000000e+00> : vector<256x128xf32>
    %75 = tpu.matmul %72, %74, %cst_83 {dimension_numbers = #tpu.dot_dimension_numbers<[1], [0], [0], [1], [0, 0, 1, 1], [], []>} : vector<256x128xbf16>, vector<128x128xbf16>, vector<256x128xf32> -> vector<256x128xf32>
    %76 = arith.addf %69, %75 : vector<256x128xf32>
    %77 = vector.shape_cast %76 : vector<256x128xf32> to vector<1x16x16x128xf32>
    %c0_84 = arith.constant 0 : index
    %c0_85 = arith.constant 0 : index
    %c0_86 = arith.constant 0 : index
    %c0_87 = arith.constant 0 : index
    %78 = vector.load %arg7[%c0_84, %c0_85, %c0_86, %c0_87] : memref<1x16x16x128xf32, #tpu.memory_space<vmem>>, vector<1x16x16x128xf32>
    tpu.vector_store %arg7[%c0_84, %c0_85, %c0_86, %c0_87], %77 {strides = array<i32>} : memref<1x16x16x128xf32, #tpu.memory_space<vmem>>, vector<1x16x16x128xf32>,
    %cst_88 = arith.constant dense<0.000000e+00> : vector<128xf32>
    %79 = vector.multi_reduction <add>, %76, %cst_88 [0] : vector<256x128xf32> to vector<128xf32>
    %80 = vector.shape_cast %79 : vector<128xf32> to vector<1x128xf32>
    %81 = arith.mulf %76, %76 : vector<256x128xf32>
    %cst_89 = arith.constant dense<0.000000e+00> : vector<128xf32>
    %82 = vector.multi_reduction <add>, %81, %cst_89 [0] : vector<256x128xf32> to vector<128xf32>
    %83 = vector.shape_cast %82 : vector<128xf32> to vector<1x128xf32>
    %84 = tpu.concatenate %80, %83 in 0 : vector<1x128xf32>, vector<1x128xf32> -> vector<2x128xf32>
    %85 = vector.shape_cast %84 : vector<2x128xf32> to vector<1x2x128xf32>
    %c0_90 = arith.constant 0 : index
    %c0_91 = arith.constant 0 : index
    %c0_92 = arith.constant 0 : index
    %86 = vector.load %arg8[%c0_90, %c0_91, %c0_92] : memref<1x2x128xf32, #tpu.memory_space<vmem>>, vector<1x2x128xf32>
    tpu.vector_store %arg8[%c0_90, %c0_91, %c0_92], %85 {strides = array<i32>} : memref<1x2x128xf32, #tpu.memory_space<vmem>>, vector<1x2x128xf32>,
    %c0_93 = arith.constant 0 : index
    %c0_94 = arith.constant 0 : index
    %c0_95 = arith.constant 0 : index
    %c0_96 = arith.constant 0 : index
    %87 = vector.load %arg5[%c0_93, %c0_94, %c0_95, %c0_96] : memref<1x16x16x4xf32, #tpu.memory_space<vmem>>, vector<1x16x16x4xf32>
    %88 = vector.shape_cast %87 : vector<1x16x16x4xf32> to vector<16x16x4xf32>
    %89 = vector.shape_cast %88 : vector<16x16x4xf32> to vector<256x4xf32>
    %90 = arith.truncf %89 : vector<256x4xf32> to vector<256x4xbf16>
    %c0_97 = arith.constant 0 : index
    %c0_98 = arith.constant 0 : index
    %91 = vector.load %arg6[%c0_97, %c0_98] : memref<4x128xbf16, #tpu.memory_space<vmem>>, vector<4x128xbf16>
    %cst_99 = arith.constant dense<0.000000e+00> : vector<256x128xf32>
    %92 = tpu.matmul %90, %91, %cst_99 {dimension_numbers = #tpu.dot_dimension_numbers<[1], [0], [0], [1], [0, 0, 1, 1], [], []>} : vector<256x4xbf16>, vector<4x128xbf16>, vector<256x128xf32> -> vector<256x128xf32>
    %cst_100 = arith.constant dense<0.000000e+00> : vector<128xf32>
    %93 = vector.multi_reduction <add>, %92, %cst_100 [0] : vector<256x128xf32> to vector<128xf32>
    %94 = vector.shape_cast %93 : vector<128xf32> to vector<1x128xf32>
    %95 = arith.mulf %92, %92 : vector<256x128xf32>
    %cst_101 = arith.constant dense<0.000000e+00> : vector<128xf32>
    %96 = vector.multi_reduction <add>, %95, %cst_101 [0] : vector<256x128xf32> to vector<128xf32>
    %97 = vector.shape_cast %96 : vector<128xf32> to vector<1x128xf32>
    %98 = tpu.concatenate %94, %97 in 0 : vector<1x128xf32>, vector<1x128xf32> -> vector<2x128xf32>
    %99 = vector.shape_cast %98 : vector<2x128xf32> to vector<1x2x128xf32>
    %c0_102 = arith.constant 0 : index
    %c0_103 = arith.constant 0 : index
    %c0_104 = arith.constant 0 : index
    %100 = vector.load %arg9[%c0_102, %c0_103, %c0_104] : memref<1x2x128xf32, #tpu.memory_space<vmem>>, vector<1x2x128xf32>
    tpu.vector_store %arg9[%c0_102, %c0_103, %c0_104], %99 {strides = array<i32>} : memref<1x2x128xf32, #tpu.memory_space<vmem>>, vector<1x2x128xf32>,
    return
  }
  func.func @transform_0(%arg0: i32) -> (i32, i32, i32, i32) {
    %c0_i32 = arith.constant 0 : i32
    %c0_i32_0 = arith.constant 0 : i32
    %c0_i32_1 = arith.constant 0 : i32
    %c0_i32_2 = arith.constant 0 : i32
    return %arg0, %c0_i32, %c0_i32_0, %c0_i32_1 : i32, i32, i32, i32
  }
  func.func @transform_1(%arg0: i32) -> (i32, i32) {
    %c0_i32 = arith.constant 0 : i32
    %c0_i32_0 = arith.constant 0 : i32
    %c0_i32_1 = arith.constant 0 : i32
    return %c0_i32, %c0_i32_0 : i32, i32
  }
  func.func @transform_2(%arg0: i32) -> (i32, i32) {
    %c0_i32 = arith.constant 0 : i32
    %c0_i32_0 = arith.constant 0 : i32
    %c0_i32_1 = arith.constant 0 : i32
    return %c0_i32, %c0_i32_0 : i32, i32
  }
  func.func @transform_3(%arg0: i32) -> (i32, i32, i32, i32) {
    %c0_i32 = arith.constant 0 : i32
    %c0_i32_0 = arith.constant 0 : i32
    %c0_i32_1 = arith.constant 0 : i32
    %c0_i32_2 = arith.constant 0 : i32
    %c0_i32_3 = arith.constant 0 : i32
    return %c0_i32, %c0_i32_0, %c0_i32_1, %c0_i32_2 : i32, i32, i32, i32
  }
  func.func @transform_4(%arg0: i32) -> (i32, i32, i32, i32) {
    %c0_i32 = arith.constant 0 : i32
    %c0_i32_0 = arith.constant 0 : i32
    %c0_i32_1 = arith.constant 0 : i32
    %c0_i32_2 = arith.constant 0 : i32
    return %arg0, %c0_i32, %c0_i32_0, %c0_i32_1 : i32, i32, i32, i32
  }
  func.func @transform_5(%arg0: i32) -> (i32, i32) {
    %c0_i32 = arith.constant 0 : i32
    %c0_i32_0 = arith.constant 0 : i32
    %c0_i32_1 = arith.constant 0 : i32
    return %c0_i32, %c0_i32_0 : i32, i32
  }
  func.func @transform_6(%arg0: i32) -> (i32, i32, i32, i32) {
    %c0_i32 = arith.constant 0 : i32
    %c0_i32_0 = arith.constant 0 : i32
    %c0_i32_1 = arith.constant 0 : i32
    %c0_i32_2 = arith.constant 0 : i32
    return %arg0, %c0_i32, %c0_i32_0, %c0_i32_1 : i32, i32, i32, i32
  }
  func.func @transform_7(%arg0: i32) -> (i32, i32, i32) {
    %c0_i32 = arith.constant 0 : i32
    %c0_i32_0 = arith.constant 0 : i32
    %c0_i32_1 = arith.constant 0 : i32
    return %arg0, %c0_i32, %c0_i32_0 : i32, i32, i32
  }
  func.func @transform_8(%arg0: i32) -> (i32, i32, i32) {
    %c0_i32 = arith.constant 0 : i32
    %c0_i32_0 = arith.constant 0 : i32
    %c0_i32_1 = arith.constant 0 : i32
    return %arg0, %c0_i32, %c0_i32_0 : i32, i32, i32
  }
}

</mosaic_0001>

<bundles_post_ra>
// kernel: resblock_forward.5
= control target key start
LH: loop header
LB: loop body
LE: loop exit
PB: predicated region body
PF: predicated region fallthrough
CT: control target
= control target key end

     0   :  { %s925_s24 = smov 0   ;;  %s1225_s0 = inlined_call_operand.vmem [shape: f32[2,16,16,128], index: 0, kind: input, shape index: {}]   ;;  %s1226_s1 = inlined_call_operand.vmem [shape: f32[1,128], index: 1, kind: input, shape index: {}]   ;;  %s1227_s2 = inlined_call_operand.vmem [shape: f32[1,128], index: 2, kind: input, shape index: {}]   ;;  %s1228_s3 = inlined_call_operand.vmem [shape: f32[2,16,16,4], index: 3, kind: input, shape index: {}]   ;;  %s1229_s4 = inlined_call_operand.vmem [shape: bf16[4,128], index: 4, kind: input, shape index: {}]   ;;  %s1230_s5 = inlined_call_operand.vmem [shape: f32[1,128], index: 5, kind: input, shape index: {}]   ;;  %s1231_s6 = inlined_call_operand.vmem [shape: f32[1,128], index: 6, kind: input, shape index: {}]   ;;  %s1232_s7 = inlined_call_operand.vmem [shape: f32[2,16,16,128], index: 7, kind: output, shape index: {}]  }
   0x1 LB: > { %s830_s25 = sadd.s32 4294967295, %s883_s24   ;;  %p834_p0 = scmp.ge.s32.totalorder %s883_s24, 1  ;;  %s883_s24 = sphi %s925_s24, %s17_s24  }
   0x2   : > { %p247_p1 = scmp.lt.s32.totalorder %s883_s24, 3 }
   0x4   : > { %p248_p2 = pnand %p834_p0, %p247_p1 }
   0x5   : > { %p284_p3 = scmp.lt.s32.totalorder (!%p248_p2), %s830_s25, 1 }
   0x6   : > { %251 = sbr.rel (%p248_p2) target bundleno = 217 (0xd9), region = 48 }
   0xb   : > { %v452_v0 = vld [vmem:[%s1229_s4] sm:$0x3]  ;;  %vm502_vm0 = vcmask 1041408   ;;  %s1234_s25 = smov (!%p284_p3, %s830_s25), 1  ;;  %vm453_vm1 = vcmask 31744  }
   0xc   : > { %v504_v1 = vsel %vm502_vm0, %v452_v0, 0  ;;  %s936_s28 = sshll.u32 %s1234_s25, 8  ;;  %v1001_v50 = vld [vmem:[%s1226_s1] ss:$0 sm:$0xff] }
   0xd   : > { %513 = vmatpush.bf16.msra.mxu0 %v504_v1  ;;  %862 = vmatpush.bf16.msra.mxu1 %v504_v1  ;;  %s942_s8 = scalar_lea.vmem %s1228_s3, %s936_s28  ;;  %s996_s11 = scalar_lea.vmem %s1225_s0, %s936_s28  ;;  %v1009_v54 = vld [vmem:[%s1227_s2] ss:$0 sm:$0xff] }
   0xe   : > { %863 = vmatpush.bf16.msra.mxu2 %v504_v1  ;;  %864 = vmatpush.bf16.msra.mxu3 %v504_v1  ;;  %v404_v2 = vld [vmem:[%s942_s8] sm:$0xff]  ;;  %v405_v3 = vld [vmem:[%s942_s8 + $0x8] sm:$0xff]  ;;  %v406_v14 = vld [vmem:[%s942_s8 + $0x10] sm:$0xff]  ;;  %s1039_s22 = scalar_lea.vmem %s1232_s7, %s936_s28 }
   0xf   : > { %v412_v4 = vld [vmem:[%s942_s8 + $0x40] sm:$0xff]  ;;  %v436_v5 = vpack.c.bf16 %v405_v3, %v404_v2  ;;  %v413_v6 = vld [vmem:[%s942_s8 + $0x48] sm:$0xff]  ;;  %v407_v15 = vld [vmem:[%s942_s8 + $0x18] sm:$0xff] }
  0x10   : > { %v420_v7 = vld [vmem:[%s942_s8 + $0x80] sm:$0xff]  ;;  %v421_v8 = vld [vmem:[%s942_s8 + $0x88] sm:$0xff]  ;;  %v440_v9 = vpack.c.bf16 %v413_v6, %v412_v4  ;;  %v414_v16 = vld [vmem:[%s942_s8 + $0x50] sm:$0xff]  ;;  %v437_v22 = vpack.c.bf16 %v407_v15, %v406_v14 }
  0x11   : > { %v444_v10 = vpack.c.bf16 %v421_v8, %v420_v7  ;;  %v428_v11 = vld [vmem:[%s942_s8 + $0xc0] sm:$0xff]  ;;  %v429_v12 = vld [vmem:[%s942_s8 + $0xc8] sm:$0xff]  ;;  %841 = vmatmul.msk.bf16.vlgmr.msra.gmra.mxu0 %vm453_vm1, %v436_v5  ;;  %v415_v17 = vld [vmem:[%s942_s8 + $0x58] sm:$0xff] }
  0x12   : > { %v448_v13 = vpack.c.bf16 %v429_v12, %v428_v11  ;;  %845 = vmatmul.msk.bf16.vlgmr.msra.gmra.mxu1 %vm453_vm1, %v440_v9  ;;  %v422_v18 = vld [vmem:[%s942_s8 + $0x90] sm:$0xff]  ;;  %v423_v19 = vld [vmem:[%s942_s8 + $0x98] sm:$0xff]  ;;  %v441_v23 = vpack.c.bf16 %v415_v17, %v414_v16  ;;  %v408_v26 = vld [vmem:[%s942_s8 + $0x20] sm:$0xff] }
  0x13   : > { %849 = vmatmul.msk.bf16.vlgmr.msra.gmra.mxu2 %vm453_vm1, %v444_v10  ;;  %v430_v20 = vld [vmem:[%s942_s8 + $0xd0] sm:$0xff]  ;;  %v431_v21 = vld [vmem:[%s942_s8 + $0xd8] sm:$0xff]  ;;  %v445_v24 = vpack.c.bf16 %v423_v19, %v422_v18  ;;  %v409_v27 = vld [vmem:[%s942_s8 + $0x28] sm:$0xff] }
  0x14   : > { %853 = vmatmul.msk.bf16.vlgmr.msra.gmra.mxu3 %vm453_vm1, %v448_v13  ;;  %v449_v25 = vpack.c.bf16 %v431_v21, %v430_v20  ;;  %v416_v28 = vld [vmem:[%s942_s8 + $0x60] sm:$0xff]  ;;  %v417_v29 = vld [vmem:[%s942_s8 + $0x68] sm:$0xff]  ;;  %v438_v34 = vpack.c.bf16 %v409_v27, %v408_v26  ;;  %v410_v38 = vld [vmem:[%s942_s8 + $0x30] sm:$0xff] }
  0x15   : > { %v424_v30 = vld [vmem:[%s942_s8 + $0xa0] sm:$0xff]  ;;  %v425_v31 = vld [vmem:[%s942_s8 + $0xa8] sm:$0xff]  ;;  %v442_v35 = vpack.c.bf16 %v417_v29, %v416_v28  ;;  %v411_v39 = vld [vmem:[%s942_s8 + $0x38] sm:$0xff] }
  0x16   : > { %v432_v32 = vld [vmem:[%s942_s8 + $0xe0] sm:$0xff]  ;;  %v433_v33 = vld [vmem:[%s942_s8 + $0xe8] sm:$0xff]  ;;  %v446_v36 = vpack.c.bf16 %v425_v31, %v424_v30  ;;  %v418_v40 = vld [vmem:[%s942_s8 + $0x70] sm:$0xff]  ;;  %v439_v46 = vpack.c.bf16 %v411_v39, %v410_v38 }
  0x17   : > { %v450_v37 = vpack.c.bf16 %v433_v33, %v432_v32  ;;  %v419_v41 = vld [vmem:[%s942_s8 + $0x78] sm:$0xff]  ;;  %v426_v42 = vld [vmem:[%s942_s8 + $0xb0] sm:$0xff]  ;;  %v300_v51 = vld [vmem:[%s996_s11] sm:$0xff] }
  0x18   : > { %v427_v43 = vld [vmem:[%s942_s8 + $0xb8] sm:$0xff]  ;;  %v434_v44 = vld [vmem:[%s942_s8 + $0xf0] sm:$0xff]  ;;  %v443_v47 = vpack.c.bf16 %v419_v41, %v418_v40  ;;  %v308_v52 = vld [vmem:[%s996_s11 + $0x40] sm:$0xff]  ;;  %v336_v53 = vmul.f32 %v1001_v50, %v300_v51 }
  0x19   : > { %v435_v45 = vld [vmem:[%s942_s8 + $0xf8] sm:$0xff]  ;;  %v447_v48 = vpack.c.bf16 %v427_v43, %v426_v42  ;;  %v1014_v55 = vld [vmem:[%s1230_s5] ss:$0 sm:$0xff]  ;;  %v344_v56 = vmul.f32 %v1001_v50, %v308_v52  ;;  %v301_v2 = vld [vmem:[%s996_s11 + $0x8] sm:$0xff] }
  0x1a   : > { %v451_v49 = vpack.c.bf16 %v435_v45, %v434_v44  ;;  %v1020_v57 = vld [vmem:[%s1231_s6] ss:$0 sm:$0xff]  ;;  %v372_v59 = vadd.f32 %v1009_v54, %v336_v53  ;;  %v309_v4 = vld [vmem:[%s996_s11 + $0x48] sm:$0xff]  ;;  %v337_v9 = vmul.f32 %v1001_v50, %v301_v2  ;;  %v302_v29 = vld [vmem:[%s996_s11 + $0x10] sm:$0xff] }
  0x1b   : > { %v316_v62 = vld [vmem:[%s996_s11 + $0x80] sm:$0xff]  ;;  %v380_v63 = vadd.f32 %v1009_v54, %v344_v56  ;;  %v345_v11 = vmul.f32 %v1001_v50, %v309_v4  ;;  %v325_v28 = vld [vmem:[%s996_s11 + $0xc8] sm:$0xff]  ;;  %v310_v32 = vld [vmem:[%s996_s11 + $0x50] sm:$0xff]  ;;  %v338_v39 = vmul.f32 %v1001_v50, %v302_v29 }
  0x1c   : > { %v324_v1 = vld [vmem:[%s996_s11 + $0xc0] sm:$0xff]  ;;  %v352_v6 = vmul.f32 %v1001_v50, %v316_v62  ;;  %v373_v21 = vadd.f32 %v1009_v54, %v337_v9  ;;  %v361_v38 = vmul.f32 %v1001_v50, %v325_v28  ;;  %v346_v42 = vmul.f32 %v1001_v50, %v310_v32  ;;  %v311_v4 = vld [vmem:[%s996_s11 + $0x58] sm:$0xff] }
  0x1d   : > { %v360_v8 = vmul.f32 %v1001_v50, %v324_v1  ;;  %v381_v26 = vadd.f32 %v1009_v54, %v345_v11  ;;  %v374_v56 = vadd.f32 %v1009_v54, %v338_v39  ;;  %v303_v1 = vld [vmem:[%s996_s11 + $0x18] sm:$0xff] }
  0x1e   : > { %v388_v15 = vadd.f32 %v1009_v54, %v352_v6  ;;  %v397_v52 = vadd.f32 %v1009_v54, %v361_v38  ;;  %v382_v62 = vadd.f32 %v1009_v54, %v346_v42  ;;  %v339_v11 = vmul.f32 %v1001_v50, %v303_v1  ;;  %v327_v29 = vld [vmem:[%s996_s11 + $0xd8] sm:$0xff] }
  0x1f   : > { %v396_v19 = vadd.f32 %v1009_v54, %v360_v8 }
  0x21   : > { %842 = vmatmul.msk.bf16.gmra.mxu0 %vm453_vm1, %v437_v22 }
  0x22   : > { %846 = vmatmul.msk.bf16.gmra.mxu1 %vm453_vm1, %v441_v23 }
  0x23   : > { %850 = vmatmul.msk.bf16.gmra.mxu2 %vm453_vm1, %v445_v24  ;;  %v317_v24 = vld [vmem:[%s996_s11 + $0x88] sm:$0xff] }
  0x24   : > { %854 = vmatmul.msk.bf16.gmra.mxu3 %vm453_vm1, %v449_v25 }
  0x31   : > { %843 = vmatmul.msk.bf16.gmra.mxu0 %vm453_vm1, %v438_v34 }
  0x32   : > { %847 = vmatmul.msk.bf16.gmra.mxu1 %vm453_vm1, %v442_v35  ;;  %v353_v35 = vmul.f32 %v1001_v50, %v317_v24 }
  0x33   : > { %851 = vmatmul.msk.bf16.gmra.mxu2 %vm453_vm1, %v446_v36 }
  0x34   : > { %855 = vmatmul.msk.bf16.gmra.mxu3 %vm453_vm1, %v450_v37 }
  0x41   : > { %844 = vmatmul.msk.bf16.gmra.mxu0 %vm453_vm1, %v439_v46 }
  0x42   : > { %848 = vmatmul.msk.bf16.gmra.mxu1 %vm453_vm1, %v443_v47  ;;  %v389_v47 = vadd.f32 %v1009_v54, %v353_v35 }
  0x43   : > { %852 = vmatmul.msk.bf16.gmra.mxu2 %vm453_vm1, %v447_v48 }
  0x44   : > { %856 = vmatmul.msk.bf16.gmra.mxu3 %vm453_vm1, %v451_v49 }
  0x8e   : > { %v515_v58 = vpop.f32.mrf.mxu0 }
  0x8f   : > { %v599_v60 = vmul.f32 %v1014_v55, %v515_v58  ;;  %v535_v61 = vpop.f32.mrf.mxu1 }
  0x90   : > { %v607_v0 = vmul.f32 %v1014_v55, %v535_v61 }
  0x91   : > { %v635_v3 = vadd.f32 %v1020_v57, %v599_v60  ;;  %v318_v60 = vld [vmem:[%s996_s11 + $0x90] sm:$0xff] }
  0x92   : > { %v643_v5 = vadd.f32 %v1020_v57, %v607_v0  ;;  %v326_v0 = vld [vmem:[%s996_s11 + $0xd0] sm:$0xff] }
  0x93   : > { %v667_v7 = vadd.f32 %v635_v3, %v372_v59 }
  0x94   : > { %v675_v10 = vadd.f32 %v643_v5, %v380_v63 }
  0x95   : > { %v699_v12 = vmax.f32 %v667_v7, 0.0  ;;  %v354_v7 = vmul.f32 %v1001_v50, %v318_v60 }
  0x96   : > { %v555_v13 = vpop.f32.mrf.mxu2  ;;  %v707_v14 = vmax.f32 %v675_v10, 0.0  ;;  %v517_v18 = vpop.f32.mrf.mxu0  ;;  %v362_v10 = vmul.f32 %v1001_v50, %v326_v0 }
  0x97   : > { %v615_v16 = vmul.f32 %v1014_v55, %v555_v13  ;;  %v575_v17 = vpop.f32.mrf.mxu3  ;;  %731 = vst [vmem:[%s1039_s22] sm:$0xff] %v699_v12  ;;  %v600_v22 = vmul.f32 %v1014_v55, %v517_v18  ;;  %v537_v23 = vpop.f32.mrf.mxu1 }
  0x98   : > { %v623_v20 = vmul.f32 %v1014_v55, %v575_v17  ;;  %739 = vst [vmem:[%s1039_s22 + $0x40] sm:$0xff] %v707_v14  ;;  %v608_v27 = vmul.f32 %v1014_v55, %v537_v23  ;;  %v347_v14 = vmul.f32 %v1001_v50, %v311_v4  ;;  %v319_v23 = vld [vmem:[%s996_s11 + $0x98] sm:$0xff]  ;;  %v398_v24 = vadd.f32 %v1009_v54, %v362_v10 }
  0x99   : > { %v651_v25 = vadd.f32 %v1020_v57, %v615_v16  ;;  %v636_v31 = vadd.f32 %v1020_v57, %v600_v22 }
  0x9a   : > { %v659_v30 = vadd.f32 %v1020_v57, %v623_v20  ;;  %v644_v34 = vadd.f32 %v1020_v57, %v608_v27  ;;  %v383_v32 = vadd.f32 %v1009_v54, %v347_v14 }
  0x9b   : > { %v683_v33 = vadd.f32 %v651_v25, %v388_v15  ;;  %v668_v37 = vadd.f32 %v636_v31, %v373_v21 }
  0x9c   : > { %v691_v36 = vadd.f32 %v659_v30, %v396_v19  ;;  %v676_v41 = vadd.f32 %v644_v34, %v381_v26  ;;  %v390_v19 = vadd.f32 %v1009_v54, %v354_v7  ;;  %v375_v26 = vadd.f32 %v1009_v54, %v339_v11  ;;  %v304_v30 = vld [vmem:[%s996_s11 + $0x20] sm:$0xff] }
  0x9d   : > { %v715_v40 = vmax.f32 %v683_v33, 0.0  ;;  %v700_v44 = vmax.f32 %v668_v37, 0.0  ;;  %v312_v37 = vld [vmem:[%s996_s11 + $0x60] sm:$0xff] }
  0x9e   : > { %v723_v43 = vmax.f32 %v691_v36, 0.0  ;;  %v557_v45 = vpop.f32.mrf.mxu2  ;;  %v708_v46 = vmax.f32 %v676_v41, 0.0  ;;  %v520_v51 = vpop.f32.mrf.mxu0  ;;  %v355_v36 = vmul.f32 %v1001_v50, %v319_v23  ;;  %v340_v41 = vmul.f32 %v1001_v50, %v304_v30 }
  0x9f   : > { %747 = vst [vmem:[%s1039_s22 + $0x80] sm:$0xff] %v715_v40  ;;  %v616_v48 = vmul.f32 %v1014_v55, %v557_v45  ;;  %v577_v49 = vpop.f32.mrf.mxu3  ;;  %v601_v58 = vmul.f32 %v1014_v55, %v520_v51  ;;  %v540_v59 = vpop.f32.mrf.mxu1  ;;  %v363_v40 = vmul.f32 %v1001_v50, %v327_v29 }
  0xa0   : > { %755 = vst [vmem:[%s1039_s22 + $0xc0] sm:$0xff] %v723_v43  ;;  %v624_v53 = vmul.f32 %v1014_v55, %v577_v49  ;;  %v609_v63 = vmul.f32 %v1014_v55, %v540_v59  ;;  %v391_v49 = vadd.f32 %v1009_v54, %v355_v36  ;;  %v376_v59 = vadd.f32 %v1009_v54, %v340_v41 }
  0xa1   : > { %732 = vst [vmem:[%s1039_s22 + $0x8] sm:$0xff] %v700_v44  ;;  %v652_v61 = vadd.f32 %v1020_v57, %v616_v48  ;;  %v637_v3 = vadd.f32 %v1020_v57, %v601_v58 }
  0xa2   : > { %740 = vst [vmem:[%s1039_s22 + $0x48] sm:$0xff] %v708_v46  ;;  %v660_v2 = vadd.f32 %v1020_v57, %v624_v53  ;;  %v645_v6 = vadd.f32 %v1020_v57, %v609_v63  ;;  %v348_v46 = vmul.f32 %v1001_v50, %v312_v37 }
  0xa3   : > { %v684_v5 = vadd.f32 %v652_v61, %v389_v47  ;;  %v669_v9 = vadd.f32 %v637_v3, %v374_v56  ;;  %v399_v56 = vadd.f32 %v1009_v54, %v363_v40  ;;  %v323_v61 = vld [vmem:[%s996_s11 + $0xb8] sm:$0xff] }
  0xa4   : > { %v692_v8 = vadd.f32 %v660_v2, %v397_v52  ;;  %v677_v13 = vadd.f32 %v645_v6, %v382_v62  ;;  %v331_v62 = vld [vmem:[%s996_s11 + $0xf8] sm:$0xff]  ;;  %v320_v2 = vld [vmem:[%s996_s11 + $0xa0] sm:$0xff]  ;;  %v359_v3 = vmul.f32 %v1001_v50, %v323_v61  ;;  %v384_v6 = vadd.f32 %v1009_v54, %v348_v46  ;;  %v314_v46 = vld [vmem:[%s996_s11 + $0x70] sm:$0xff] }
  0xa5   : > { %v716_v12 = vmax.f32 %v684_v5, 0.0  ;;  %v701_v16 = vmax.f32 %v669_v9, 0.0  ;;  %v367_v4 = vmul.f32 %v1001_v50, %v331_v62  ;;  %v305_v9 = vld [vmem:[%s996_s11 + $0x28] sm:$0xff] }
  0xa6   : > { %v724_v15 = vmax.f32 %v692_v8, 0.0  ;;  %v560_v17 = vpop.f32.mrf.mxu2  ;;  %v709_v18 = vmax.f32 %v677_v13, 0.0  ;;  %v522_v22 = vpop.f32.mrf.mxu0  ;;  %v328_v8 = vld [vmem:[%s996_s11 + $0xe0] sm:$0xff]  ;;  %v1136_v13 = vadd.f32 %v1009_v54, %v359_v3 }
  0xa7   : > { %748 = vst [vmem:[%s1039_s22 + $0x88] sm:$0xff] %v716_v12  ;;  %v617_v20 = vmul.f32 %v1014_v55, %v560_v17  ;;  %v580_v21 = vpop.f32.mrf.mxu3  ;;  %v602_v27 = vmul.f32 %v1014_v55, %v522_v22  ;;  %v542_v28 = vpop.f32.mrf.mxu1  ;;  %v313_v12 = vld [vmem:[%s996_s11 + $0x68] sm:$0xff]  ;;  %v1139_v14 = vadd.f32 %v1009_v54, %v367_v4  ;;  %v356_v17 = vmul.f32 %v1001_v50, %v320_v2 }
  0xa8   : > { %756 = vst [vmem:[%s1039_s22 + $0xc8] sm:$0xff] %v724_v15  ;;  %v625_v25 = vmul.f32 %v1014_v55, %v580_v21  ;;  %v610_v33 = vmul.f32 %v1014_v55, %v542_v28  ;;  %v341_v21 = vmul.f32 %v1001_v50, %v305_v9 }
  0xa9   : > { %733 = vst [vmem:[%s1039_s22 + $0x10] sm:$0xff] %v701_v16  ;;  %v653_v31 = vadd.f32 %v1020_v57, %v617_v20  ;;  %v638_v35 = vadd.f32 %v1020_v57, %v602_v27  ;;  %v364_v20 = vmul.f32 %v1001_v50, %v328_v8  ;;  %v392_v29 = vadd.f32 %v1009_v54, %v356_v17  ;;  %v307_v17 = vld [vmem:[%s996_s11 + $0x38] sm:$0xff] }
  0xaa   : > { %741 = vst [vmem:[%s1039_s22 + $0x50] sm:$0xff] %v709_v18  ;;  %v661_v34 = vadd.f32 %v1020_v57, %v625_v25  ;;  %v646_v39 = vadd.f32 %v1020_v57, %v610_v33 }
  0xab   : > { %v685_v38 = vadd.f32 %v653_v31, %v390_v19  ;;  %v670_v43 = vadd.f32 %v638_v35, %v375_v26  ;;  %v400_v33 = vadd.f32 %v1009_v54, %v364_v20  ;;  %v377_v35 = vadd.f32 %v1009_v54, %v341_v21  ;;  %v315_v20 = vld [vmem:[%s996_s11 + $0x78] sm:$0xff] }
  0xac   : > { %v693_v42 = vadd.f32 %v661_v34, %v398_v24  ;;  %v678_v45 = vadd.f32 %v646_v39, %v383_v32  ;;  %v349_v24 = vmul.f32 %v1001_v50, %v313_v12 }
  0xad   : > { %v717_v44 = vmax.f32 %v685_v38, 0.0  ;;  %v702_v48 = vmax.f32 %v670_v43, 0.0  ;;  %v321_v38 = vld [vmem:[%s996_s11 + $0xa8] sm:$0xff]  ;;  %v306_v43 = vld [vmem:[%s996_s11 + $0x30] sm:$0xff] }
  0xae   : > { %v725_v47 = vmax.f32 %v693_v42, 0.0  ;;  %v562_v51 = vpop.f32.mrf.mxu2  ;;  %v710_v52 = vmax.f32 %v678_v45, 0.0  ;;  %v525_v60 = vpop.f32.mrf.mxu0  ;;  %v385_v40 = vadd.f32 %v1009_v54, %v349_v24  ;;  %v329_v42 = vld [vmem:[%s996_s11 + $0xe8] sm:$0xff] }
  0xaf   : > { %749 = vst [vmem:[%s1039_s22 + $0x90] sm:$0xff] %v717_v44  ;;  %v618_v53 = vmul.f32 %v1014_v55, %v562_v51  ;;  %v582_v58 = vpop.f32.mrf.mxu3  ;;  %v603_v0 = vmul.f32 %v1014_v55, %v525_v60  ;;  %v545_v1 = vpop.f32.mrf.mxu1  ;;  %v350_v60 = vmul.f32 %v1001_v50, %v314_v46 }
  0xb0   : > { %757 = vst [vmem:[%s1039_s22 + $0xd0] sm:$0xff] %v725_v47  ;;  %v626_v63 = vmul.f32 %v1014_v55, %v582_v58  ;;  %v611_v7 = vmul.f32 %v1014_v55, %v545_v1 }
  0xb1   : > { %734 = vst [vmem:[%s1039_s22 + $0x18] sm:$0xff] %v702_v48  ;;  %v654_v5 = vadd.f32 %v1020_v57, %v618_v53  ;;  %v639_v11 = vadd.f32 %v1020_v57, %v603_v0  ;;  %v365_v53 = vmul.f32 %v1001_v50, %v329_v42  ;;  %v386_v12 = vadd.f32 %v1009_v54, %v350_v60 }
  0xb2   : > { %742 = vst [vmem:[%s1039_s22 + $0x58] sm:$0xff] %v710_v52  ;;  %v662_v10 = vadd.f32 %v1020_v57, %v626_v63  ;;  %v647_v16 = vadd.f32 %v1020_v57, %v611_v7 }
  0xb3   : > { %v686_v15 = vadd.f32 %v654_v5, %v391_v49  ;;  %v671_v19 = vadd.f32 %v639_v11, %v376_v59  ;;  %v357_v49 = vmul.f32 %v1001_v50, %v321_v38  ;;  %v401_v5 = vadd.f32 %v1009_v54, %v365_v53 }
  0xb4   : > { %v694_v18 = vadd.f32 %v662_v10, %v399_v56  ;;  %v679_v23 = vadd.f32 %v647_v16, %v384_v6  ;;  %v342_v56 = vmul.f32 %v1001_v50, %v306_v43  ;;  %v322_v10 = vld [vmem:[%s996_s11 + $0xb0] sm:$0xff] }
  0xb5   : > { %v718_v22 = vmax.f32 %v686_v15, 0.0  ;;  %v703_v26 = vmax.f32 %v671_v19, 0.0  ;;  %v393_v1 = vadd.f32 %v1009_v54, %v357_v49  ;;  %v330_v16 = vld [vmem:[%s996_s11 + $0xf0] sm:$0xff] }
  0xb6   : > { %v726_v25 = vmax.f32 %v694_v18, 0.0  ;;  %v565_v27 = vpop.f32.mrf.mxu2  ;;  %v711_v28 = vmax.f32 %v679_v23, 0.0  ;;  %v527_v32 = vpop.f32.mrf.mxu0  ;;  %v378_v7 = vadd.f32 %v1009_v54, %v342_v56  ;;  %v358_v23 = vmul.f32 %v1001_v50, %v322_v10 }
  0xb7   : > { %750 = vst [vmem:[%s1039_s22 + $0x98] sm:$0xff] %v718_v22  ;;  %v619_v30 = vmul.f32 %v1014_v55, %v565_v27  ;;  %v585_v31 = vpop.f32.mrf.mxu3  ;;  %v604_v36 = vmul.f32 %v1014_v55, %v527_v32  ;;  %v547_v37 = vpop.f32.mrf.mxu1  ;;  %v343_v27 = vmul.f32 %v1001_v50, %v307_v17 }
  0xb8   : > { %758 = vst [vmem:[%s1039_s22 + $0xd8] sm:$0xff] %v726_v25  ;;  %v627_v34 = vmul.f32 %v1014_v55, %v585_v31  ;;  %v612_v41 = vmul.f32 %v1014_v55, %v547_v37 }
  0xb9   : > { %735 = vst [vmem:[%s1039_s22 + $0x20] sm:$0xff] %v703_v26  ;;  %v655_v39 = vadd.f32 %v1020_v57, %v619_v30  ;;  %v640_v45 = vadd.f32 %v1020_v57, %v604_v36  ;;  %v366_v26 = vmul.f32 %v1001_v50, %v330_v16  ;;  %v351_v30 = vmul.f32 %v1001_v50, %v315_v20 }
  0xba   : > { %743 = vst [vmem:[%s1039_s22 + $0x60] sm:$0xff] %v711_v28  ;;  %v663_v44 = vadd.f32 %v1020_v57, %v627_v34  ;;  %v648_v48 = vadd.f32 %v1020_v57, %v612_v41  ;;  %v379_v50 = vadd.f32 %v1009_v54, %v343_v27 }
  0xbb   : > { %v687_v47 = vadd.f32 %v655_v39, %v392_v29  ;;  %v672_v52 = vadd.f32 %v640_v45, %v377_v35  ;;  %v394_v35 = vadd.f32 %v1009_v54, %v358_v23  ;;  %v402_v39 = vadd.f32 %v1009_v54, %v366_v26 }
  0xbc   : > { %v695_v51 = vadd.f32 %v663_v44, %v400_v33  ;;  %v680_v59 = vadd.f32 %v648_v48, %v385_v40  ;;  %v387_v44 = vadd.f32 %v1009_v54, %v351_v30 }
  0xbd   : > { %v719_v58 = vmax.f32 %v687_v47, 0.0  ;;  %v704_v62 = vmax.f32 %v672_v52, 0.0 }
  0xbe   : > { %v727_v61 = vmax.f32 %v695_v51, 0.0  ;;  %v567_v63 = vpop.f32.mrf.mxu2  ;;  %v712_v0 = vmax.f32 %v680_v59, 0.0  ;;  %v530_v4 = vpop.f32.mrf.mxu0 }
  0xbf   : > { %751 = vst [vmem:[%s1039_s22 + $0xa0] sm:$0xff] %v719_v58  ;;  %v620_v2 = vmul.f32 %v1014_v55, %v567_v63  ;;  %v587_v3 = vpop.f32.mrf.mxu3  ;;  %v605_v8 = vmul.f32 %v1014_v55, %v530_v4  ;;  %v550_v9 = vpop.f32.mrf.mxu1 }
  0xc0   : > { %759 = vst [vmem:[%s1039_s22 + $0xe0] sm:$0xff] %v727_v61  ;;  %v628_v6 = vmul.f32 %v1014_v55, %v587_v3  ;;  %v613_v15 = vmul.f32 %v1014_v55, %v550_v9 }
  0xc1   : > { %736 = vst [vmem:[%s1039_s22 + $0x28] sm:$0xff] %v704_v62  ;;  %v656_v11 = vadd.f32 %v1020_v57, %v620_v2  ;;  %v641_v19 = vadd.f32 %v1020_v57, %v605_v8 }
  0xc2   : > { %744 = vst [vmem:[%s1039_s22 + $0x68] sm:$0xff] %v712_v0  ;;  %v664_v18 = vadd.f32 %v1020_v57, %v628_v6  ;;  %v649_v22 = vadd.f32 %v1020_v57, %v613_v15 }
  0xc3   : > { %v688_v21 = vadd.f32 %v656_v11, %v393_v1  ;;  %v673_v25 = vadd.f32 %v641_v19, %v378_v7 }
  0xc4   : > { %v696_v24 = vadd.f32 %v664_v18, %v401_v5  ;;  %v681_v29 = vadd.f32 %v649_v22, %v386_v12 }
  0xc5   : > { %v720_v28 = vmax.f32 %v688_v21, 0.0  ;;  %v705_v32 = vmax.f32 %v673_v25, 0.0 }
  0xc6   : > { %v728_v31 = vmax.f32 %v696_v24, 0.0  ;;  %v570_v33 = vpop.f32.mrf.mxu2  ;;  %v713_v34 = vmax.f32 %v681_v29, 0.0  ;;  %v532_v38 = vpop.f32.mrf.mxu0 }
  0xc7   : > { %752 = vst [vmem:[%s1039_s22 + $0xa8] sm:$0xff] %v720_v28  ;;  %v621_v36 = vmul.f32 %v1014_v55, %v570_v33  ;;  %v590_v37 = vpop.f32.mrf.mxu3  ;;  %v606_v41 = vmul.f32 %v1014_v55, %v532_v38  ;;  %v552_v42 = vpop.f32.mrf.mxu1 }
  0xc8   : > { %760 = vst [vmem:[%s1039_s22 + $0xe8] sm:$0xff] %v728_v31  ;;  %v629_v40 = vmul.f32 %v1014_v55, %v590_v37  ;;  %v614_v45 = vmul.f32 %v1014_v55, %v552_v42 }
  0xc9   : > { %737 = vst [vmem:[%s1039_s22 + $0x30] sm:$0xff] %v705_v32  ;;  %v657_v43 = vadd.f32 %v1020_v57, %v621_v36  ;;  %v642_v47 = vadd.f32 %v1020_v57, %v606_v41 }
  0xca   : > { %745 = vst [vmem:[%s1039_s22 + $0x70] sm:$0xff] %v713_v34  ;;  %v665_v46 = vadd.f32 %v1020_v57, %v629_v40  ;;  %v650_v49 = vadd.f32 %v1020_v57, %v614_v45 }
  0xcb   : > { %v689_v48 = vadd.f32 %v657_v43, %v394_v35  ;;  %v674_v52 = vadd.f32 %v642_v47, %v379_v50 }
  0xcc   : > { %v697_v51 = vadd.f32 %v665_v46, %v402_v39  ;;  %v682_v56 = vadd.f32 %v650_v49, %v387_v44 }
  0xcd   : > { %v721_v53 = vmax.f32 %v689_v48, 0.0  ;;  %v706_v59 = vmax.f32 %v674_v52, 0.0 }
  0xce   : > { %v729_v58 = vmax.f32 %v697_v51, 0.0  ;;  %v572_v54 = vpop.f32.mrf.mxu2  ;;  %v714_v60 = vmax.f32 %v682_v56, 0.0 }
  0xcf   : > { %753 = vst [vmem:[%s1039_s22 + $0xb0] sm:$0xff] %v721_v53  ;;  %v622_v61 = vmul.f32 %v1014_v55, %v572_v54  ;;  %v592_v62 = vpop.f32.mrf.mxu3 }
  0xd0   : > { %761 = vst [vmem:[%s1039_s22 + $0xf0] sm:$0xff] %v729_v58  ;;  %v630_v63 = vmul.f32 %v1014_v55, %v592_v62 }
  0xd1   : > { %738 = vst [vmem:[%s1039_s22 + $0x38] sm:$0xff] %v706_v59  ;;  %v658_v0 = vadd.f32 %v1020_v57, %v622_v61 }
  0xd2   : > { %746 = vst [vmem:[%s1039_s22 + $0x78] sm:$0xff] %v714_v60  ;;  %v666_v1 = vadd.f32 %v1020_v57, %v630_v63 }
  0xd3   : > { %v690_v2 = vadd.f32 %v658_v0, %v1136_v13 }
  0xd4   : > { %v698_v3 = vadd.f32 %v666_v1, %v1139_v14 }
  0xd5   : > { %v722_v4 = vmax.f32 %v690_v2, 0.0 }
  0xd6   : > { %v730_v5 = vmax.f32 %v698_v3, 0.0 }
  0xd7   : > { %754 = vst [vmem:[%s1039_s22 + $0xb8] sm:$0xff] %v722_v4 }
  0xd8   : > { %762 = vst [vmem:[%s1039_s22 + $0xf8] sm:$0xff] %v730_v5 }
  0xd9 PF: > { %s17_s24 = sadd.s32 1, %s883_s24  }
  0xda   : > { %p14_p4 = scmp.ge.s32.totalorder %s17_s24, 4  }
  0xdc   :  { %16 = sbr.rel (!%p14_p4) target bundleno = 1 (0x1), region = 81 }

// kernel: resblock_forward.3
= control target key start
LH: loop header
LB: loop body
LE: loop exit
PB: predicated region body
PF: predicated region fallthrough
CT: control target
= control target key end

     0   :  { %s2743_s12 = smov 0   ;;  %s3515_s0 = inlined_call_operand.vmem [shape: f32[2,18,18,4], index: 0, kind: input, shape index: {}]   ;;  %s3516_s1 = inlined_call_operand.vmem [shape: bf16[3,3,4,128], index: 1, kind: input, shape index: {}]   ;;  %s3517_s2 = inlined_call_operand.vmem [shape: f32[2,16,16,128], index: 2, kind: output, shape index: {0}]   ;;  %s3518_s3 = inlined_call_operand.vmem [shape: f32[2,2,128], index: 3, kind: output, shape index: {1}]  }
   0x1 LB: > { %s2347_s13 = sadd.s32 4294967295, %s2721_s12   ;;  %p2351_p0 = scmp.ge.s32.totalorder %s2721_s12, 1  ;;  %s2721_s12 = sphi %s2743_s12, %s14_s12  }
   0x2   : > { %p140_p1 = scmp.lt.s32.totalorder %s2721_s12, 3 }
   0x4   : > { %p141_p2 = pnand %p2351_p0, %p140_p1 }
   0x6   : > { %144 = sbr.rel (%p141_p2) target bundleno = 745 (0x2e9), region = 28 }
   0xb   : > { %v2356_v0 = vld [vmem:[%s3516_s1 + $0x2] sm:$0x3]  ;;  %vm331_vm0 = vcmask 1041408   ;;  %p168_p3 = scmp.lt.s32.totalorder %s2347_s13, 1  ;;  %v2389_v2 = vld [vmem:[%s3516_s1 + $0x4] sm:$0x3] }
   0xc   : > { %v333_v1 = vsel %vm331_vm0, %v2356_v0, 0  ;;  %v2438_v3 = vld [vmem:[%s3516_s1 + $0x6] sm:$0x3]  ;;  %v663_v4 = vsel %vm331_vm0, %v2389_v2, 0  ;;  %v231_v6 = vld [vmem:[%s3516_s1] sm:$0x3] }
   0xd   : > { %2703 = vmatpush.bf16.msra.mxu1 %v333_v1  ;;  %2704 = vmatpush.bf16.msra.mxu2 %v333_v1  ;;  %s3562_s13 = smov (!%p168_p3, %s2347_s13), 1  ;;  %v886_v5 = vsel %vm331_vm0, %v2438_v3, 0  ;;  %v473_v7 = vsel %vm331_vm0, %v231_v6, 0  ;;  %v2487_v8 = vld [vmem:[%s3516_s1 + $0x8] sm:$0x3]  ;;  %vm282_vm1 = vcmask 31744  }
   0xe   : > { %2705 = vmatpush.bf16.msra.mxu3 %v333_v1  ;;  %342 = vmatpush.bf16.msra.mxu0 %v333_v1  ;;  %s2706_s24 = smul.u32 432, %s3562_s13  ;;  %v1108_v9 = vsel %vm331_vm0, %v2487_v8, 0  ;;  %v2585_v46 = vld [vmem:[%s3516_s1 + $0xc] sm:$0x3]  ;;  %v2634_v48 = vld [vmem:[%s3516_s1 + $0xe] sm:$0x3] }
   0xf   : > { %v1553_v47 = vsel %vm331_vm0, %v2585_v46, 0  ;;  %v2536_v49 = vld [vmem:[%s3516_s1 + $0xa] sm:$0x3]  ;;  %v1775_v50 = vsel %vm331_vm0, %v2634_v48, 0  ;;  %v2683_v52 = vld [vmem:[%s3516_s1 + $0x10] sm:$0x3] }
  0x10   : > { %s2777_s27 = scalar_lea.vmem %s3515_s0, %s2706_s24  ;;  %v1330_v51 = vsel %vm331_vm0, %v2536_v49, 0  ;;  %v1997_v53 = vsel %vm331_vm0, %v2683_v52, 0  ;;  %s2702_s9 = sshll.u32 %s3562_s13, 8  ;;  %vm2258_vm2 = vcmask 1040384  }
  0x11   : > { %672 = vmatpush.bf16.msrb.mxu2 %v663_v4  ;;  %482 = vmatpush.bf16.msrb.mxu1 %v473_v7  ;;  %v240_v10 = vld [vmem:[%s2777_s27 + $0x61] sm:$0xff]  ;;  %v241_v11 = vld [vmem:[%s2777_s27 + $0x69] sm:$0xff]  ;;  %v242_v22 = vld [vmem:[%s2777_s27 + $0x79] sm:$0xff]  ;;  %s3376_s14 = scalar_lea.vmem %s3517_s2, %s2702_s9  ;;  %s2355_s15 = sshll.u32 %s3562_s13, 1 }
  0x12   : > { %895 = vmatpush.bf16.msrb.mxu3 %v886_v5  ;;  %1117 = vmatpush.bf16.msrb.mxu0 %v1108_v9  ;;  %v248_v12 = vld [vmem:[%s2777_s27 + $0xc1] sm:$0xff]  ;;  %v2782_v13 = vpack.c.bf16 %v241_v11, %v240_v10  ;;  %v249_v14 = vld [vmem:[%s2777_s27 + $0xc9] sm:$0xff]  ;;  %v250_v24 = vld [vmem:[%s2777_s27 + $0xd9] sm:$0xff]  ;;  %s181_s18 = scalar_lea.vmem %s3518_s3, %s2355_s15 }
  0x13   : > { %v256_v15 = vld [vmem:[%s2777_s27 + $0x121] sm:$0xff]  ;;  %v257_v16 = vld [vmem:[%s2777_s27 + $0x129] sm:$0xff]  ;;  %v2787_v17 = vpack.c.bf16 %v249_v14, %v248_v12  ;;  %v258_v26 = vld [vmem:[%s2777_s27 + $0x139] sm:$0xff] }
  0x14   : > { %v2789_v18 = vpack.c.bf16 %v257_v16, %v256_v15  ;;  %v232_v19 = vld [vmem:[%s2777_s27 + $0x1] sm:$0xff]  ;;  %v233_v20 = vld [vmem:[%s2777_s27 + $0x9] sm:$0xff]  ;;  %2361 = vmatmul.msk.bf16.vlgmr.msra.gmra.mxu1 %vm282_vm1, %v2782_v13  ;;  %v234_v28 = vld [vmem:[%s2777_s27 + $0x19] sm:$0xff] }
  0x15   : > { %v264_v21 = vpack.c.bf16 %v233_v20, %v232_v19  ;;  %2365 = vmatmul.msk.bf16.vlgmr.msra.gmra.mxu2 %vm282_vm1, %v2787_v17  ;;  %v243_v23 = vld [vmem:[%s2777_s27 + $0x81] sm:$0xff]  ;;  %v244_v34 = vld [vmem:[%s2777_s27 + $0x91] sm:$0xff]  ;;  %v245_v35 = vld [vmem:[%s2777_s27 + $0x99] sm:$0xff]  ;;  %1339 = vmatpush.bf16.msra.mxu1 %v1330_v51 }
  0x16   : > { %2369 = vmatmul.msk.bf16.vlgmr.msra.gmra.mxu3 %vm282_vm1, %v2789_v18  ;;  %v251_v25 = vld [vmem:[%s2777_s27 + $0xe1] sm:$0xff]  ;;  %v2808_v30 = vpack.c.bf16 %v243_v23, %v242_v22  ;;  %v252_v36 = vld [vmem:[%s2777_s27 + $0xf1] sm:$0xff]  ;;  %v253_v37 = vld [vmem:[%s2777_s27 + $0xf9] sm:$0xff]  ;;  %v2829_v42 = vpack.c.bf16 %v245_v35, %v244_v34  ;;  %1562 = vmatpush.bf16.msra.mxu2 %v1553_v47 }
  0x17   : > { %2357 = vmatmul.msk.bf16.vlgmr.msra.gmra.mxu0 %vm282_vm1, %v264_v21  ;;  %v259_v27 = vld [vmem:[%s2777_s27 + $0x141] sm:$0xff]  ;;  %v2810_v31 = vpack.c.bf16 %v251_v25, %v250_v24  ;;  %v260_v38 = vld [vmem:[%s2777_s27 + $0x151] sm:$0xff]  ;;  %v261_v39 = vld [vmem:[%s2777_s27 + $0x159] sm:$0xff]  ;;  %v2831_v43 = vpack.c.bf16 %v253_v37, %v252_v36  ;;  %1784 = vmatpush.bf16.msra.mxu3 %v1775_v50 }
  0x18   : > { %v235_v29 = vld [vmem:[%s2777_s27 + $0x21] sm:$0xff]  ;;  %v2812_v32 = vpack.c.bf16 %v259_v27, %v258_v26  ;;  %v236_v40 = vld [vmem:[%s2777_s27 + $0x31] sm:$0xff]  ;;  %v237_v41 = vld [vmem:[%s2777_s27 + $0x39] sm:$0xff]  ;;  %v2833_v44 = vpack.c.bf16 %v261_v39, %v260_v38  ;;  %2006 = vmatpush.bf16.msra.mxu0 %v1997_v53 }
  0x19   : > { %v265_v33 = vpack.c.bf16 %v235_v29, %v234_v28  ;;  %v2835_v45 = vpack.c.bf16 %v237_v41, %v236_v40  ;;  %v246_v54 = vld [vmem:[%s2777_s27 + $0xa9] sm:$0xff]  ;;  %v247_v55 = vld [vmem:[%s2777_s27 + $0xb1] sm:$0xff]  ;;  %v183_v2 = vld [vmem:[%s2777_s27] sm:$0xff] }
  0x1a   : > { %v254_v56 = vld [vmem:[%s2777_s27 + $0x109] sm:$0xff]  ;;  %v255_v57 = vld [vmem:[%s2777_s27 + $0x111] sm:$0xff]  ;;  %v2869_v62 = vpack.c.bf16 %v247_v55, %v246_v54  ;;  %v2407_v7 = vld [vmem:[%s2777_s27 + $0x20] sm:$0xff] }
  0x1b   : > { %v262_v58 = vld [vmem:[%s2777_s27 + $0x169] sm:$0xff]  ;;  %v263_v59 = vld [vmem:[%s2777_s27 + $0x171] sm:$0xff]  ;;  %v2871_v63 = vpack.c.bf16 %v255_v57, %v254_v56  ;;  %v566_v11 = vld [vmem:[%s2777_s27 + $0x1a] sm:$0xff] }
  0x1c   : > { %v238_v60 = vld [vmem:[%s2777_s27 + $0x49] sm:$0xff]  ;;  %v239_v61 = vld [vmem:[%s2777_s27 + $0x51] sm:$0xff]  ;;  %v2873_v0 = vpack.c.bf16 %v263_v59, %v262_v58  ;;  %v569_v21 = vld [vmem:[%s2777_s27 + $0x3a] sm:$0xff] }
  0x1d   : > { %v2875_v1 = vpack.c.bf16 %v239_v61, %v238_v60  ;;  %v184_v3 = vld [vmem:[%s2777_s27 + $0x8] sm:$0xff]  ;;  %v2406_v6 = vld [vmem:[%s2777_s27 + $0x18] sm:$0xff]  ;;  %v2408_v14 = vld [vmem:[%s2777_s27 + $0x30] sm:$0xff] }
  0x1e   : > { %v564_v4 = vld [vmem:[%s2777_s27 + $0x2] sm:$0xff]  ;;  %v565_v5 = vld [vmem:[%s2777_s27 + $0xa] sm:$0xff]  ;;  %v215_v8 = vpack.c.bf16 %v184_v3, %v183_v2  ;;  %v819_v10 = vpack.c.bf16 %v2407_v7, %v2406_v6  ;;  %v2409_v15 = vld [vmem:[%s2777_s27 + $0x38] sm:$0xff] }
  0x1f   : > { %v596_v9 = vpack.c.bf16 %v565_v5, %v564_v4  ;;  %v567_v12 = vld [vmem:[%s2777_s27 + $0x22] sm:$0xff]  ;;  %v2901_v19 = vpack.c.bf16 %v2409_v15, %v2408_v14  ;;  %v568_v20 = vld [vmem:[%s2777_s27 + $0x32] sm:$0xff]  ;;  %v570_v26 = vld [vmem:[%s2777_s27 + $0x4a] sm:$0xff] }
  0x20   : > { %v2899_v16 = vpack.c.bf16 %v567_v12, %v566_v11  ;;  %v2410_v22 = vld [vmem:[%s2777_s27 + $0x48] sm:$0xff]  ;;  %v2411_v23 = vld [vmem:[%s2777_s27 + $0x50] sm:$0xff]  ;;  %v2914_v24 = vpack.c.bf16 %v569_v21, %v568_v20  ;;  %v2412_v28 = vld [vmem:[%s2777_s27 + $0x60] sm:$0xff] }
  0x21   : > { %v2916_v25 = vpack.c.bf16 %v2411_v23, %v2410_v22  ;;  %v571_v27 = vld [vmem:[%s2777_s27 + $0x52] sm:$0xff]  ;;  %v2413_v29 = vld [vmem:[%s2777_s27 + $0x68] sm:$0xff]  ;;  %v2415_v38 = vld [vmem:[%s2777_s27 + $0x80] sm:$0xff] }
  0x22   : > { %v2932_v34 = vpack.c.bf16 %v2413_v29, %v2412_v28  ;;  %v572_v35 = vld [vmem:[%s2777_s27 + $0x62] sm:$0xff]  ;;  %v573_v36 = vld [vmem:[%s2777_s27 + $0x6a] sm:$0xff]  ;;  %v2414_v37 = vld [vmem:[%s2777_s27 + $0x78] sm:$0xff] }
  0x23   : > { %v2948_v40 = vpack.c.bf16 %v573_v36, %v572_v35  ;;  %v2950_v41 = vpack.c.bf16 %v2415_v38, %v2414_v37  ;;  %v574_v50 = vld [vmem:[%s2777_s27 + $0x7a] sm:$0xff]  ;;  %v575_v51 = vld [vmem:[%s2777_s27 + $0x82] sm:$0xff]  ;;  %v2416_v52 = vld [vmem:[%s2777_s27 + $0x90] sm:$0xff] }
  0x24   : > { %2362 = vmatmul.msk.bf16.gmra.mxu1 %vm282_vm1, %v2808_v30  ;;  %v2417_v53 = vld [vmem:[%s2777_s27 + $0x98] sm:$0xff]  ;;  %v2980_v56 = vpack.c.bf16 %v575_v51, %v574_v50  ;;  %v2418_v5 = vld [vmem:[%s2777_s27 + $0xa8] sm:$0xff]  ;;  %v2419_v6 = vld [vmem:[%s2777_s27 + $0xb0] sm:$0xff] }
  0x25   : > { %2366 = vmatmul.msk.bf16.gmra.mxu2 %vm282_vm1, %v2810_v31  ;;  %v2982_v57 = vpack.c.bf16 %v2417_v53, %v2416_v52  ;;  %v576_v3 = vld [vmem:[%s2777_s27 + $0x92] sm:$0xff]  ;;  %v577_v4 = vld [vmem:[%s2777_s27 + $0x9a] sm:$0xff]  ;;  %v578_v21 = vld [vmem:[%s2777_s27 + $0xaa] sm:$0xff] }
  0x26   : > { %2370 = vmatmul.msk.bf16.gmra.mxu3 %vm282_vm1, %v2812_v32  ;;  %v579_v22 = vld [vmem:[%s2777_s27 + $0xb2] sm:$0xff]  ;;  %v2420_v23 = vld [vmem:[%s2777_s27 + $0xc0] sm:$0xff]  ;;  %v581_v53 = vld [vmem:[%s2777_s27 + $0xca] sm:$0xff] }
  0x27   : > { %2358 = vmatmul.msk.bf16.gmra.mxu0 %vm282_vm1, %v265_v33  ;;  %v3044_v29 = vpack.c.bf16 %v579_v22, %v578_v21  ;;  %v580_v52 = vld [vmem:[%s2777_s27 + $0xc2] sm:$0xff] }
  0x28   : > { %v3074_v22 = vpack.c.bf16 %v581_v53, %v580_v52 }
  0x29   : > { %3531 = vst [vmem:[#allocation8_spill] sm:$0xff] %v3044_v29 }
  0x2a   : > { %3535 = vst [vmem:[#allocation12_spill] sm:$0xff] %v3074_v22 }
  0x34   : > { %2363 = vmatmul.msk.bf16.gmra.mxu1 %vm282_vm1, %v2829_v42 }
  0x35   : > { %2367 = vmatmul.msk.bf16.gmra.mxu2 %vm282_vm1, %v2831_v43 }
  0x36   : > { %2371 = vmatmul.msk.bf16.gmra.mxu3 %vm282_vm1, %v2833_v44 }
  0x37   : > { %2359 = vmatmul.msk.bf16.gmra.mxu0 %vm282_vm1, %v2835_v45 }
  0x44   : > { %2364 = vmatmul.msk.bf16.gmra.mxu1 %vm282_vm1, %v2869_v62 }
  0x45   : > { %2368 = vmatmul.msk.bf16.gmra.mxu2 %vm282_vm1, %v2871_v63 }
  0x46   : > { %2372 = vmatmul.msk.bf16.gmra.mxu3 %vm282_vm1, %v2873_v0 }
  0x47   : > { %2360 = vmatmul.msk.bf16.gmra.mxu0 %vm282_vm1, %v2875_v1 }
  0x54   : > { %2373 = vmatmul.msk.bf16.vlgmr.msrb.gmra.mxu1 %vm282_vm1, %v215_v8 }
  0x55   : > { %2390 = vmatmul.msk.bf16.vlgmr.msrb.gmra.mxu2 %vm282_vm1, %v596_v9  ;;  %v3012_v9 = vpack.c.bf16 %v577_v4, %v576_v3  ;;  %v2422_v3 = vld [vmem:[%s2777_s27 + $0xd8] sm:$0xff]  ;;  %v2423_v4 = vld [vmem:[%s2777_s27 + $0xe0] sm:$0xff] }
  0x56   : > { %2439 = vmatmul.msk.bf16.vlgmr.msrb.gmra.mxu3 %vm282_vm1, %v819_v10 }
  0x57   : > { %2488 = vmatmul.msk.bf16.vlgmr.msrb.gmra.mxu0 %vm282_vm1, %v265_v33  ;;  %v2930_v33 = vpack.c.bf16 %v571_v27, %v570_v26  ;;  %v2421_v26 = vld [vmem:[%s2777_s27 + $0xc8] sm:$0xff] }
  0x58   : > { %v3046_v35 = vpack.c.bf16 %v2421_v26, %v2420_v23 }
  0x5a   : > { %3532 = vst [vmem:[#allocation9_spill] sm:$0xff] %v3046_v35 }
  0x64   : > { %2374 = vmatmul.msk.bf16.gmra.mxu1 %vm282_vm1, %v819_v10  ;;  %v3014_v10 = vpack.c.bf16 %v2419_v6, %v2418_v5 }
  0x65   : > { %2391 = vmatmul.msk.bf16.gmra.mxu2 %vm282_vm1, %v2899_v16 }
  0x66   : > { %2440 = vmatmul.msk.bf16.gmra.mxu3 %vm282_vm1, %v2901_v19  ;;  %3528 = vst [vmem:[#allocation5_spill] sm:$0xff] %v3014_v10 }
  0x67   : > { %2489 = vmatmul.msk.bf16.gmra.mxu0 %vm282_vm1, %v2835_v45 }
  0x74   : > { %2375 = vmatmul.msk.bf16.gmra.mxu1 %vm282_vm1, %v2901_v19 }
  0x75   : > { %2392 = vmatmul.msk.bf16.gmra.mxu2 %vm282_vm1, %v2914_v24 }
  0x76   : > { %2441 = vmatmul.msk.bf16.gmra.mxu3 %vm282_vm1, %v2916_v25 }
  0x77   : > { %2490 = vmatmul.msk.bf16.gmra.mxu0 %vm282_vm1, %v2875_v1 }
  0x84   : > { %2376 = vmatmul.msk.bf16.gmra.mxu1 %vm282_vm1, %v2916_v25 }
  0x85   : > { %2393 = vmatmul.msk.bf16.gmra.mxu2 %vm282_vm1, %v2930_v33 }
  0x86   : > { %2442 = vmatmul.msk.bf16.gmra.mxu3 %vm282_vm1, %v2932_v34 }
  0x87   : > { %2491 = vmatmul.msk.bf16.gmra.mxu0 %vm282_vm1, %v2782_v13 }
  0x91   : > { %v2946_v39 = vpop.f32.mrf.mxu1 }
  0x94   : > { %v2952_v46 = vpop.f32.mrf.mxu0  ;;  %2377 = vmatmul.msk.bf16.gmra.mxu1 %vm282_vm1, %v2932_v34 }
  0x95   : > { %2394 = vmatmul.msk.bf16.gmra.mxu2 %vm282_vm1, %v2948_v40 }
  0x96   : > { %2443 = vmatmul.msk.bf16.gmra.mxu3 %vm282_vm1, %v2950_v41 }
  0x97   : > { %2492 = vmatmul.msk.bf16.gmra.mxu0 %vm282_vm1, %v2808_v30 }
  0x98   : > { %v2962_v13 = vpop.f32.mrf.mxu2 }
  0x99   : > { %v2964_v47 = vpop.f32.mrf.mxu3  ;;  %v2966_v48 = vpop.f32.mrf.mxu1 }
  0x9c   : > { %v2968_v49 = vpop.f32.mrf.mxu0 }
  0xa0   : > { %v2974_v54 = vpop.f32.mrf.mxu2 }
  0xa1   : > { %v2976_v55 = vpop.f32.mrf.mxu3  ;;  %v2978_v30 = vpop.f32.mrf.mxu1 }
  0xa2   : > { %3525 = vst [vmem:[#allocation2_spill] sm:$0xff] %v2976_v55 }
  0xa4   : > { %v2984_v58 = vpop.f32.mrf.mxu0  ;;  %2378 = vmatmul.msk.bf16.gmra.mxu1 %vm282_vm1, %v2950_v41 }
  0xa5   : > { %2395 = vmatmul.msk.bf16.gmra.mxu2 %vm282_vm1, %v2980_v56 }
  0xa6   : > { %2444 = vmatmul.msk.bf16.gmra.mxu3 %vm282_vm1, %v2982_v57 }
  0xa7   : > { %2493 = vmatmul.msk.bf16.gmra.mxu0 %vm282_vm1, %v2829_v42 }
  0xa8   : > { %v2994_v59 = vpop.f32.mrf.mxu2 }
  0xa9   : > { %v2996_v60 = vpop.f32.mrf.mxu3  ;;  %v2998_v61 = vpop.f32.mrf.mxu1 }
  0xaa   : > { %3526 = vst [vmem:[#allocation3_spill] sm:$0xff] %v2996_v60 }
  0xac   : > { %v3000_v2 = vpop.f32.mrf.mxu0 }
  0xb0   : > { %v3006_v7 = vpop.f32.mrf.mxu2 }
  0xb1   : > { %v3008_v8 = vpop.f32.mrf.mxu3  ;;  %v3010_v42 = vpop.f32.mrf.mxu1 }
  0xb2   : > { %3527 = vst [vmem:[#allocation4_spill] sm:$0xff] %v3008_v8 }
  0xb4   : > { %v3016_v11 = vpop.f32.mrf.mxu0  ;;  %2379 = vmatmul.msk.bf16.gmra.mxu1 %vm282_vm1, %v2982_v57 }
  0xb5   : > { %2396 = vmatmul.msk.bf16.gmra.mxu2 %vm282_vm1, %v3012_v9 }
  0xb6   : > { %2445 = vmatmul.msk.bf16.gmra.mxu3 %vm282_vm1, %v3014_v10 }
  0xb7   : > { %2494 = vmatmul.msk.bf16.gmra.mxu0 %vm282_vm1, %v2869_v62 }
  0xb8   : > { %v3026_v12 = vpop.f32.mrf.mxu2 }
  0xb9   : > { %v3028_v14 = vpop.f32.mrf.mxu3  ;;  %v3030_v15 = vpop.f32.mrf.mxu1 }
  0xba   : > { %3529 = vst [vmem:[#allocation6_spill] sm:$0xff] %v3028_v14  ;;  %v583_v14 = vld [vmem:[%s2777_s27 + $0xe2] sm:$0xff] }
  0xbc   : > { %v3032_v20 = vpop.f32.mrf.mxu0 }
  0xc0   : > { %v3038_v27 = vpop.f32.mrf.mxu2 }
  0xc1   : > { %v3040_v28 = vpop.f32.mrf.mxu3  ;;  %v3042_v62 = vpop.f32.mrf.mxu1 }
  0xc2   : > { %3530 = vst [vmem:[#allocation7_spill] sm:$0xff] %v3040_v28 }
  0xc4   : > { %v3048_v36 = vpop.f32.mrf.mxu0  ;;  %2380 = vmatmul.msk.bf16.gmra.mxu1 %vm282_vm1, %v3014_v10 }
  0xc5   : > { %2397 = vmatmul.msk.bf16.gmra.mxu2 %vm282_vm1, %v3044_v29 }
  0xc6   : > { %2446 = vmatmul.msk.bf16.gmra.mxu3 %vm282_vm1, %v3046_v35 }
  0xc7   : > { %2495 = vmatmul.msk.bf16.gmra.mxu0 %vm282_vm1, %v2787_v17  ;;  %v3076_v17 = vpack.c.bf16 %v2423_v4, %v2422_v3 }
  0xc8   : > { %v3058_v37 = vpop.f32.mrf.mxu2 }
  0xc9   : > { %v3060_v38 = vpop.f32.mrf.mxu3  ;;  %v3062_v50 = vpop.f32.mrf.mxu1 }
  0xca   : > { %3533 = vst [vmem:[#allocation10_spill] sm:$0xff] %v3060_v38  ;;  %v582_v38 = vld [vmem:[%s2777_s27 + $0xda] sm:$0xff] }
  0xcb   : > { %v3094_v55 = vpack.c.bf16 %v583_v14, %v582_v38 }
  0xcc   : > { %v3064_v51 = vpop.f32.mrf.mxu0 }
  0xd0   : > { %v3070_v5 = vpop.f32.mrf.mxu2 }
  0xd1   : > { %v3072_v6 = vpop.f32.mrf.mxu3  ;;  %v484_v21 = vpop.f32.mrf.mxu1 }
  0xd2   : > { %3534 = vst [vmem:[#allocation11_spill] sm:$0xff] %v3072_v6  ;;  %v485_v23 = vadd.f32 %v484_v21, %v2952_v46 }
  0xd4   : > { %v1119_v26 = vpop.f32.mrf.mxu0  ;;  %2381 = vmatmul.msk.bf16.gmra.mxu1 %vm282_vm1, %v3046_v35  ;;  %v2424_v35 = vld [vmem:[%s2777_s27 + $0xf0] sm:$0xff] }
  0xd5   : > { %2398 = vmatmul.msk.bf16.gmra.mxu2 %vm282_vm1, %v3074_v22  ;;  %v2425_v22 = vld [vmem:[%s2777_s27 + $0xf8] sm:$0xff] }
  0xd6   : > { %2447 = vmatmul.msk.bf16.gmra.mxu3 %vm282_vm1, %v3076_v17 }
  0xd7   : > { %2496 = vmatmul.msk.bf16.gmra.mxu0 %vm282_vm1, %v2810_v31  ;;  %v3096_v31 = vpack.c.bf16 %v2425_v22, %v2424_v35  ;;  %v584_v22 = vld [vmem:[%s2777_s27 + $0xf2] sm:$0xff] }
  0xd8   : > { %v674_v52 = vpop.f32.mrf.mxu2 }
  0xd9   : > { %v897_v53 = vpop.f32.mrf.mxu3  ;;  %v754_v3 = vadd.f32 %v674_v52, %v485_v23  ;;  %v486_v4 = vpop.f32.mrf.mxu1 }
  0xda   : > { %v487_v46 = vadd.f32 %v486_v4, %v2968_v49  ;;  %v2427_v4 = vld [vmem:[%s2777_s27 + $0x110] sm:$0xff] }
  0xdb   : > { %v977_v21 = vadd.f32 %v897_v53, %v754_v3  ;;  %v585_v53 = vld [vmem:[%s2777_s27 + $0xfa] sm:$0xff]  ;;  %v2426_v3 = vld [vmem:[%s2777_s27 + $0x108] sm:$0xff] }
  0xdc   : > { %v1121_v6 = vpop.f32.mrf.mxu0 }
  0xdd   : > { %v3089_v28 = vadd.f32 %v1119_v26, %v977_v21 }
  0xe0   : > { %v676_v8 = vpop.f32.mrf.mxu2 }
  0xe1   : > { %v899_v60 = vpop.f32.mrf.mxu3  ;;  %v755_v29 = vadd.f32 %v676_v8, %v487_v46  ;;  %v489_v10 = vpop.f32.mrf.mxu1 }
  0xe2   : > { %v490_v23 = vadd.f32 %v489_v10, %v2984_v58 }
  0xe3   : > { %v978_v49 = vadd.f32 %v899_v60, %v755_v29 }
  0xe4   : > { %v1124_v52 = vpop.f32.mrf.mxu0  ;;  %2382 = vmatmul.msk.bf16.gmra.mxu1 %vm282_vm1, %v3076_v17 }
  0xe5   : > { %2399 = vmatmul.msk.bf16.gmra.mxu2 %vm282_vm1, %v3094_v55  ;;  %v3105_v8 = vadd.f32 %v1121_v6, %v978_v49 }
  0xe6   : > { %2448 = vmatmul.msk.bf16.gmra.mxu3 %vm282_vm1, %v3096_v31 }
  0xe7   : > { %3536 = vst [vmem:[#allocation13_spill] sm:$0xff] %v3105_v8  ;;  %2497 = vmatmul.msk.bf16.gmra.mxu0 %vm282_vm1, %v2831_v43  ;;  %v3116_v8 = vpack.c.bf16 %v585_v53, %v584_v22  ;;  %v3118_v43 = vpack.c.bf16 %v2427_v4, %v2426_v3  ;;  %v586_v53 = vld [vmem:[%s2777_s27 + $0x10a] sm:$0xff]  ;;  %v587_v4 = vld [vmem:[%s2777_s27 + $0x112] sm:$0xff] }
  0xe8   : > { %v679_v58 = vpop.f32.mrf.mxu2 }
  0xe9   : > { %v902_v60 = vpop.f32.mrf.mxu3  ;;  %v756_v10 = vadd.f32 %v679_v58, %v490_v23  ;;  %v491_v14 = vpop.f32.mrf.mxu1 }
  0xea   : > { %v492_v29 = vadd.f32 %v491_v14, %v3000_v2 }
  0xeb   : > { %v979_v35 = vadd.f32 %v902_v60, %v756_v10 }
  0xec   : > { %v1126_v38 = vpop.f32.mrf.mxu0 }
  0xed   : > { %v3111_v26 = vadd.f32 %v1124_v52, %v979_v35 }
  0xf0   : > { %v681_v46 = vpop.f32.mrf.mxu2 }
  0xf1   : > { %v904_v6 = vpop.f32.mrf.mxu3  ;;  %v757_v21 = vadd.f32 %v681_v46, %v492_v29  ;;  %v494_v49 = vpop.f32.mrf.mxu1  ;;  %v2428_v46 = vld [vmem:[%s2777_s27 + $0x120] sm:$0xff] }
  0xf2   : > { %v495_v23 = vadd.f32 %v494_v49, %v3016_v11 }
  0xf3   : > { %v980_v2 = vadd.f32 %v904_v6, %v757_v21  ;;  %v2429_v6 = vld [vmem:[%s2777_s27 + $0x128] sm:$0xff] }
  0xf4   : > { %v1129_v58 = vpop.f32.mrf.mxu0  ;;  %2383 = vmatmul.msk.bf16.gmra.mxu1 %vm282_vm1, %v3096_v31 }
  0xf5   : > { %2400 = vmatmul.msk.bf16.gmra.mxu2 %vm282_vm1, %v3116_v8  ;;  %v3127_v52 = vadd.f32 %v1126_v38, %v980_v2 }
  0xf6   : > { %2449 = vmatmul.msk.bf16.gmra.mxu3 %vm282_vm1, %v3118_v43 }
  0xf7   : > { %3537 = vst [vmem:[#allocation14_spill] sm:$0xff] %v3127_v52  ;;  %2498 = vmatmul.msk.bf16.gmra.mxu0 %vm282_vm1, %v2871_v63  ;;  %v3138_v52 = vpack.c.bf16 %v587_v4, %v586_v53  ;;  %v3140_v63 = vpack.c.bf16 %v2429_v6, %v2428_v46  ;;  %v588_v4 = vld [vmem:[%s2777_s27 + $0x122] sm:$0xff]  ;;  %v589_v6 = vld [vmem:[%s2777_s27 + $0x12a] sm:$0xff] }
  0xf8   : > { %v684_v11 = vpop.f32.mrf.mxu2 }
  0xf9   : > { %v907_v60 = vpop.f32.mrf.mxu3  ;;  %v758_v10 = vadd.f32 %v684_v11, %v495_v23  ;;  %v496_v14 = vpop.f32.mrf.mxu1 }
  0xfa   : > { %v497_v29 = vadd.f32 %v496_v14, %v3032_v20 }
  0xfb   : > { %v981_v35 = vadd.f32 %v907_v60, %v758_v10 }
  0xfc   : > { %v1131_v22 = vpop.f32.mrf.mxu0 }
  0xfd   : > { %v3133_v3 = vadd.f32 %v1129_v58, %v981_v35 }
 0x100   : > { %v686_v21 = vpop.f32.mrf.mxu2 }
 0x101   : > { %v909_v38 = vpop.f32.mrf.mxu3  ;;  %v759_v49 = vadd.f32 %v686_v21, %v497_v29  ;;  %v499_v2 = vpop.f32.mrf.mxu1  ;;  %v2430_v21 = vld [vmem:[%s2777_s27 + $0x138] sm:$0xff] }
 0x102   : > { %v500_v23 = vadd.f32 %v499_v2, %v3048_v36 }
 0x103   : > { %v982_v20 = vadd.f32 %v909_v38, %v759_v49  ;;  %v2431_v38 = vld [vmem:[%s2777_s27 + $0x140] sm:$0xff] }
 0x104   : > { %v1134_v11 = vpop.f32.mrf.mxu0  ;;  %2384 = vmatmul.msk.bf16.gmra.mxu1 %vm282_vm1, %v3118_v43 }
 0x105   : > { %2401 = vmatmul.msk.bf16.gmra.mxu2 %vm282_vm1, %v3138_v52  ;;  %v3149_v58 = vadd.f32 %v1131_v22, %v982_v20 }
 0x106   : > { %2450 = vmatmul.msk.bf16.gmra.mxu3 %vm282_vm1, %v3140_v63 }
 0x107   : > { %3538 = vst [vmem:[#allocation15_spill] sm:$0xff] %v3149_v58  ;;  %2499 = vmatmul.msk.bf16.gmra.mxu0 %vm282_vm1, %v2789_v18  ;;  %v3160_v58 = vpack.c.bf16 %v589_v6, %v588_v4  ;;  %v3162_v18 = vpack.c.bf16 %v2431_v38, %v2430_v21  ;;  %v590_v6 = vld [vmem:[%s2777_s27 + $0x13a] sm:$0xff]  ;;  %v591_v38 = vld [vmem:[%s2777_s27 + $0x142] sm:$0xff] }
 0x108   : > { %v689_v36 = vpop.f32.mrf.mxu2 }
 0x109   : > { %v912_v60 = vpop.f32.mrf.mxu3  ;;  %v760_v10 = vadd.f32 %v689_v36, %v500_v23  ;;  %v501_v14 = vpop.f32.mrf.mxu1 }
 0x10a   : > { %v502_v29 = vadd.f32 %v501_v14, %v3064_v51 }
 0x10b   : > { %v983_v35 = vadd.f32 %v912_v60, %v760_v10 }
 0x10c   : > { %v1136_v53 = vpop.f32.mrf.mxu0 }
 0x10d   : > { %v3155_v46 = vadd.f32 %v1134_v11, %v983_v35 }
 0x10f   : > { %3539 = vst [vmem:[#allocation16_spill] sm:$0xff] %v3155_v46  ;;  %v3182_v46 = vpack.c.bf16 %v591_v38, %v590_v6  ;;  %v592_v6 = vld [vmem:[%s2777_s27 + $0x152] sm:$0xff] }
 0x110   : > { %v691_v49 = vpop.f32.mrf.mxu2 }
 0x111   : > { %v914_v22 = vpop.f32.mrf.mxu3  ;;  %v761_v2 = vadd.f32 %v691_v49, %v502_v29  ;;  %v504_v20 = vpop.f32.mrf.mxu1  ;;  %v2432_v49 = vld [vmem:[%s2777_s27 + $0x150] sm:$0xff] }
 0x112   : > { %v505_v36 = vadd.f32 %v504_v20, %v2946_v39 }
 0x113   : > { %v984_v23 = vadd.f32 %v914_v22, %v761_v2  ;;  %v2433_v22 = vld [vmem:[%s2777_s27 + $0x158] sm:$0xff] }
 0x114   : > { %v1139_v51 = vpop.f32.mrf.mxu0  ;;  %2385 = vmatmul.msk.bf16.gmra.mxu1 %vm282_vm1, %v3140_v63  ;;  %v3184_v39 = vpack.c.bf16 %v2433_v22, %v2432_v49  ;;  %v593_v49 = vld [vmem:[%s2777_s27 + $0x15a] sm:$0xff]  ;;  %v2434_v22 = vld [vmem:[%s2777_s27 + $0x168] sm:$0xff] }
 0x115   : > { %2402 = vmatmul.msk.bf16.gmra.mxu2 %vm282_vm1, %v3160_v58  ;;  %v3170_v11 = vadd.f32 %v1136_v53, %v984_v23 }
 0x116   : > { %2451 = vmatmul.msk.bf16.gmra.mxu3 %vm282_vm1, %v3162_v18 }
 0x117   : > { %3540 = vst [vmem:[#allocation17_spill] sm:$0xff] %v3170_v11  ;;  %2500 = vmatmul.msk.bf16.gmra.mxu0 %vm282_vm1, %v2812_v32 }
 0x118   : > { %v694_v60 = vpop.f32.mrf.mxu2 }
 0x119   : > { %v917_v10 = vpop.f32.mrf.mxu3  ;;  %v762_v14 = vadd.f32 %v694_v60, %v505_v36  ;;  %v506_v29 = vpop.f32.mrf.mxu1 }
 0x11a   : > { %v507_v53 = vadd.f32 %v506_v29, %v2966_v48 }
 0x11b   : > { %v985_v35 = vadd.f32 %v917_v10, %v762_v14 }
 0x11c   : > { %v1141_v4 = vpop.f32.mrf.mxu0 }
 0x11d   : > { %v3176_v21 = vadd.f32 %v1139_v51, %v985_v35 }
 0x120   : > { %v696_v2 = vpop.f32.mrf.mxu2 }
 0x121   : > { %v919_v23 = vpop.f32.mrf.mxu3  ;;  %v763_v11 = vadd.f32 %v696_v2, %v507_v53  ;;  %v509_v32 = vpop.f32.mrf.mxu1  ;;  %v2435_v53 = vld [vmem:[%s2777_s27 + $0x170] sm:$0xff] }
 0x122   : > { %v510_v51 = vadd.f32 %v509_v32, %v2978_v30  ;;  %v3206_v30 = vpack.c.bf16 %v2435_v53, %v2434_v22  ;;  %v595_v53 = vld [vmem:[%s2777_s27 + $0x172] sm:$0xff] }
 0x123   : > { %v986_v20 = vadd.f32 %v919_v23, %v763_v11 }
 0x124   : > { %v1144_v36 = vpop.f32.mrf.mxu0  ;;  %2386 = vmatmul.msk.bf16.gmra.mxu1 %vm282_vm1, %v3162_v18 }
 0x125   : > { %2403 = vmatmul.msk.bf16.gmra.mxu2 %vm282_vm1, %v3182_v46  ;;  %v3192_v48 = vadd.f32 %v1141_v4, %v986_v20 }
 0x126   : > { %2452 = vmatmul.msk.bf16.gmra.mxu3 %vm282_vm1, %v3184_v39 }
 0x127   : > { %3541 = vst [vmem:[#allocation18_spill] sm:$0xff] %v3192_v48  ;;  %2501 = vmatmul.msk.bf16.gmra.mxu0 %vm282_vm1, %v2833_v44  ;;  %v3204_v48 = vpack.c.bf16 %v593_v49, %v592_v6  ;;  %v594_v49 = vld [vmem:[%s2777_s27 + $0x16a] sm:$0xff] }
 0x128   : > { %v699_v11 = vpop.f32.mrf.mxu2 }
 0x129   : > { %v922_v60 = vpop.f32.mrf.mxu3  ;;  %v764_v10 = vadd.f32 %v699_v11, %v510_v51  ;;  %v511_v14 = vpop.f32.mrf.mxu1 }
 0x12a   : > { %v512_v4 = vadd.f32 %v511_v14, %v2998_v61 }
 0x12b   : > { %v987_v29 = vadd.f32 %v922_v60, %v764_v10 }
 0x12c   : > { %v1146_v35 = vpop.f32.mrf.mxu0 }
 0x12d   : > { %v3198_v38 = vadd.f32 %v1144_v36, %v987_v29 }
 0x130   : > { %v701_v2 = vpop.f32.mrf.mxu2 }
 0x131   : > { %v924_v23 = vpop.f32.mrf.mxu3  ;;  %v765_v20 = vadd.f32 %v701_v2, %v512_v4  ;;  %v514_v44 = vpop.f32.mrf.mxu1  ;;  %v2436_v4 = vld [vmem:[%s2777_s27 + $0x180] sm:$0xff]  ;;  %v2437_v2 = vld [vmem:[%s2777_s27 + $0x188] sm:$0xff] }
 0x132   : > { %v515_v36 = vadd.f32 %v514_v44, %v3010_v42  ;;  %v3228_v44 = vpack.c.bf16 %v595_v53, %v594_v49 }
 0x133   : > { %v988_v32 = vadd.f32 %v924_v23, %v765_v20  ;;  %v2485_v23 = vld [vmem:[%s2777_s27 + $0x181] sm:$0xff]  ;;  %v2486_v20 = vld [vmem:[%s2777_s27 + $0x189] sm:$0xff] }
 0x134   : > { %v1149_v51 = vpop.f32.mrf.mxu0  ;;  %2387 = vmatmul.msk.bf16.gmra.mxu1 %vm282_vm1, %v3184_v39 }
 0x135   : > { %2404 = vmatmul.msk.bf16.gmra.mxu2 %vm282_vm1, %v3204_v48  ;;  %v3214_v61 = vadd.f32 %v1146_v35, %v988_v32 }
 0x136   : > { %2453 = vmatmul.msk.bf16.gmra.mxu3 %vm282_vm1, %v3206_v30 }
 0x137   : > { %3542 = vst [vmem:[#allocation19_spill] sm:$0xff] %v3214_v61  ;;  %2502 = vmatmul.msk.bf16.gmra.mxu0 %vm282_vm1, %v2873_v0 }
 0x138   : > { %v704_v11 = vpop.f32.mrf.mxu2 }
 0x139   : > { %v927_v60 = vpop.f32.mrf.mxu3  ;;  %v766_v10 = vadd.f32 %v704_v11, %v515_v36  ;;  %v516_v14 = vpop.f32.mrf.mxu1  ;;  %v834_v36 = vpack.c.bf16 %v2437_v2, %v2436_v4  ;;  %v1056_v11 = vpack.c.bf16 %v2486_v20, %v2485_v23 }
 0x13a   : > { %v517_v35 = vadd.f32 %v516_v14, %v3030_v15 }
 0x13b   : > { %v989_v29 = vadd.f32 %v927_v60, %v766_v10 }
 0x13c   : > { %v1151_v6 = vpop.f32.mrf.mxu0 }
 0x13d   : > { %v3220_v22 = vadd.f32 %v1149_v51, %v989_v29 }
 0x140   : > { %v706_v32 = vpop.f32.mrf.mxu2 }
 0x141   : > { %v929_v0 = vpop.f32.mrf.mxu3  ;;  %v767_v61 = vadd.f32 %v706_v32, %v517_v35  ;;  %v519_v42 = vpop.f32.mrf.mxu1 }
 0x142   : > { %v520_v51 = vadd.f32 %v519_v42, %v3042_v62 }
 0x143   : > { %v990_v60 = vadd.f32 %v929_v0, %v767_v61 }
 0x144   : > { %v1154_v10 = vpop.f32.mrf.mxu0  ;;  %2388 = vmatmul.msk.bf16.gmra.mxu1 %vm282_vm1, %v3206_v30 }
 0x145   : > { %2405 = vmatmul.msk.bf16.gmra.mxu2 %vm282_vm1, %v3228_v44  ;;  %v3235_v15 = vadd.f32 %v1151_v6, %v990_v60 }
 0x146   : > { %2454 = vmatmul.msk.bf16.gmra.mxu3 %vm282_vm1, %v834_v36 }
 0x147   : > { %2503 = vmatmul.msk.bf16.gmra.mxu0 %vm282_vm1, %v1056_v11 }
 0x148   : > { %v709_v14 = vpop.f32.mrf.mxu2 }
 0x149   : > { %v932_v29 = vpop.f32.mrf.mxu3  ;;  %v768_v49 = vadd.f32 %v709_v14, %v520_v51  ;;  %v521_v53 = vpop.f32.mrf.mxu1 }
 0x14a   : > { %v522_v35 = vadd.f32 %v521_v53, %v3062_v50 }
 0x14b   : > { %v991_v61 = vadd.f32 %v932_v29, %v768_v49 }
 0x14c   : > { %v1156_v4 = vpop.f32.mrf.mxu0 }
 0x14d   : > { %v3239_v2 = vadd.f32 %v1154_v10, %v991_v61 }
 0x150   : > { %v711_v23 = vpop.f32.mrf.mxu2 }
 0x151   : > { %v934_v20 = vpop.f32.mrf.mxu3  ;;  %v769_v32 = vadd.f32 %v711_v23, %v522_v35  ;;  %v524_v0 = vpop.f32.mrf.mxu1 }
 0x152   : > { %v525_v50 = vadd.f32 %v524_v0, %v2962_v13 }
 0x153   : > { %v992_v6 = vadd.f32 %v934_v20, %v769_v32 }
 0x154   : > { %v1159_v36 = vpop.f32.mrf.mxu0  ;;  %2537 = vmatmul.msk.bf16.vlgmr.msra.gmra.mxu1 %vm282_vm1, %v2899_v16 }
 0x155   : > { %2586 = vmatmul.msk.bf16.vlgmr.msra.gmra.mxu2 %vm282_vm1, %v2901_v19  ;;  %v3248_v62 = vadd.f32 %v1156_v4, %v992_v6 }
 0x156   : > { %2635 = vmatmul.msk.bf16.vlgmr.msra.gmra.mxu3 %vm282_vm1, %v2835_v45 }
 0x157   : > { %2684 = vmatmul.msk.bf16.vlgmr.msra.gmra.mxu0 %vm282_vm1, %v2914_v24 }
 0x158   : > { %v714_v42 = vpop.f32.mrf.mxu2 }
 0x159   : > { %v937_v11 = vpop.f32.mrf.mxu3  ;;  %v770_v60 = vadd.f32 %v714_v42, %v525_v50  ;;  %v526_v10 = vpop.f32.mrf.mxu1 }
 0x15a   : > { %v527_v19 = vadd.f32 %v526_v10, %v2974_v54 }
 0x15b   : > { %v993_v51 = vadd.f32 %v937_v11, %v770_v60 }
 0x15c   : > { %v1161_v14 = vpop.f32.mrf.mxu0 }
 0x15d   : > { %v3253_v16 = vadd.f32 %v1159_v36, %v993_v51  ;;  %v2606_v36 = vld [vmem:[%s2777_s27 + $0x61] sm:$0xff] }
 0x160   : > { %v716_v29 = vpop.f32.mrf.mxu2 }
 0x161   : > { %v939_v49 = vpop.f32.mrf.mxu3  ;;  %v771_v45 = vadd.f32 %v716_v29, %v527_v19  ;;  %v529_v53 = vpop.f32.mrf.mxu1 }
 0x162   : > { %v530_v54 = vadd.f32 %v529_v53, %v2994_v59 }
 0x163   : > { %v994_v61 = vadd.f32 %v939_v49, %v771_v45 }
 0x164   : > { %v1164_v4 = vpop.f32.mrf.mxu0  ;;  %2538 = vmatmul.msk.bf16.gmra.mxu1 %vm282_vm1, %v2914_v24 }
 0x165   : > { %2587 = vmatmul.msk.bf16.gmra.mxu2 %vm282_vm1, %v2916_v25  ;;  %v3262_v13 = vadd.f32 %v1161_v14, %v994_v61  ;;  %v2607_v25 = vld [vmem:[%s2777_s27 + $0x69] sm:$0xff] }
 0x166   : > { %2636 = vmatmul.msk.bf16.gmra.mxu3 %vm282_vm1, %v2875_v1  ;;  %v1710_v10 = vpack.c.bf16 %v2607_v25, %v2606_v36 }
 0x167   : > { %2685 = vmatmul.msk.bf16.gmra.mxu0 %vm282_vm1, %v2930_v33 }
 0x168   : > { %v719_v35 = vpop.f32.mrf.mxu2 }
 0x169   : > { %v942_v23 = vpop.f32.mrf.mxu3  ;;  %v772_v20 = vadd.f32 %v719_v35, %v530_v54  ;;  %v531_v32 = vpop.f32.mrf.mxu1  ;;  %v2609_v54 = vld [vmem:[%s2777_s27 + $0x81] sm:$0xff] }
 0x16a   : > { %v532_v50 = vadd.f32 %v531_v32, %v3006_v7 }
 0x16b   : > { %v995_v0 = vadd.f32 %v942_v23, %v772_v20 }
 0x16c   : > { %v1166_v6 = vpop.f32.mrf.mxu0 }
 0x16d   : > { %v3267_v24 = vadd.f32 %v1164_v4, %v995_v0 }
 0x170   : > { %v721_v1 = vpop.f32.mrf.mxu2 }
 0x171   : > { %v944_v42 = vpop.f32.mrf.mxu3  ;;  %v773_v11 = vadd.f32 %v721_v1, %v532_v50  ;;  %v534_v60 = vpop.f32.mrf.mxu1 }
 0x172   : > { %v535_v7 = vadd.f32 %v534_v60, %v3026_v12 }
 0x173   : > { %v996_v51 = vadd.f32 %v944_v42, %v773_v11 }
 0x174   : > { %v1169_v59 = vpop.f32.mrf.mxu0  ;;  %2539 = vmatmul.msk.bf16.gmra.mxu1 %vm282_vm1, %v2930_v33  ;;  %v2608_v33 = vld [vmem:[%s2777_s27 + $0x79] sm:$0xff] }
 0x175   : > { %2588 = vmatmul.msk.bf16.gmra.mxu2 %vm282_vm1, %v2932_v34  ;;  %v3277_v14 = vadd.f32 %v1166_v6, %v996_v51  ;;  %v1711_v0 = vpack.c.bf16 %v2609_v54, %v2608_v33  ;;  %v2611_v51 = vld [vmem:[%s2777_s27 + $0x99] sm:$0xff] }
 0x176   : > { %2637 = vmatmul.msk.bf16.gmra.mxu3 %vm282_vm1, %v1710_v10 }
 0x177   : > { %2686 = vmatmul.msk.bf16.gmra.mxu0 %vm282_vm1, %v2948_v40 }
 0x178   : > { %v724_v19 = vpop.f32.mrf.mxu2 }
 0x179   : > { %v947_v29 = vpop.f32.mrf.mxu3  ;;  %v774_v49 = vadd.f32 %v724_v19, %v535_v7  ;;  %v536_v45 = vpop.f32.mrf.mxu1 }
 0x17a   : > { %v537_v34 = vadd.f32 %v536_v45, %v3038_v27 }
 0x17b   : > { %v997_v53 = vadd.f32 %v947_v29, %v774_v49 }
 0x17c   : > { %v1171_v61 = vpop.f32.mrf.mxu0 }
 0x17d   : > { %v3282_v4 = vadd.f32 %v1169_v59, %v997_v53 }
 0x180   : > { %v726_v35 = vpop.f32.mrf.mxu2 }
 0x181   : > { %v949_v23 = vpop.f32.mrf.mxu3  ;;  %v775_v20 = vadd.f32 %v726_v35, %v537_v34  ;;  %v539_v32 = vpop.f32.mrf.mxu1 }
 0x182   : > { %v540_v27 = vadd.f32 %v539_v32, %v3058_v37  ;;  %v2613_v32 = vld [vmem:[%s2777_s27 + $0xb1] sm:$0xff] }
 0x183   : > { %v998_v6 = vadd.f32 %v949_v23, %v775_v20 }
 0x184   : > { %v1174_v12 = vpop.f32.mrf.mxu0  ;;  %2540 = vmatmul.msk.bf16.gmra.mxu1 %vm282_vm1, %v2948_v40  ;;  %v2610_v40 = vld [vmem:[%s2777_s27 + $0x91] sm:$0xff] }
 0x185   : > { %2589 = vmatmul.msk.bf16.gmra.mxu2 %vm282_vm1, %v2950_v41  ;;  %v3292_v36 = vadd.f32 %v1171_v61, %v998_v6  ;;  %v1712_v49 = vpack.c.bf16 %v2611_v51, %v2610_v40  ;;  %v3546_v40 = vld [vmem:[#allocation3_spill] sm:$0xff] }
 0x186   : > { %2638 = vmatmul.msk.bf16.gmra.mxu3 %vm282_vm1, %v1711_v0 }
 0x187   : > { %2687 = vmatmul.msk.bf16.gmra.mxu0 %vm282_vm1, %v2980_v56 }
 0x188   : > { %v729_v25 = vpop.f32.mrf.mxu2 }
 0x189   : > { %v952_v50 = vpop.f32.mrf.mxu3  ;;  %v776_v1 = vadd.f32 %v729_v25, %v540_v27  ;;  %v541_v42 = vpop.f32.mrf.mxu1 }
 0x18a   : > { %v542_v41 = vadd.f32 %v541_v42, %v3070_v5  ;;  %v3544_v42 = vld [vmem:[#allocation5_spill] sm:$0xff] }
 0x18b   : > { %v999_v11 = vadd.f32 %v952_v50, %v776_v1 }
 0x18c   : > { %v1176_v60 = vpop.f32.mrf.mxu0 }
 0x18d   : > { %v3297_v10 = vadd.f32 %v1174_v12, %v999_v11 }
 0x190   : > { %v731_v59 = vpop.f32.mrf.mxu2 }
 0x191   : > { %v954_v7 = vpop.f32.mrf.mxu3  ;;  %v777_v19 = vadd.f32 %v731_v59, %v542_v41  ;;  %v544_v29 = vpop.f32.mrf.mxu1 }
 0x192   : > { %v545_v5 = vadd.f32 %v544_v29, %v2964_v47 }
 0x193   : > { %v1000_v45 = vadd.f32 %v954_v7, %v777_v19 }
 0x194   : > { %v1179_v37 = vpop.f32.mrf.mxu0  ;;  %2541 = vmatmul.msk.bf16.gmra.mxu1 %vm282_vm1, %v2980_v56  ;;  %v2612_v56 = vld [vmem:[%s2777_s27 + $0xa9] sm:$0xff] }
 0x195   : > { %2590 = vmatmul.msk.bf16.gmra.mxu2 %vm282_vm1, %v2982_v57  ;;  %v3307_v53 = vadd.f32 %v1176_v60, %v1000_v45  ;;  %v3543_v57 = vld [vmem:[#allocation2_spill] sm:$0xff]  ;;  %v1713_v50 = vpack.c.bf16 %v2613_v32, %v2612_v56  ;;  %v3545_v60 = vld [vmem:[#allocation8_spill] sm:$0xff] }
 0x196   : > { %2639 = vmatmul.msk.bf16.gmra.mxu3 %vm282_vm1, %v1712_v49 }
 0x197   : > { %2688 = vmatmul.msk.bf16.gmra.mxu0 %vm282_vm1, %v3012_v9 }
 0x198   : > { %v734_v61 = vpop.f32.mrf.mxu2 }
 0x199   : > { %v957_v33 = vpop.f32.mrf.mxu3  ;;  %v778_v54 = vadd.f32 %v734_v61, %v545_v5  ;;  %v546_v34 = vpop.f32.mrf.mxu1  ;;  %v3547_v5 = vld [vmem:[#allocation4_spill] sm:$0xff] }
 0x19a   : > { %v547_v0 = vadd.f32 %v546_v34, %v3543_v57  ;;  %v3548_v57 = vld [vmem:[#allocation9_spill] sm:$0xff] }
 0x19b   : > { %v1001_v35 = vadd.f32 %v957_v33, %v778_v54 }
 0x19c   : > { %v1181_v23 = vpop.f32.mrf.mxu0 }
 0x19d   : > { %v3312_v20 = vadd.f32 %v1179_v37, %v1001_v35  ;;  %v2615_v37 = vld [vmem:[%s2777_s27 + $0xc9] sm:$0xff] }
 0x1a0   : > { %v736_v6 = vpop.f32.mrf.mxu2 }
 0x1a1   : > { %v959_v12 = vpop.f32.mrf.mxu3  ;;  %v779_v27 = vadd.f32 %v736_v6, %v547_v0  ;;  %v549_v25 = vpop.f32.mrf.mxu1  ;;  %v3549_v6 = vld [vmem:[#allocation12_spill] sm:$0xff] }
 0x1a2   : > { %v550_v51 = vadd.f32 %v549_v25, %v3546_v40 }
 0x1a3   : > { %v1002_v1 = vadd.f32 %v959_v12, %v779_v27  ;;  %v3550_v12 = vld [vmem:[#allocation6_spill] sm:$0xff] }
 0x1a4   : > { %v1184_v47 = vpop.f32.mrf.mxu0  ;;  %2542 = vmatmul.msk.bf16.gmra.mxu1 %vm282_vm1, %v3012_v9  ;;  %v2614_v9 = vld [vmem:[%s2777_s27 + $0xc1] sm:$0xff] }
 0x1a5   : > { %2591 = vmatmul.msk.bf16.gmra.mxu2 %vm282_vm1, %v3544_v42  ;;  %v3322_v11 = vadd.f32 %v1181_v23, %v1002_v1  ;;  %v1714_v23 = vpack.c.bf16 %v2615_v37, %v2614_v9 }
 0x1a6   : > { %2640 = vmatmul.msk.bf16.gmra.mxu3 %vm282_vm1, %v1713_v50 }
 0x1a7   : > { %2689 = vmatmul.msk.bf16.gmra.mxu0 %vm282_vm1, %v3545_v60 }
 0x1a8   : > { %v739_v41 = vpop.f32.mrf.mxu2 }
 0x1a9   : > { %v962_v59 = vpop.f32.mrf.mxu3  ;;  %v780_v7 = vadd.f32 %v739_v41, %v550_v51  ;;  %v551_v19 = vpop.f32.mrf.mxu1  ;;  %v2617_v41 = vld [vmem:[%s2777_s27 + $0xe1] sm:$0xff] }
 0x1aa   : > { %v552_v61 = vadd.f32 %v551_v19, %v3547_v5 }
 0x1ab   : > { %v1003_v29 = vadd.f32 %v962_v59, %v780_v7  ;;  %v3551_v59 = vld [vmem:[#allocation7_spill] sm:$0xff] }
 0x1ac   : > { %v1186_v49 = vpop.f32.mrf.mxu0 }
 0x1ad   : > { %v3327_v45 = vadd.f32 %v1184_v47, %v1003_v29 }
 0x1b0   : > { %v741_v33 = vpop.f32.mrf.mxu2 }
 0x1b1   : > { %v964_v54 = vpop.f32.mrf.mxu3  ;;  %v781_v34 = vadd.f32 %v741_v33, %v552_v61  ;;  %v554_v35 = vpop.f32.mrf.mxu1 }
 0x1b2   : > { %v555_v27 = vadd.f32 %v554_v35, %v3550_v12 }
 0x1b3   : > { %v1004_v56 = vadd.f32 %v964_v54, %v781_v34  ;;  %v3552_v54 = vld [vmem:[#allocation10_spill] sm:$0xff] }
 0x1b4   : > { %v1189_v32 = vpop.f32.mrf.mxu0  ;;  %2543 = vmatmul.msk.bf16.gmra.mxu1 %vm282_vm1, %v3545_v60  ;;  %v2616_v60 = vld [vmem:[%s2777_s27 + $0xd9] sm:$0xff] }
 0x1b5   : > { %2592 = vmatmul.msk.bf16.gmra.mxu2 %vm282_vm1, %v3548_v57  ;;  %v3337_v0 = vadd.f32 %v1186_v49, %v1004_v56  ;;  %v1715_v37 = vpack.c.bf16 %v2617_v41, %v2616_v60 }
 0x1b6   : > { %2641 = vmatmul.msk.bf16.gmra.mxu3 %vm282_vm1, %v1714_v23 }
 0x1b7   : > { %2690 = vmatmul.msk.bf16.gmra.mxu0 %vm282_vm1, %v3549_v6 }
 0x1b8   : > { %v744_v25 = vpop.f32.mrf.mxu2 }
 0x1b9   : > { %v967_v50 = vpop.f32.mrf.mxu3  ;;  %v782_v1 = vadd.f32 %v744_v25, %v555_v27  ;;  %v556_v47 = vpop.f32.mrf.mxu1  ;;  %v2619_v25 = vld [vmem:[%s2777_s27 + $0xf9] sm:$0xff] }
 0x1ba   : > { %v557_v7 = vadd.f32 %v556_v47, %v3551_v59 }
 0x1bb   : > { %v1005_v42 = vadd.f32 %v967_v50, %v782_v1 }
 0x1bc   : > { %v1191_v40 = vpop.f32.mrf.mxu0 }
 0x1bd   : > { %v3342_v51 = vadd.f32 %v1189_v32, %v1005_v42 }
 0x1c0   : > { %v746_v19 = vpop.f32.mrf.mxu2 }
 0x1c1   : > { %v969_v29 = vpop.f32.mrf.mxu3  ;;  %v783_v49 = vadd.f32 %v746_v19, %v557_v7  ;;  %v559_v9 = vpop.f32.mrf.mxu1 }
 0x1c2   : > { %v560_v34 = vadd.f32 %v559_v9, %v3552_v54  ;;  %v2621_v54 = vld [vmem:[%s2777_s27 + $0x111] sm:$0xff] }
 0x1c3   : > { %v1006_v5 = vadd.f32 %v969_v29, %v783_v49 }
 0x1c4   : > { %v1194_v61 = vpop.f32.mrf.mxu0  ;;  %2544 = vmatmul.msk.bf16.gmra.mxu1 %vm282_vm1, %v3549_v6  ;;  %v2618_v6 = vld [vmem:[%s2777_s27 + $0xf1] sm:$0xff] }
 0x1c5   : > { %2593 = vmatmul.msk.bf16.gmra.mxu2 %vm282_vm1, %v3076_v17  ;;  %v3352_v33 = vadd.f32 %v1191_v40, %v1006_v5  ;;  %v3553_v17 = vld [vmem:[#allocation11_spill] sm:$0xff]  ;;  %v1716_v60 = vpack.c.bf16 %v2619_v25, %v2618_v6 }
 0x1c6   : > { %2642 = vmatmul.msk.bf16.gmra.mxu3 %vm282_vm1, %v1715_v37 }
 0x1c7   : > { %2691 = vmatmul.msk.bf16.gmra.mxu0 %vm282_vm1, %v3094_v55 }
 0x1c8   : > { %v749_v35 = vpop.f32.mrf.mxu2 }
 0x1c9   : > { %v972_v23 = vpop.f32.mrf.mxu3  ;;  %v784_v56 = vadd.f32 %v749_v35, %v560_v34  ;;  %v561_v32 = vpop.f32.mrf.mxu1  ;;  %v3554_v34 = vld [vmem:[#allocation13_spill] sm:$0xff] }
 0x1ca   : > { %v562_v50 = vadd.f32 %v561_v32, %v3553_v17 }
 0x1cb   : > { %v1007_v57 = vadd.f32 %v972_v23, %v784_v56 }
 0x1cc   : > { %v1196_v12 = vpop.f32.mrf.mxu0 }
 0x1cd   : > { %v3357_v27 = vadd.f32 %v1194_v61, %v1007_v57  ;;  %v2620_v61 = vld [vmem:[%s2777_s27 + $0x109] sm:$0xff] }
 0x1ce   : > { %v1717_v57 = vpack.c.bf16 %v2621_v54, %v2620_v61 }
 0x1d0   : > { %v751_v1 = vpop.f32.mrf.mxu2 }
 0x1d1   : > { %v974_v47 = vpop.f32.mrf.mxu3  ;;  %v785_v42 = vadd.f32 %v751_v1, %v562_v50  ;;  %v1341_v40 = vpop.f32.mrf.mxu1 }
 0x1d2   : > { %v1421_v19 = vadd.f32 %v1341_v40, %v3089_v28 }
 0x1d3   : > { %v1008_v41 = vadd.f32 %v974_v47, %v785_v42 }
 0x1d4   : > { %v2008_v59 = vpop.f32.mrf.mxu0  ;;  %2545 = vmatmul.msk.bf16.gmra.mxu1 %vm282_vm1, %v3094_v55 }
 0x1d5   : > { %2594 = vmatmul.msk.bf16.gmra.mxu2 %vm282_vm1, %v3096_v31  ;;  %v3367_v7 = vadd.f32 %v1196_v12, %v1008_v41 }
 0x1d6   : > { %2643 = vmatmul.msk.bf16.gmra.mxu3 %vm282_vm1, %v1716_v60 }
 0x1d7   : > { %2692 = vmatmul.msk.bf16.gmra.mxu0 %vm282_vm1, %v3116_v8 }
 0x1d8   : > { %v1564_v29 = vpop.f32.mrf.mxu2 }
 0x1d9   : > { %v1786_v49 = vpop.f32.mrf.mxu3  ;;  %v1644_v9 = vadd.f32 %v1564_v29, %v1421_v19  ;;  %v1343_v37 = vpop.f32.mrf.mxu1  ;;  %v2622_v29 = vld [vmem:[%s2777_s27 + $0x121] sm:$0xff] }
 0x1da   : > { %v1422_v28 = vadd.f32 %v1343_v37, %v3554_v34 }
 0x1db   : > { %v1866_v5 = vadd.f32 %v1786_v49, %v1644_v9  ;;  %v2623_v49 = vld [vmem:[%s2777_s27 + $0x129] sm:$0xff] }
 0x1dc   : > { %v2010_v55 = vpop.f32.mrf.mxu0 }
 0x1dd   : > { %v2088_v31 = vadd.f32 %v2008_v59, %v1866_v5  ;;  %v3555_v5 = vld [vmem:[#allocation14_spill] sm:$0xff] }
 0x1df   : > { %2120 = vst [vmem:[%s3376_s14] sm:$0xff] %v2088_v31  ;;  %v2189_v17 = vmul.f32 %v2088_v31, %v2088_v31 }
 0x1e0   : > { %v1566_v35 = vpop.f32.mrf.mxu2 }
 0x1e1   : > { %v1788_v23 = vpop.f32.mrf.mxu3  ;;  %v1645_v56 = vadd.f32 %v1566_v35, %v1422_v28  ;;  %v1346_v32 = vpop.f32.mrf.mxu1  ;;  %v1718_v28 = vpack.c.bf16 %v2623_v49, %v2622_v29 }
 0x1e2   : > { %v1423_v47 = vadd.f32 %v1346_v32, %v3111_v26 }
 0x1e3   : > { %v1867_v12 = vadd.f32 %v1788_v23, %v1645_v56 }
 0x1e4   : > { %v2013_v6 = vpop.f32.mrf.mxu0  ;;  %2546 = vmatmul.msk.bf16.gmra.mxu1 %vm282_vm1, %v3116_v8 }
 0x1e5   : > { %v2089_v25 = vadd.f32 %v2010_v55, %v1867_v12  ;;  %2595 = vmatmul.msk.bf16.gmra.mxu2 %vm282_vm1, %v3118_v43 }
 0x1e6   : > { %2644 = vmatmul.msk.bf16.gmra.mxu3 %vm282_vm1, %v1717_v57 }
 0x1e7   : > { %2693 = vmatmul.msk.bf16.gmra.mxu0 %vm282_vm1, %v3138_v52  ;;  %2121 = vst [vmem:[%s3376_s14 + $0x8] sm:$0xff] %v2089_v25  ;;  %v2152_v50 = vadd.f32 %v2089_v25, %v2088_v31  ;;  %v2190_v1 = vmul.f32 %v2089_v25, %v2089_v25 }
 0x1e8   : > { %v1569_v42 = vpop.f32.mrf.mxu2 }
 0x1e9   : > { %v1791_v8 = vpop.f32.mrf.mxu3  ;;  %v2221_v40 = vadd.f32 %v2190_v1, %v2189_v17  ;;  %v1646_v60 = vadd.f32 %v1569_v42, %v1423_v47  ;;  %v1348_v41 = vpop.f32.mrf.mxu1  ;;  %v2624_v42 = vld [vmem:[%s2777_s27 + $0x139] sm:$0xff] }
 0x1ea   : > { %v1424_v55 = vadd.f32 %v1348_v41, %v3555_v5  ;;  %v3556_v41 = vld [vmem:[#allocation15_spill] sm:$0xff] }
 0x1eb   : > { %v1868_v43 = vadd.f32 %v1791_v8, %v1646_v60  ;;  %v2625_v8 = vld [vmem:[%s2777_s27 + $0x141] sm:$0xff] }
 0x1ec   : > { %v2015_v59 = vpop.f32.mrf.mxu0 }
 0x1ed   : > { %v2090_v19 = vadd.f32 %v2013_v6, %v1868_v43 }
 0x1ef   : > { %2122 = vst [vmem:[%s3376_s14 + $0x10] sm:$0xff] %v2090_v19  ;;  %v2153_v9 = vadd.f32 %v2152_v50, %v2090_v19  ;;  %v2191_v37 = vmul.f32 %v2090_v19, %v2090_v19 }
 0x1f0   : > { %v1571_v31 = vpop.f32.mrf.mxu2 }
 0x1f1   : > { %v1793_v61 = vpop.f32.mrf.mxu3  ;;  %v2222_v54 = vadd.f32 %v2221_v40, %v2191_v37  ;;  %v1647_v26 = vadd.f32 %v1571_v31, %v1424_v55  ;;  %v1351_v34 = vpop.f32.mrf.mxu1 }
 0x1f2   : > { %v1425_v12 = vadd.f32 %v1351_v34, %v3133_v3 }
 0x1f3   : > { %v1869_v35 = vadd.f32 %v1793_v61, %v1647_v26 }
 0x1f4   : > { %v2018_v23 = vpop.f32.mrf.mxu0  ;;  %2547 = vmatmul.msk.bf16.gmra.mxu1 %vm282_vm1, %v3138_v52 }
 0x1f5   : > { %v2091_v56 = vadd.f32 %v2015_v59, %v1869_v35  ;;  %2596 = vmatmul.msk.bf16.gmra.mxu2 %vm282_vm1, %v3140_v63 }
 0x1f6   : > { %2645 = vmatmul.msk.bf16.gmra.mxu3 %vm282_vm1, %v1718_v28 }
 0x1f7   : > { %2694 = vmatmul.msk.bf16.gmra.mxu0 %vm282_vm1, %v3160_v58  ;;  %2123 = vst [vmem:[%s3376_s14 + $0x18] sm:$0xff] %v2091_v56  ;;  %v2154_v32 = vadd.f32 %v2153_v9, %v2091_v56  ;;  %v2192_v57 = vmul.f32 %v2091_v56, %v2091_v56  ;;  %v1719_v9 = vpack.c.bf16 %v2625_v8, %v2624_v42 }
 0x1f8   : > { %v1574_v6 = vpop.f32.mrf.mxu2 }
 0x1f9   : > { %v1796_v25 = vpop.f32.mrf.mxu3  ;;  %v2223_v52 = vadd.f32 %v2222_v54, %v2192_v57  ;;  %v1648_v17 = vadd.f32 %v1574_v6, %v1425_v12  ;;  %v1353_v50 = vpop.f32.mrf.mxu1  ;;  %v3557_v54 = vld [vmem:[#allocation16_spill] sm:$0xff]  ;;  %v2627_v12 = vld [vmem:[%s2777_s27 + $0x159] sm:$0xff] }
 0x1fa   : > { %v1426_v43 = vadd.f32 %v1353_v50, %v3556_v41  ;;  %v2626_v57 = vld [vmem:[%s2777_s27 + $0x151] sm:$0xff] }
 0x1fb   : > { %v1870_v1 = vadd.f32 %v1796_v25, %v1648_v17  ;;  %v1720_v8 = vpack.c.bf16 %v2627_v12, %v2626_v57 }
 0x1fc   : > { %v2020_v47 = vpop.f32.mrf.mxu0 }
 0x1fd   : > { %v2092_v63 = vadd.f32 %v2018_v23, %v1870_v1 }
 0x1ff   : > { %2124 = vst [vmem:[%s3376_s14 + $0x20] sm:$0xff] %v2092_v63  ;;  %v2155_v40 = vadd.f32 %v2154_v32, %v2092_v63  ;;  %v2193_v60 = vmul.f32 %v2092_v63, %v2092_v63 }
 0x200   : > { %v1576_v59 = vpop.f32.mrf.mxu2 }
 0x201   : > { %v1798_v19 = vpop.f32.mrf.mxu3  ;;  %v2224_v29 = vadd.f32 %v2223_v52, %v2193_v60  ;;  %v1649_v3 = vadd.f32 %v1576_v59, %v1426_v43  ;;  %v1356_v49 = vpop.f32.mrf.mxu1  ;;  %v3558_v52 = vld [vmem:[#allocation17_spill] sm:$0xff] }
 0x202   : > { %v1427_v26 = vadd.f32 %v1356_v49, %v3557_v54 }
 0x203   : > { %v1871_v37 = vadd.f32 %v1798_v19, %v1649_v3 }
 0x204   : > { %v2023_v5 = vpop.f32.mrf.mxu0  ;;  %2548 = vmatmul.msk.bf16.gmra.mxu1 %vm282_vm1, %v3160_v58 }
 0x205   : > { %v2093_v55 = vadd.f32 %v2020_v47, %v1871_v37  ;;  %2597 = vmatmul.msk.bf16.gmra.mxu2 %vm282_vm1, %v3162_v18 }
 0x206   : > { %2646 = vmatmul.msk.bf16.gmra.mxu3 %vm282_vm1, %v1719_v9 }
 0x207   : > { %2695 = vmatmul.msk.bf16.gmra.mxu0 %vm282_vm1, %v3182_v46  ;;  %2125 = vst [vmem:[%s3376_s14 + $0x28] sm:$0xff] %v2093_v55  ;;  %v2156_v31 = vadd.f32 %v2155_v40, %v2093_v55  ;;  %v2194_v61 = vmul.f32 %v2093_v55, %v2093_v55  ;;  %v2628_v55 = vld [vmem:[%s2777_s27 + $0x169] sm:$0xff] }
 0x208   : > { %v1579_v34 = vpop.f32.mrf.mxu2 }
 0x209   : > { %v1801_v28 = vpop.f32.mrf.mxu3  ;;  %v2225_v58 = vadd.f32 %v2224_v29, %v2194_v61  ;;  %v1650_v35 = vadd.f32 %v1579_v34, %v1427_v26  ;;  %v1358_v23 = vpop.f32.mrf.mxu1  ;;  %v3559_v26 = vld [vmem:[#allocation18_spill] sm:$0xff] }
 0x20a   : > { %v1428_v17 = vadd.f32 %v1358_v23, %v3558_v52 }
 0x20b   : > { %v1872_v56 = vadd.f32 %v1801_v28, %v1650_v35 }
 0x20c   : > { %v2025_v32 = vpop.f32.mrf.mxu0 }
 0x20d   : > { %v2094_v18 = vadd.f32 %v2023_v5, %v1872_v56 }
 0x20f   : > { %2126 = vst [vmem:[%s3376_s14 + $0x30] sm:$0xff] %v2094_v18  ;;  %v2157_v6 = vadd.f32 %v2156_v31, %v2094_v18  ;;  %v2195_v25 = vmul.f32 %v2094_v18, %v2094_v18  ;;  %v2629_v31 = vld [vmem:[%s2777_s27 + $0x171] sm:$0xff] }
 0x210   : > { %v1581_v50 = vpop.f32.mrf.mxu2  ;;  %v1721_v56 = vpack.c.bf16 %v2629_v31, %v2628_v55 }
 0x211   : > { %v1803_v1 = vpop.f32.mrf.mxu3  ;;  %v2226_v47 = vadd.f32 %v2225_v58, %v2195_v25  ;;  %v1651_v63 = vadd.f32 %v1581_v50, %v1428_v17  ;;  %v1361_v42 = vpop.f32.mrf.mxu1 }
 0x212   : > { %v1429_v19 = vadd.f32 %v1361_v42, %v3176_v21  ;;  %v2533_v42 = vld [vmem:[%s2777_s27 + $0x172] sm:$0xff] }
 0x213   : > { %v1873_v40 = vadd.f32 %v1803_v1, %v1651_v63 }
 0x214   : > { %v2028_v60 = vpop.f32.mrf.mxu0  ;;  %2549 = vmatmul.msk.bf16.gmra.mxu1 %vm282_vm1, %v3182_v46 }
 0x215   : > { %v2095_v41 = vadd.f32 %v2025_v32, %v1873_v40  ;;  %2598 = vmatmul.msk.bf16.gmra.mxu2 %vm282_vm1, %v3184_v39  ;;  %v2582_v40 = vld [vmem:[%s2777_s27 + $0x188] sm:$0xff] }
 0x216   : > { %2647 = vmatmul.msk.bf16.gmra.mxu3 %vm282_vm1, %v1720_v8  ;;  %v2581_v8 = vld [vmem:[%s2777_s27 + $0x180] sm:$0xff] }
 0x217   : > { %2696 = vmatmul.msk.bf16.gmra.mxu0 %vm282_vm1, %v3204_v48  ;;  %2127 = vst [vmem:[%s3376_s14 + $0x38] sm:$0xff] %v2095_v41  ;;  %v2158_v43 = vadd.f32 %v2157_v6, %v2095_v41  ;;  %v2196_v59 = vmul.f32 %v2095_v41, %v2095_v41  ;;  %v2631_v41 = vld [vmem:[%s2777_s27 + $0x189] sm:$0xff]  ;;  %v1500_v55 = vpack.c.bf16 %v2582_v40, %v2581_v8 }
 0x218   : > { %v1584_v29 = vpop.f32.mrf.mxu2 }
 0x219   : > { %v1806_v3 = vpop.f32.mrf.mxu3  ;;  %v2227_v46 = vadd.f32 %v2226_v47, %v2196_v59  ;;  %v1652_v49 = vadd.f32 %v1584_v29, %v1429_v19  ;;  %v1363_v9 = vpop.f32.mrf.mxu1  ;;  %v2679_v29 = vld [vmem:[%s2777_s27 + $0x182] sm:$0xff] }
 0x21a   : > { %v1430_v34 = vadd.f32 %v1363_v9, %v3559_v26 }
 0x21b   : > { %v1874_v37 = vadd.f32 %v1806_v3, %v1652_v49  ;;  %v2680_v3 = vld [vmem:[%s2777_s27 + $0x18a] sm:$0xff] }
 0x21c   : > { %v2030_v5 = vpop.f32.mrf.mxu0 }
 0x21d   : > { %v2096_v39 = vadd.f32 %v2028_v60, %v1874_v37  ;;  %v2630_v60 = vld [vmem:[%s2777_s27 + $0x181] sm:$0xff] }
 0x21e   : > { %v1722_v31 = vpack.c.bf16 %v2631_v41, %v2630_v60 }
 0x21f   : > { %2128 = vst [vmem:[%s3376_s14 + $0x40] sm:$0xff] %v2096_v39  ;;  %v2159_v61 = vadd.f32 %v2158_v43, %v2096_v39  ;;  %v2197_v54 = vmul.f32 %v2096_v39, %v2096_v39 }
 0x220   : > { %v1586_v28 = vpop.f32.mrf.mxu2 }
 0x221   : > { %v1808_v58 = vpop.f32.mrf.mxu3  ;;  %v2228_v35 = vadd.f32 %v2227_v46, %v2197_v54  ;;  %v1653_v21 = vadd.f32 %v1586_v28, %v1430_v34  ;;  %v1366_v23 = vpop.f32.mrf.mxu1 }
 0x223   : > { %v1875_v32 = vadd.f32 %v1808_v58, %v1653_v21 }
 0x224   : > { %v2033_v18 = vpop.f32.mrf.mxu0  ;;  %2550 = vmatmul.msk.bf16.gmra.mxu1 %vm282_vm1, %v3204_v48  ;;  %v1431_v48 = vadd.f32 %v1366_v23, %v3198_v38  ;;  %v3560_v38 = vld [vmem:[#allocation19_spill] sm:$0xff] }
 0x225   : > { %v2097_v57 = vadd.f32 %v2030_v5, %v1875_v32  ;;  %2599 = vmatmul.msk.bf16.gmra.mxu2 %vm282_vm1, %v3206_v30 }
 0x226   : > { %2648 = vmatmul.msk.bf16.gmra.mxu3 %vm282_vm1, %v1721_v56 }
 0x227   : > { %2697 = vmatmul.msk.bf16.gmra.mxu0 %vm282_vm1, %v3228_v44  ;;  %2129 = vst [vmem:[%s3376_s14 + $0x48] sm:$0xff] %v2097_v57  ;;  %v2160_v12 = vadd.f32 %v2159_v61, %v2097_v57  ;;  %v2198_v6 = vmul.f32 %v2097_v57, %v2097_v57  ;;  %v2532_v44 = vld [vmem:[%s2777_s27 + $0x16a] sm:$0xff]  ;;  %v1944_v61 = vpack.c.bf16 %v2680_v3, %v2679_v29 }
 0x228   : > { %v1589_v25 = vpop.f32.mrf.mxu2  ;;  %v1277_v9 = vpack.c.bf16 %v2533_v42, %v2532_v44 }
 0x229   : > { %v1811_v52 = vpop.f32.mrf.mxu3  ;;  %v2229_v17 = vadd.f32 %v2228_v35, %v2198_v6  ;;  %v1654_v30 = vadd.f32 %v1589_v25, %v1431_v48  ;;  %v1368_v50 = vpop.f32.mrf.mxu1  ;;  %v2583_v48 = vld [vmem:[%s2777_s27 + $0x198] sm:$0xff]  ;;  %v2584_v25 = vld [vmem:[%s2777_s27 + $0x1a0] sm:$0xff] }
 0x22a   : > { %v1432_v19 = vadd.f32 %v1368_v50, %v3560_v38  ;;  %v1501_v60 = vpack.c.bf16 %v2584_v25, %v2583_v48 }
 0x22b   : > { %v1876_v1 = vadd.f32 %v1811_v52, %v1654_v30  ;;  %v2632_v52 = vld [vmem:[%s2777_s27 + $0x199] sm:$0xff] }
 0x22c   : > { %v2035_v47 = vpop.f32.mrf.mxu0 }
 0x22d   : > { %v2098_v63 = vadd.f32 %v2033_v18, %v1876_v1 }
 0x22f   : > { %2130 = vst [vmem:[%s3376_s14 + $0x50] sm:$0xff] %v2098_v63  ;;  %v2161_v43 = vadd.f32 %v2160_v12, %v2098_v63  ;;  %v2199_v59 = vmul.f32 %v2098_v63, %v2098_v63 }
 0x230   : > { %v1591_v46 = vpop.f32.mrf.mxu2 }
 0x231   : > { %v1813_v49 = vpop.f32.mrf.mxu3  ;;  %v2230_v37 = vadd.f32 %v2229_v17, %v2199_v59  ;;  %v1655_v5 = vadd.f32 %v1591_v46, %v1432_v19  ;;  %v1371_v39 = vpop.f32.mrf.mxu1  ;;  %v2633_v17 = vld [vmem:[%s2777_s27 + $0x1a1] sm:$0xff] }
 0x232   : > { %v1433_v35 = vadd.f32 %v1371_v39, %v3220_v22  ;;  %v2681_v22 = vld [vmem:[%s2777_s27 + $0x19a] sm:$0xff]  ;;  %v1723_v41 = vpack.c.bf16 %v2633_v17, %v2632_v52 }
 0x233   : > { %v1877_v54 = vadd.f32 %v1813_v49, %v1655_v5 }
 0x234   : > { %v2038_v26 = vpop.f32.mrf.mxu0  ;;  %2551 = vmatmul.msk.bf16.gmra.mxu1 %vm282_vm1, %v1277_v9 }
 0x235   : > { %v2099_v34 = vadd.f32 %v2035_v47, %v1877_v54  ;;  %2600 = vmatmul.msk.bf16.gmra.mxu2 %vm282_vm1, %v1500_v55  ;;  %v2682_v47 = vld [vmem:[%s2777_s27 + $0x1a2] sm:$0xff] }
 0x236   : > { %2649 = vmatmul.msk.bf16.gmra.mxu3 %vm282_vm1, %v1722_v31 }
 0x237   : > { %2698 = vmatmul.msk.bf16.gmra.mxu0 %vm282_vm1, %v1944_v61  ;;  %2131 = vst [vmem:[%s3376_s14 + $0x58] sm:$0xff] %v2099_v34  ;;  %v2162_v28 = vadd.f32 %v2161_v43, %v2099_v34  ;;  %v2200_v58 = vmul.f32 %v2099_v34, %v2099_v34  ;;  %v1945_v43 = vpack.c.bf16 %v2682_v47, %v2681_v22 }
 0x238   : > { %v1594_v21 = vpop.f32.mrf.mxu2 }
 0x239   : > { %v1816_v23 = vpop.f32.mrf.mxu3  ;;  %v2231_v56 = vadd.f32 %v2230_v37, %v2200_v58  ;;  %v1656_v32 = vadd.f32 %v1594_v21, %v1433_v35  ;;  %v1373_v18 = vpop.f32.mrf.mxu1 }
 0x23a   : > { %v1434_v1 = vadd.f32 %v1373_v18, %v3235_v15 }
 0x23b   : > { %v1878_v57 = vadd.f32 %v1816_v23, %v1656_v32 }
 0x23c   : > { %v2040_v12 = vpop.f32.mrf.mxu0 }
 0x23d   : > { %v2100_v6 = vadd.f32 %v2038_v26, %v1878_v57 }
 0x23f   : > { %2132 = vst [vmem:[%s3376_s14 + $0x60] sm:$0xff] %v2100_v6  ;;  %v2163_v30 = vadd.f32 %v2162_v28, %v2100_v6  ;;  %v2201_v50 = vmul.f32 %v2100_v6, %v2100_v6 }
 0x240   : > { %v1596_v63 = vpop.f32.mrf.mxu2 }
 0x241   : > { %v1818_v44 = vpop.f32.mrf.mxu3  ;;  %v2232_v42 = vadd.f32 %v2231_v56, %v2201_v50  ;;  %v1657_v8 = vadd.f32 %v1596_v63, %v1434_v1  ;;  %v1376_v40 = vpop.f32.mrf.mxu1 }
 0x242   : > { %v1435_v3 = vadd.f32 %v1376_v40, %v3239_v2 }
 0x243   : > { %v1879_v59 = vadd.f32 %v1818_v44, %v1657_v8 }
 0x244   : > { %v2043_v38 = vpop.f32.mrf.mxu0  ;;  %2552 = vmatmul.msk.bf16.gmra.mxu1 %vm282_vm1, %v1944_v61 }
 0x245   : > { %v2101_v19 = vadd.f32 %v2040_v12, %v1879_v59  ;;  %2601 = vmatmul.msk.bf16.gmra.mxu2 %vm282_vm1, %v1501_v60 }
 0x246   : > { %2650 = vmatmul.msk.bf16.gmra.mxu3 %vm282_vm1, %v1723_v41 }
 0x247   : > { %2699 = vmatmul.msk.bf16.gmra.mxu0 %vm282_vm1, %v1945_v43  ;;  %2133 = vst [vmem:[%s3376_s14 + $0x68] sm:$0xff] %v2101_v19  ;;  %v2164_v15 = vadd.f32 %v2163_v30, %v2101_v19  ;;  %v2202_v29 = vmul.f32 %v2101_v19, %v2101_v19 }
 0x248   : > { %v1599_v46 = vpop.f32.mrf.mxu2 }
 0x249   : > { %v1821_v49 = vpop.f32.mrf.mxu3  ;;  %v2233_v9 = vadd.f32 %v2232_v42, %v2202_v29  ;;  %v1658_v37 = vadd.f32 %v1599_v46, %v1435_v3  ;;  %v1378_v5 = vpop.f32.mrf.mxu1 }
 0x24a   : > { %v1436_v26 = vadd.f32 %v1378_v5, %v3248_v62 }
 0x24b   : > { %v1880_v39 = vadd.f32 %v1821_v49, %v1658_v37 }
 0x24c   : > { %v2045_v55 = vpop.f32.mrf.mxu0 }
 0x24d   : > { %v2102_v31 = vadd.f32 %v2043_v38, %v1880_v39 }
 0x24f   : > { %2134 = vst [vmem:[%s3376_s14 + $0x70] sm:$0xff] %v2102_v31  ;;  %v2165_v61 = vadd.f32 %v2164_v15, %v2102_v31  ;;  %v2203_v54 = vmul.f32 %v2102_v31, %v2102_v31 }
 0x250   : > { %v1601_v34 = vpop.f32.mrf.mxu2 }
 0x251   : > { %v1823_v28 = vpop.f32.mrf.mxu3  ;;  %v2234_v58 = vadd.f32 %v2233_v9, %v2203_v54  ;;  %v1659_v35 = vadd.f32 %v1601_v34, %v1436_v26  ;;  %v1381_v21 = vpop.f32.mrf.mxu1 }
 0x252   : > { %v1437_v57 = vadd.f32 %v1381_v21, %v3253_v16 }
 0x253   : > { %v1881_v2 = vadd.f32 %v1823_v28, %v1659_v35 }
 0x254   : > { %v2048_v23 = vpop.f32.mrf.mxu0 }
 0x255   : > { %v2103_v56 = vadd.f32 %v2045_v55, %v1881_v2 }
 0x257   : > { %2135 = vst [vmem:[%s3376_s14 + $0x78] sm:$0xff] %v2103_v56  ;;  %v2166_v32 = vadd.f32 %v2165_v61, %v2103_v56  ;;  %v2204_v18 = vmul.f32 %v2103_v56, %v2103_v56 }
 0x258   : > { %v1604_v12 = vpop.f32.mrf.mxu2 }
 0x259   : > { %v1826_v6 = vpop.f32.mrf.mxu3  ;;  %v2235_v48 = vadd.f32 %v2234_v58, %v2204_v18  ;;  %v1660_v25 = vadd.f32 %v1604_v12, %v1437_v57  ;;  %v1383_v52 = vpop.f32.mrf.mxu1 }
 0x25a   : > { %v1438_v22 = vadd.f32 %v1383_v52, %v3262_v13 }
 0x25b   : > { %v1882_v62 = vadd.f32 %v1826_v6, %v1660_v25 }
 0x25c   : > { %v2050_v17 = vpop.f32.mrf.mxu0 }
 0x25d   : > { %v2104_v30 = vadd.f32 %v2048_v23, %v1882_v62 }
 0x25f   : > { %2136 = vst [vmem:[%s3376_s14 + $0x80] sm:$0xff] %v2104_v30  ;;  %v2167_v50 = vadd.f32 %v2166_v32, %v2104_v30  ;;  %v2205_v1 = vmul.f32 %v2104_v30, %v2104_v30 }
 0x260   : > { %v1606_v47 = vpop.f32.mrf.mxu2 }
 0x261   : > { %v1828_v63 = vpop.f32.mrf.mxu3  ;;  %v2236_v44 = vadd.f32 %v2235_v48, %v2205_v1  ;;  %v1661_v42 = vadd.f32 %v1606_v47, %v1438_v22  ;;  %v1386_v8 = vpop.f32.mrf.mxu1 }
 0x262   : > { %v1439_v59 = vadd.f32 %v1386_v8, %v3267_v24 }
 0x263   : > { %v1883_v16 = vadd.f32 %v1828_v63, %v1661_v42 }
 0x264   : > { %v2053_v40 = vpop.f32.mrf.mxu0 }
 0x265   : > { %v2105_v60 = vadd.f32 %v2050_v17, %v1883_v16 }
 0x267   : > { %2137 = vst [vmem:[%s3376_s14 + $0x88] sm:$0xff] %v2105_v60  ;;  %v2168_v41 = vadd.f32 %v2167_v50, %v2105_v60  ;;  %v2206_v43 = vmul.f32 %v2105_v60, %v2105_v60 }
 0x268   : > { %v1609_v38 = vpop.f32.mrf.mxu2 }
 0x269   : > { %v1831_v19 = vpop.f32.mrf.mxu3  ;;  %v2237_v15 = vadd.f32 %v2236_v44, %v2206_v43  ;;  %v1662_v29 = vadd.f32 %v1609_v38, %v1439_v59  ;;  %v1388_v3 = vpop.f32.mrf.mxu1 }
 0x26a   : > { %v1440_v5 = vadd.f32 %v1388_v3, %v3277_v14 }
 0x26b   : > { %v1884_v13 = vadd.f32 %v1831_v19, %v1662_v29 }
 0x26c   : > { %v2055_v46 = vpop.f32.mrf.mxu0 }
 0x26d   : > { %v2106_v49 = vadd.f32 %v2053_v40, %v1884_v13 }
 0x26f   : > { %2138 = vst [vmem:[%s3376_s14 + $0x90] sm:$0xff] %v2106_v49  ;;  %v2169_v9 = vadd.f32 %v2168_v41, %v2106_v49  ;;  %v2207_v37 = vmul.f32 %v2106_v49, %v2106_v49 }
 0x270   : > { %v1611_v39 = vpop.f32.mrf.mxu2 }
 0x271   : > { %v1833_v55 = vpop.f32.mrf.mxu3  ;;  %v2238_v31 = vadd.f32 %v2237_v15, %v2207_v37  ;;  %v1663_v61 = vadd.f32 %v1611_v39, %v1440_v5  ;;  %v1391_v54 = vpop.f32.mrf.mxu1 }
 0x272   : > { %v1441_v35 = vadd.f32 %v1391_v54, %v3282_v4 }
 0x273   : > { %v1885_v24 = vadd.f32 %v1833_v55, %v1663_v61 }
 0x274   : > { %v2058_v26 = vpop.f32.mrf.mxu0 }
 0x275   : > { %v2107_v34 = vadd.f32 %v2055_v46, %v1885_v24 }
 0x277   : > { %2139 = vst [vmem:[%s3376_s14 + $0x98] sm:$0xff] %v2107_v34  ;;  %v2170_v28 = vadd.f32 %v2169_v9, %v2107_v34  ;;  %v2208_v58 = vmul.f32 %v2107_v34, %v2107_v34 }
 0x278   : > { %v1614_v21 = vpop.f32.mrf.mxu2 }
 0x279   : > { %v1836_v2 = vpop.f32.mrf.mxu3  ;;  %v2239_v23 = vadd.f32 %v2238_v31, %v2208_v58  ;;  %v1664_v56 = vadd.f32 %v1614_v21, %v1441_v35  ;;  %v1393_v32 = vpop.f32.mrf.mxu1 }
 0x27a   : > { %v1442_v48 = vadd.f32 %v1393_v32, %v3292_v36 }
 0x27b   : > { %v1886_v14 = vadd.f32 %v1836_v2, %v1664_v56 }
 0x27c   : > { %v2060_v18 = vpop.f32.mrf.mxu0 }
 0x27d   : > { %v2108_v57 = vadd.f32 %v2058_v26, %v1886_v14 }
 0x27f   : > { %2140 = vst [vmem:[%s3376_s14 + $0xa0] sm:$0xff] %v2108_v57  ;;  %v2171_v12 = vadd.f32 %v2170_v28, %v2108_v57  ;;  %v2209_v6 = vmul.f32 %v2108_v57, %v2108_v57 }
 0x280   : > { %v1616_v25 = vpop.f32.mrf.mxu2 }
 0x281   : > { %v1838_v52 = vpop.f32.mrf.mxu3  ;;  %v2240_v62 = vadd.f32 %v2239_v23, %v2209_v6  ;;  %v1665_v17 = vadd.f32 %v1616_v25, %v1442_v48  ;;  %v1396_v30 = vpop.f32.mrf.mxu1 }
 0x282   : > { %v1443_v63 = vadd.f32 %v1396_v30, %v3297_v10 }
 0x283   : > { %v1887_v4 = vadd.f32 %v1838_v52, %v1665_v17 }
 0x284   : > { %v2063_v50 = vpop.f32.mrf.mxu0 }
 0x285   : > { %v2109_v1 = vadd.f32 %v2060_v18, %v1887_v4 }
 0x287   : > { %2141 = vst [vmem:[%s3376_s14 + $0xa8] sm:$0xff] %v2109_v1  ;;  %v2172_v22 = vadd.f32 %v2171_v12, %v2109_v1  ;;  %v2210_v47 = vmul.f32 %v2109_v1, %v2109_v1 }
 0x288   : > { %v1619_v44 = vpop.f32.mrf.mxu2 }
 0x289   : > { %v1841_v42 = vpop.f32.mrf.mxu3  ;;  %v2241_v8 = vadd.f32 %v2240_v62, %v2210_v47  ;;  %v1666_v16 = vadd.f32 %v1619_v44, %v1443_v63  ;;  %v1398_v40 = vpop.f32.mrf.mxu1 }
 0x28a   : > { %v1444_v38 = vadd.f32 %v1398_v40, %v3307_v53 }
 0x28b   : > { %v1888_v36 = vadd.f32 %v1841_v42, %v1666_v16 }
 0x28c   : > { %v2065_v60 = vpop.f32.mrf.mxu0 }
 0x28d   : > { %v2110_v41 = vadd.f32 %v2063_v50, %v1888_v36 }
 0x28f   : > { %2142 = vst [vmem:[%s3376_s14 + $0xb0] sm:$0xff] %v2110_v41  ;;  %v2173_v43 = vadd.f32 %v2172_v22, %v2110_v41  ;;  %v2211_v59 = vmul.f32 %v2110_v41, %v2110_v41 }
 0x290   : > { %v1621_v19 = vpop.f32.mrf.mxu2 }
 0x291   : > { %v1843_v15 = vpop.f32.mrf.mxu3  ;;  %v2242_v29 = vadd.f32 %v2241_v8, %v2211_v59  ;;  %v1667_v3 = vadd.f32 %v1621_v19, %v1444_v38  ;;  %v1401_v13 = vpop.f32.mrf.mxu1 }
 0x292   : > { %v1445_v5 = vadd.f32 %v1401_v13, %v3312_v20 }
 0x293   : > { %v1889_v10 = vadd.f32 %v1843_v15, %v1667_v3 }
 0x294   : > { %v2068_v46 = vpop.f32.mrf.mxu0 }
 0x295   : > { %v2111_v49 = vadd.f32 %v2065_v60, %v1889_v10 }
 0x297   : > { %2143 = vst [vmem:[%s3376_s14 + $0xb8] sm:$0xff] %v2111_v49  ;;  %v2174_v9 = vadd.f32 %v2173_v43, %v2111_v49  ;;  %v2212_v37 = vmul.f32 %v2111_v49, %v2111_v49 }
 0x298   : > { %v1624_v39 = vpop.f32.mrf.mxu2 }
 0x299   : > { %v1846_v55 = vpop.f32.mrf.mxu3  ;;  %v2243_v31 = vadd.f32 %v2242_v29, %v2212_v37  ;;  %v1668_v61 = vadd.f32 %v1624_v39, %v1445_v5  ;;  %v1403_v54 = vpop.f32.mrf.mxu1 }
 0x29a   : > { %v1446_v58 = vadd.f32 %v1403_v54, %v3322_v11 }
 0x29b   : > { %v1890_v53 = vadd.f32 %v1846_v55, %v1668_v61 }
 0x29c   : > { %v2070_v24 = vpop.f32.mrf.mxu0 }
 0x29d   : > { %v2112_v26 = vadd.f32 %v2068_v46, %v1890_v53 }
 0x29f   : > { %2144 = vst [vmem:[%s3376_s14 + $0xc0] sm:$0xff] %v2112_v26  ;;  %v2175_v34 = vadd.f32 %v2174_v9, %v2112_v26  ;;  %v2213_v28 = vmul.f32 %v2112_v26, %v2112_v26 }
 0x2a0   : > { %v1626_v35 = vpop.f32.mrf.mxu2 }
 0x2a1   : > { %v1848_v21 = vpop.f32.mrf.mxu3  ;;  %v2244_v2 = vadd.f32 %v2243_v31, %v2213_v28  ;;  %v1669_v23 = vadd.f32 %v1626_v35, %v1446_v58  ;;  %v1406_v56 = vpop.f32.mrf.mxu1 }
 0x2a2   : > { %v1447_v12 = vadd.f32 %v1406_v56, %v3327_v45 }
 0x2a3   : > { %v1891_v20 = vadd.f32 %v1848_v21, %v1669_v23 }
 0x2a4   : > { %v2073_v32 = vpop.f32.mrf.mxu0 }
 0x2a5   : > { %v2113_v14 = vadd.f32 %v2070_v24, %v1891_v20 }
 0x2a7   : > { %2145 = vst [vmem:[%s3376_s14 + $0xc8] sm:$0xff] %v2113_v14  ;;  %v2176_v18 = vadd.f32 %v2175_v34, %v2113_v14  ;;  %v2214_v57 = vmul.f32 %v2113_v14, %v2113_v14 }
 0x2a8   : > { %v1629_v6 = vpop.f32.mrf.mxu2 }
 0x2a9   : > { %v1851_v48 = vpop.f32.mrf.mxu3  ;;  %v2245_v25 = vadd.f32 %v2244_v2, %v2214_v57  ;;  %v1670_v52 = vadd.f32 %v1629_v6, %v1447_v12  ;;  %v1408_v62 = vpop.f32.mrf.mxu1 }
 0x2aa   : > { %v1448_v1 = vadd.f32 %v1408_v62, %v3337_v0 }
 0x2ab   : > { %v1892_v11 = vadd.f32 %v1851_v48, %v1670_v52 }
 0x2ac   : > { %v2075_v17 = vpop.f32.mrf.mxu0 }
 0x2ad   : > { %v2114_v30 = vadd.f32 %v2073_v32, %v1892_v11 }
 0x2af   : > { %2146 = vst [vmem:[%s3376_s14 + $0xd0] sm:$0xff] %v2114_v30  ;;  %v2177_v4 = vadd.f32 %v2176_v18, %v2114_v30  ;;  %v2215_v50 = vmul.f32 %v2114_v30, %v2114_v30 }
 0x2b0   : > { %v1631_v22 = vpop.f32.mrf.mxu2 }
 0x2b1   : > { %v1853_v47 = vpop.f32.mrf.mxu3  ;;  %v2246_v63 = vadd.f32 %v2245_v25, %v2215_v50  ;;  %v1671_v44 = vadd.f32 %v1631_v22, %v1448_v1  ;;  %v1411_v45 = vpop.f32.mrf.mxu1 }
 0x2b2   : > { %v1449_v60 = vadd.f32 %v1411_v45, %v3342_v51 }
 0x2b3   : > { %v1893_v42 = vadd.f32 %v1853_v47, %v1671_v44 }
 0x2b4   : > { %v2078_v16 = vpop.f32.mrf.mxu0 }
 0x2b5   : > { %v2115_v8 = vadd.f32 %v2075_v17, %v1893_v42 }
 0x2b7   : > { %2147 = vst [vmem:[%s3376_s14 + $0xd8] sm:$0xff] %v2115_v8  ;;  %v2178_v40 = vadd.f32 %v2177_v4, %v2115_v8  ;;  %v2216_v36 = vmul.f32 %v2115_v8, %v2115_v8 }
 0x2b8   : > { %v1634_v41 = vpop.f32.mrf.mxu2 }
 0x2b9   : > { %v1856_v43 = vpop.f32.mrf.mxu3  ;;  %v2247_v59 = vadd.f32 %v2246_v63, %v2216_v36  ;;  %v1672_v38 = vadd.f32 %v1634_v41, %v1449_v60  ;;  %v1413_v0 = vpop.f32.mrf.mxu1 }
 0x2ba   : > { %v1450_v13 = vadd.f32 %v1413_v0, %v3352_v33 }
 0x2bb   : > { %v1894_v19 = vadd.f32 %v1856_v43, %v1672_v38 }
 0x2bc   : > { %v2080_v10 = vpop.f32.mrf.mxu0 }
 0x2bd   : > { %v2116_v15 = vadd.f32 %v2078_v16, %v1894_v19 }
 0x2bf   : > { %2148 = vst [vmem:[%s3376_s14 + $0xe0] sm:$0xff] %v2116_v15  ;;  %v2179_v29 = vadd.f32 %v2178_v40, %v2116_v15  ;;  %v2217_v3 = vmul.f32 %v2116_v15, %v2116_v15 }
 0x2c0   : > { %v1636_v46 = vpop.f32.mrf.mxu2 }
 0x2c1   : > { %v1858_v49 = vpop.f32.mrf.mxu3  ;;  %v2248_v9 = vadd.f32 %v2247_v59, %v2217_v3  ;;  %v1673_v37 = vadd.f32 %v1636_v46, %v1450_v13  ;;  %v1416_v51 = vpop.f32.mrf.mxu1 }
 0x2c2   : > { %v1451_v61 = vadd.f32 %v1416_v51, %v3357_v27 }
 0x2c3   : > { %v1895_v5 = vadd.f32 %v1858_v49, %v1673_v37 }
 0x2c4   : > { %v2083_v33 = vpop.f32.mrf.mxu0 }
 0x2c5   : > { %v2117_v39 = vadd.f32 %v2080_v10, %v1895_v5 }
 0x2c7   : > { %2149 = vst [vmem:[%s3376_s14 + $0xe8] sm:$0xff] %v2117_v39  ;;  %v2180_v55 = vadd.f32 %v2179_v29, %v2117_v39  ;;  %v2218_v31 = vmul.f32 %v2117_v39, %v2117_v39 }
 0x2c8   : > { %v1639_v54 = vpop.f32.mrf.mxu2 }
 0x2c9   : > { %v1861_v53 = vpop.f32.mrf.mxu3  ;;  %v2249_v24 = vadd.f32 %v2248_v9, %v2218_v31  ;;  %v1674_v26 = vadd.f32 %v1639_v54, %v1451_v61  ;;  %v1418_v28 = vpop.f32.mrf.mxu1 }
 0x2ca   : > { %v1452_v2 = vadd.f32 %v1418_v28, %v3367_v7 }
 0x2cb   : > { %v1896_v34 = vadd.f32 %v1861_v53, %v1674_v26 }
 0x2cc   : > { %v2085_v27 = vpop.f32.mrf.mxu0 }
 0x2cd   : > { %v2118_v58 = vadd.f32 %v2083_v33, %v1896_v34 }
 0x2cf   : > { %2150 = vst [vmem:[%s3376_s14 + $0xf0] sm:$0xff] %v2118_v58  ;;  %v2181_v35 = vadd.f32 %v2180_v55, %v2118_v58  ;;  %v2219_v21 = vmul.f32 %v2118_v58, %v2118_v58 }
 0x2d0   : > { %v1641_v23 = vpop.f32.mrf.mxu2 }
 0x2d1   : > { %v2250_v56 = vadd.f32 %v2249_v24, %v2219_v21  ;;  %v1675_v20 = vadd.f32 %v1641_v23, %v1452_v2  ;;  %v1863_v32 = vpop.f32.mrf.mxu3 }
 0x2d3   : > { %v1897_v14 = vadd.f32 %v1863_v32, %v1675_v20 }
 0x2d5   : > { %v2119_v18 = vadd.f32 %v2085_v27, %v1897_v14 }
 0x2d7   : > { %2151 = vst [vmem:[%s3376_s14 + $0xf8] sm:$0xff] %v2119_v18  ;;  %v2182_v57 = vadd.f32 %v2181_v35, %v2119_v18  ;;  %v2220_v12 = vmul.f32 %v2119_v18, %v2119_v18 }
 0x2d9   : > { %v2183_v6 = vrot.slane %v2182_v57, 4  ;;  %v2251_v48 = vadd.f32 %v2250_v56, %v2220_v12 }
 0x2db   : > { %v2184_v25 = vadd.f32 %v2183_v6, %v2182_v57  ;;  %v2252_v52 = vrot.slane %v2251_v48, 4 }
 0x2dd   : > { %v2185_v62 = vrot.slane %v2184_v25, 2  ;;  %v2253_v11 = vadd.f32 %v2252_v52, %v2251_v48 }
 0x2df   : > { %v2186_v17 = vadd.f32 %v2185_v62, %v2184_v25  ;;  %v2254_v30 = vrot.slane %v2253_v11, 2 }
 0x2e1   : > { %v2187_v7 = vrot.slane %v2186_v17, 1  ;;  %v2255_v4 = vadd.f32 %v2254_v30, %v2253_v11 }
 0x2e3   : > { %v2256_v50 = vrot.slane %v2255_v4, 1  ;;  %v2188_v1 = vadd.f32 %v2187_v7, %v2186_v17 }
 0x2e5   : > { %v2257_v22 = vadd.f32 %v2256_v50, %v2255_v4 }
 0x2e7   : > { %v2259_v47 = vsel %vm2258_vm2, %v2188_v1, %v2257_v22 }
 0x2e8   : > { %2260 = vst [vmem:[%s181_s18] sm:$0x3] %v2259_v47 }
 0x2e9 PF: > { %s14_s12 = sadd.s32 1, %s2721_s12  }
 0x2ea   : > { %p11_p4 = scmp.ge.s32.totalorder %s14_s12, 4  }
 0x2ec   :  { %13 = sbr.rel (!%p11_p4) target bundleno = 1 (0x1), region = 80 }

// kernel: resblock_forward.4
= control target key start
LH: loop header
LB: loop body
LE: loop exit
PB: predicated region body
PF: predicated region fallthrough
CT: control target
= control target key end

     0   :  { %s3789_s27 = smov 0   ;;  %s4664_s0 = inlined_call_operand.vmem [shape: f32[2,16,16,128], index: 0, kind: input, shape index: {}]   ;;  %s4665_s1 = inlined_call_operand.vmem [shape: f32[1,128], index: 1, kind: input, shape index: {}]   ;;  %s4666_s2 = inlined_call_operand.vmem [shape: f32[1,128], index: 2, kind: input, shape index: {}]   ;;  %s4667_s3 = inlined_call_operand.vmem [shape: bf16[3,3,128,128], index: 3, kind: input, shape index: {}]   ;;  %s4668_s4 = inlined_call_operand.vmem [shape: f32[2,16,16,4], index: 4, kind: input, shape index: {}]   ;;  %s4669_s5 = inlined_call_operand.vmem [shape: bf16[4,128], index: 5, kind: input, shape index: {}]   ;;  %s4670_s6 = inlined_call_operand.vmem [shape: f32[2,16,16,128], index: 6, kind: output, shape index: {0}]   ;;  %s4671_s7 = inlined_call_operand.vmem [shape: f32[2,2,128], index: 7, kind: output, shape index: {1}]   ;;  %s4672_s8 = inlined_call_operand.vmem [shape: f32[2,2,128], index: 8, kind: output, shape index: {2}]  }
   0x1 LB: > { %s3182_s28 = sadd.s32 4294967295, %s3740_s27   ;;  %p3186_p0 = scmp.ge.s32.totalorder %s3740_s27, 1  ;;  %s3740_s27 = sphi %s3789_s27, %s19_s27  }
   0x2   : > { %p277_p1 = scmp.lt.s32.totalorder %s3740_s27, 3 }
   0x4   : > { %p278_p2 = pnand %p3186_p0, %p277_p1 }
   0x6   : > { %281 = sbr.rel (%p278_p2) target bundleno = 850 (0x352), region = 44 }
   0xb   : > { %v3647_v0 = vld [vmem:[%s4667_s3 + $0x78] sm:$0xff]  ;;  %p324_p3 = scmp.lt.s32.totalorder %s3182_s28, 1  ;;  %v3742_v2 = vmov 0.0   ;;  %v3646_v3 = vld [vmem:[%s4667_s3 + $0x70] sm:$0xff]  ;;  %v3645_v5 = vld [vmem:[%s4667_s3 + $0x68] sm:$0xff]  ;;  %v3743_v40 = vmov 0.0|0.0  }
   0xc   : > { %v3639_v1 = vld [vmem:[%s4667_s3 + $0x38] sm:$0xff]  ;;  %508 = vst [vmem:[#allocation2 + $0xc0] sm:$0xff] %v3742_v2  ;;  %3704 = vmatpush.bf16.msra.mxu2 %v3647_v0  ;;  %v3638_v4 = vld [vmem:[%s4667_s3 + $0x30] sm:$0xff]  ;;  %748 = vmatpush.bf16.msra.mxu0 %v3647_v0  ;;  %v3637_v6 = vld [vmem:[%s4667_s3 + $0x28] sm:$0xff]  ;;  %vm2852_vm0 = vcmask 1041408   ;;  %vm2803_vm1 = vcmask 31744  }
   0xd   : > { %885 = vmatpush.bf16.msra.mxu1 %v3639_v1  ;;  %s4688_s28 = smov (!%p324_p3, %s3182_s28), 1  ;;  %509 = vst [vmem:[#allocation2 + $0xc8] sm:$0xff] %v3742_v2  ;;  %3712 = vmatpush.bf16.msra.mxu3 %v3639_v1  ;;  %v3833_v7 = vld [vmem:[%s4665_s1] ss:$0 sm:$0xff]  ;;  %v3643_v19 = vld [vmem:[%s4667_s3 + $0x58] sm:$0xff]  ;;  %v3642_v21 = vld [vmem:[%s4667_s3 + $0x50] sm:$0xff] }
   0xe   : > { %510 = vst [vmem:[#allocation2 + $0xd0] sm:$0x3] %v3742_v2  ;;  %s3818_s17 = sshll.u32 %s4688_s28, 8  ;;  %v3844_v12 = vld [vmem:[%s4666_s2] ss:$0 sm:$0xff]  ;;  %v3635_v20 = vld [vmem:[%s4667_s3 + $0x18] sm:$0xff] }
   0xf   : > { %484 = vst [vmem:[#allocation2] sm:$0xff] %v3742_v2  ;;  %s3828_s22 = scalar_lea.vmem %s4664_s0, %s3818_s17  ;;  %v3644_v15 = vld [vmem:[%s4667_s3 + $0x60] sm:$0xff]  ;;  %v3634_v22 = vld [vmem:[%s4667_s3 + $0x10] sm:$0xff]  ;;  %v3641_v23 = vld [vmem:[%s4667_s3 + $0x48] sm:$0xff]  ;;  %s4412_s21 = scalar_lea.vmem %s4668_s4, %s3818_s17  ;;  %vm2751_vm2 = vcmask 1040384  }
  0x10   : > { %485 = vst [vmem:[#allocation2 + $0x8] sm:$0xff] %v3742_v2  ;;  %3705 = vmatpush.bf16.msra.mxu2 %v3646_v3  ;;  %v362_v8 = vld [vmem:[%s3828_s22 + $0x70] sm:$0xff]  ;;  %v363_v9 = vld [vmem:[%s3828_s22 + $0x78] sm:$0xff]  ;;  %749 = vmatpush.bf16.msra.mxu0 %v3646_v3  ;;  %v3636_v16 = vld [vmem:[%s4667_s3 + $0x20] sm:$0xff]  ;;  %s4507_s25 = scalar_lea.vmem %s4670_s6, %s3818_s17  ;;  %s3193_s17 = sshll.u32 %s4688_s28, 1 }
  0x11   : > { %886 = vmatpush.bf16.msra.mxu1 %v3638_v4  ;;  %486 = vst [vmem:[#allocation2 + $0x10] sm:$0x3] %v3742_v2  ;;  %3713 = vmatpush.bf16.msra.mxu3 %v3638_v4  ;;  %v398_v10 = vmul.f32 %v3833_v7, %v362_v8  ;;  %v399_v11 = vmul.f32 %v3833_v7, %v363_v9  ;;  %v3633_v24 = vld [vmem:[%s4667_s3 + $0x8] sm:$0xff]  ;;  %v3640_v25 = vld [vmem:[%s4667_s3 + $0x40] sm:$0xff]  ;;  %v3655_v31 = vld [vmem:[%s4667_s3 + $0xb8] sm:$0xff]  ;;  %s346_s30 = scalar_lea.vmem %s4672_s8, %s3193_s17  ;;  %s342_s10 = scalar_lea.vmem %s4671_s7, %s3193_s17 }
  0x12   : > { %487 = vst [vmem:[#allocation2 + $0x18] sm:$0xff] %v3742_v2  ;;  %v3632_v26 = vld [vmem:[%s4667_s3] sm:$0xff]  ;;  %v3663_v32 = vld [vmem:[%s4667_s3 + $0xf8] sm:$0xff]  ;;  %v365_v39 = vld [vmem:[%s3828_s22 + $0x88] sm:$0xff] }
  0x13   : > { %488 = vst [vmem:[#allocation2 + $0x20] sm:$0xff] %v3742_v2  ;;  %v434_v13 = vadd.f32 %v3844_v12, %v398_v10  ;;  %v435_v14 = vadd.f32 %v3844_v12, %v399_v11  ;;  %v3671_v36 = vld [vmem:[%s4667_s3 + $0x138] sm:$0xff]  ;;  %v364_v38 = vld [vmem:[%s3828_s22 + $0x80] sm:$0xff]  ;;  %v349_v42 = vld [vmem:[%s3828_s22 + $0x8] sm:$0xff]  ;;  %v401_v44 = vmul.f32 %v3833_v7, %v365_v39 }
  0x14   : > { %489 = vst [vmem:[#allocation2 + $0x28] sm:$0x3] %v3742_v2  ;;  %3706 = vmatpush.bf16.msra.mxu2 %v3645_v5  ;;  %750 = vmatpush.bf16.msra.mxu0 %v3645_v5  ;;  %v3679_v37 = vld [vmem:[%s4667_s3 + $0x178] sm:$0xff]  ;;  %v348_v41 = vld [vmem:[%s3828_s22] sm:$0xff]  ;;  %v400_v43 = vmul.f32 %v3833_v7, %v364_v38  ;;  %v385_v46 = vmul.f32 %v3833_v7, %v349_v42  ;;  %v3654_v47 = vld [vmem:[%s4667_s3 + $0xb0] sm:$0xff] }
  0x15   : > { %887 = vmatpush.bf16.msra.mxu1 %v3637_v6  ;;  %490 = vst [vmem:[#allocation2 + $0x30] sm:$0xff] %v3742_v2  ;;  %3714 = vmatpush.bf16.msra.mxu3 %v3637_v6  ;;  %v466_v17 = vmax.f32 %v434_v13, 0.0  ;;  %v467_v18 = vmax.f32 %v435_v14, 0.0  ;;  %v384_v45 = vmul.f32 %v3833_v7, %v348_v41  ;;  %v3662_v48 = vld [vmem:[%s4667_s3 + $0xf0] sm:$0xff]  ;;  %v3940_v51 = vadd.f32 %v3844_v12, %v401_v44  ;;  %v367_v62 = vld [vmem:[%s3828_s22 + $0x98] sm:$0xff]  ;;  %v368_v8 = vld [vmem:[%s3828_s22 + $0xa0] sm:$0xff] }
  0x16   : > { %491 = vst [vmem:[#allocation2 + $0x38] sm:$0xff] %v3742_v2  ;;  %v3670_v49 = vld [vmem:[%s4667_s3 + $0x130] sm:$0xff]  ;;  %v436_v50 = vadd.f32 %v3844_v12, %v400_v43  ;;  %v3950_v54 = vadd.f32 %v3844_v12, %v385_v46  ;;  %v351_v1 = vld [vmem:[%s3828_s22 + $0x18] sm:$0xff]  ;;  %v403_v3 = vmul.f32 %v3833_v7, %v367_v62  ;;  %v369_v9 = vld [vmem:[%s3828_s22 + $0xa8] sm:$0xff] }
  0x17   : > { %492 = vst [vmem:[#allocation2 + $0x40] sm:$0x3] %v3742_v2  ;;  %v635_v27 = vld [vmem:[#allocation2 + $0x1] sm:$0xff]  ;;  %v675_v33 = vpack.c.bf16 %v467_v18, %v466_v17  ;;  %v3678_v52 = vld [vmem:[%s4667_s3 + $0x170] sm:$0xff]  ;;  %v3947_v53 = vadd.f32 %v3844_v12, %v384_v45  ;;  %v469_v56 = vmax.f32 %v3940_v51, 0.0  ;;  %v387_v5 = vmul.f32 %v3833_v7, %v351_v1  ;;  %v371_v44 = vld [vmem:[%s3828_s22 + $0xb8] sm:$0xff] }
  0x18   : > { %553 = vst [vmem:[#allocation2 + $0xc1] sm:$0xff] %v466_v17  ;;  %3707 = vmatpush.bf16.msra.mxu2 %v3644_v15  ;;  %751 = vmatpush.bf16.msra.mxu0 %v3644_v15  ;;  %v636_v30 = vld [vmem:[#allocation2 + $0x9] sm:$0xff]  ;;  %v468_v55 = vmax.f32 %v436_v50, 0.0  ;;  %v453_v58 = vmax.f32 %v3950_v54, 0.0  ;;  %v352_v10 = vld [vmem:[%s3828_s22 + $0x20] sm:$0xff]  ;;  %v439_v11 = vadd.f32 %v3844_v12, %v403_v3  ;;  %v405_v17 = vmul.f32 %v3833_v7, %v369_v9  ;;  %v355_v54 = vld [vmem:[%s3828_s22 + $0x38] sm:$0xff] }
  0x19   : > { %888 = vmatpush.bf16.msra.mxu1 %v3636_v16  ;;  %554 = vst [vmem:[#allocation2 + $0xc9] sm:$0xff] %v467_v18  ;;  %3715 = vmatpush.bf16.msra.mxu3 %v3636_v16  ;;  %v667_v35 = vpack.c.bf16 %v636_v30, %v635_v27  ;;  %v452_v57 = vmax.f32 %v3947_v53, 0.0  ;;  %v366_v61 = vld [vmem:[%s3828_s22 + $0x90] sm:$0xff]  ;;  %v3653_v13 = vld [vmem:[%s4667_s3 + $0xa8] sm:$0xff]  ;;  %v404_v16 = vmul.f32 %v3833_v7, %v368_v8  ;;  %v3652_v45 = vld [vmem:[%s4667_s3 + $0xa0] sm:$0xff] }
  0x1a   : > { %493 = vst [vmem:[#allocation2 + $0x48] sm:$0xff] %v3742_v2  ;;  %v676_v59 = vpack.c.bf16 %v469_v56, %v468_v55  ;;  %v350_v63 = vld [vmem:[%s3828_s22 + $0x10] sm:$0xff]  ;;  %v402_v0 = vmul.f32 %v3833_v7, %v366_v61  ;;  %v3661_v14 = vld [vmem:[%s4667_s3 + $0xe8] sm:$0xff]  ;;  %v441_v27 = vadd.f32 %v3844_v12, %v405_v17  ;;  %v3660_v46 = vld [vmem:[%s4667_s3 + $0xe0] sm:$0xff] }
  0x1b   : > { %494 = vst [vmem:[#allocation2 + $0x50] sm:$0xff] %v3742_v2  ;;  %v3961_v60 = vpack.c.bf16 %v453_v58, %v452_v57  ;;  %v386_v4 = vmul.f32 %v3833_v7, %v350_v63  ;;  %v3669_v15 = vld [vmem:[%s4667_s3 + $0x128] sm:$0xff]  ;;  %v370_v43 = vld [vmem:[%s3828_s22 + $0xb0] sm:$0xff]  ;;  %v3676_v50 = vld [vmem:[%s4667_s3 + $0x160] sm:$0xff] }
  0x1c   : > { %495 = vst [vmem:[#allocation2 + $0x58] sm:$0x3] %v3742_v2  ;;  %3708 = vmatpush.bf16.msra.mxu2 %v3643_v19  ;;  %752 = vmatpush.bf16.msra.mxu0 %v3643_v19  ;;  %v438_v6 = vadd.f32 %v3844_v12, %v402_v0  ;;  %v3677_v19 = vld [vmem:[%s4667_s3 + $0x168] sm:$0xff]  ;;  %v354_v53 = vld [vmem:[%s3828_s22 + $0x30] sm:$0xff] }
  0x1d   : > { %889 = vmatpush.bf16.msra.mxu1 %v3635_v20  ;;  %496 = vst [vmem:[#allocation2 + $0x60] sm:$0xff] %v3742_v2  ;;  %3716 = vmatpush.bf16.msra.mxu3 %v3635_v20  ;;  %v422_v18 = vadd.f32 %v3844_v12, %v386_v4  ;;  %v353_v20 = vld [vmem:[%s3828_s22 + $0x28] sm:$0xff] }
  0x1e   : > { %497 = vst [vmem:[#allocation2 + $0x68] sm:$0xff] %v3742_v2 }
  0x1f   : > { %498 = vst [vmem:[#allocation2 + $0x70] sm:$0x3] %v3742_v2  ;;  %v587_v28 = vld [vmem:[#allocation2 + $0xc0] sm:$0xff] }
  0x20   : > { %499 = vst [vmem:[#allocation2 + $0x78] sm:$0xff] %v3742_v2  ;;  %3709 = vmatpush.bf16.msra.mxu2 %v3642_v21  ;;  %753 = vmatpush.bf16.msra.mxu0 %v3642_v21  ;;  %v588_v29 = vld [vmem:[#allocation2 + $0xc8] sm:$0xff]  ;;  %v388_v21 = vmul.f32 %v3833_v7, %v352_v10  ;;  %v372_v10 = vld [vmem:[%s3828_s22 + $0xc0] sm:$0xff] }
  0x21   : > { %890 = vmatpush.bf16.msra.mxu1 %v3634_v22  ;;  %500 = vst [vmem:[#allocation2 + $0x80] sm:$0xff] %v3742_v2  ;;  %3717 = vmatpush.bf16.msra.mxu3 %v3634_v22  ;;  %v611_v34 = vpack.c.bf16 %v588_v29, %v587_v28  ;;  %v423_v22 = vadd.f32 %v3844_v12, %v387_v5  ;;  %v454_v28 = vmax.f32 %v422_v18, 0.0 }
  0x22   : > { %501 = vst [vmem:[#allocation2 + $0x88] sm:$0x3] %v3742_v2 }
  0x23   : > { %502 = vst [vmem:[#allocation2 + $0x90] sm:$0xff] %v3742_v2  ;;  %v455_v29 = vmax.f32 %v423_v22, 0.0 }
  0x24   : > { %503 = vst [vmem:[#allocation2 + $0x98] sm:$0xff] %v3742_v2  ;;  %3710 = vmatpush.bf16.msra.mxu2 %v3641_v23  ;;  %754 = vmatpush.bf16.msra.mxu0 %v3641_v23  ;;  %v389_v23 = vmul.f32 %v3833_v7, %v353_v20  ;;  %v3675_v20 = vld [vmem:[%s4667_s3 + $0x158] sm:$0xff] }
  0x25   : > { %891 = vmatpush.bf16.msra.mxu1 %v3633_v24  ;;  %504 = vst [vmem:[#allocation2 + $0xa0] sm:$0x3] %v3742_v2  ;;  %3718 = vmatpush.bf16.msra.mxu3 %v3633_v24  ;;  %v470_v24 = vmax.f32 %v438_v6, 0.0 }
  0x26   : > { %505 = vst [vmem:[#allocation2 + $0xa8] sm:$0xff] %v3742_v2  ;;  %v425_v30 = vadd.f32 %v3844_v12, %v389_v23  ;;  %v357_v23 = vld [vmem:[%s3828_s22 + $0x48] sm:$0xff] }
  0x27   : > { %506 = vst [vmem:[#allocation2 + $0xb0] sm:$0xff] %v3742_v2 }
  0x28   : > { %507 = vst [vmem:[#allocation2 + $0xb8] sm:$0x3] %v3742_v2  ;;  %3711 = vmatpush.bf16.msra.mxu2 %v3640_v25  ;;  %755 = vmatpush.bf16.msra.mxu0 %v3640_v25  ;;  %v440_v25 = vadd.f32 %v3844_v12, %v404_v16  ;;  %v408_v16 = vmul.f32 %v3833_v7, %v372_v10  ;;  %v377_v10 = vld [vmem:[%s3828_s22 + $0xe8] sm:$0xff] }
  0x29   : > { %892 = vmatpush.bf16.msra.mxu1 %v3632_v26  ;;  %511 = vst [vmem:[#allocation2 + $0xd8] sm:$0xff] %v3742_v2  ;;  %3719 = vmatpush.bf16.msra.mxu3 %v3632_v26  ;;  %v471_v26 = vmax.f32 %v439_v11, 0.0  ;;  %v373_v11 = vld [vmem:[%s3828_s22 + $0xc8] sm:$0xff] }
  0x2a   : > { %512 = vst [vmem:[#allocation2 + $0xe0] sm:$0xff] %v3742_v2  ;;  %v409_v17 = vmul.f32 %v3833_v7, %v373_v11  ;;  %v3649_v11 = vld [vmem:[%s4667_s3 + $0x88] sm:$0xff] }
  0x2b   : > { %513 = vst [vmem:[#allocation2 + $0xe8] sm:$0x3] %v3742_v2  ;;  %796 = vmatmul.bf16.vlgmr.msra.gmra.mxu2 %v675_v33  ;;  %756 = vmatmul.bf16.vlgmr.msra.gmra.mxu0 %v667_v35  ;;  %v4010_v33 = vpack.c.bf16 %v455_v29, %v454_v28 }
  0x2c   : > { %1087 = vmatpush.bf16.msrb.mxu2 %v3655_v31  ;;  %514 = vst [vmem:[#allocation2 + $0xf0] sm:$0xff] %v3742_v2  ;;  %893 = vmatmul.bf16.vlgmr.msra.gmra.mxu1 %v3743_v40  ;;  %v677_v31 = vpack.c.bf16 %v471_v26, %v470_v24  ;;  %v445_v22 = vadd.f32 %v3844_v12, %v409_v17  ;;  %v3673_v17 = vld [vmem:[%s4667_s3 + $0x148] sm:$0xff] }
  0x2d   : > { %1321 = vmatpush.bf16.msrb.mxu3 %v3663_v32  ;;  %515 = vst [vmem:[#allocation2 + $0xf8] sm:$0xff] %v3742_v2  ;;  %1555 = vmatpush.bf16.msrb.mxu0 %v3671_v36  ;;  %v472_v32 = vmax.f32 %v440_v25, 0.0 }
  0x2e   : > { %933 = vmatmul.bf16.vlgmr.msra.gmra.mxu3 %v611_v34  ;;  %516 = vst [vmem:[#allocation2 + $0x100] sm:$0x3] %v3742_v2  ;;  %1789 = vmatpush.bf16.msrb.mxu1 %v3679_v37  ;;  %v473_v34 = vmax.f32 %v441_v27, 0.0  ;;  %v457_v37 = vmax.f32 %v425_v30, 0.0  ;;  %v477_v27 = vmax.f32 %v445_v22, 0.0 }
  0x2f   : > { %517 = vst [vmem:[#allocation2 + $0x108] sm:$0xff] %v3742_v2 }
  0x30   : > { %518 = vst [vmem:[#allocation2 + $0x110] sm:$0xff] %v3742_v2  ;;  %1088 = vmatpush.bf16.msrb.mxu2 %v3654_v47  ;;  %v406_v47 = vmul.f32 %v3833_v7, %v370_v43  ;;  %v678_v0 = vpack.c.bf16 %v473_v34, %v472_v32  ;;  %v3658_v43 = vld [vmem:[%s4667_s3 + $0xd0] sm:$0xff] }
  0x31   : > { %519 = vst [vmem:[#allocation2 + $0x118] sm:$0x3] %v3742_v2  ;;  %1322 = vmatpush.bf16.msrb.mxu3 %v3662_v48  ;;  %1556 = vmatpush.bf16.msrb.mxu0 %v3670_v49  ;;  %v407_v48 = vmul.f32 %v3833_v7, %v371_v44  ;;  %v3668_v49 = vld [vmem:[%s4667_s3 + $0x120] sm:$0xff] }
  0x32   : > { %520 = vst [vmem:[#allocation2 + $0x120] sm:$0xff] %v3742_v2  ;;  %1790 = vmatpush.bf16.msrb.mxu1 %v3678_v52  ;;  %v442_v51 = vadd.f32 %v3844_v12, %v406_v47  ;;  %v3674_v47 = vld [vmem:[%s4667_s3 + $0x150] sm:$0xff] }
  0x33   : > { %521 = vst [vmem:[#allocation2 + $0x128] sm:$0xff] %v3742_v2  ;;  %v443_v52 = vadd.f32 %v3844_v12, %v407_v48  ;;  %v358_v48 = vld [vmem:[%s3828_s22 + $0x50] sm:$0xff] }
  0x34   : > { %522 = vst [vmem:[#allocation2 + $0x130] sm:$0x3] %v3742_v2  ;;  %1089 = vmatpush.bf16.msrb.mxu2 %v3653_v13  ;;  %v356_v13 = vld [vmem:[%s3828_s22 + $0x40] sm:$0xff] }
  0x35   : > { %523 = vst [vmem:[#allocation2 + $0x138] sm:$0xff] %v3742_v2  ;;  %1323 = vmatpush.bf16.msrb.mxu3 %v3661_v14  ;;  %1557 = vmatpush.bf16.msrb.mxu0 %v3669_v15  ;;  %v3651_v14 = vld [vmem:[%s4667_s3 + $0x98] sm:$0xff]  ;;  %v392_v18 = vmul.f32 %v3833_v7, %v356_v13  ;;  %v3657_v13 = vld [vmem:[%s4667_s3 + $0xc8] sm:$0xff] }
  0x36   : > { %524 = vst [vmem:[#allocation2 + $0x140] sm:$0xff] %v3742_v2  ;;  %1791 = vmatpush.bf16.msrb.mxu1 %v3677_v19  ;;  %v3659_v15 = vld [vmem:[%s4667_s3 + $0xd8] sm:$0xff] }
  0x37   : > { %525 = vst [vmem:[#allocation2 + $0x148] sm:$0x3] %v3742_v2  ;;  %v3667_v19 = vld [vmem:[%s4667_s3 + $0x118] sm:$0xff]  ;;  %v428_v25 = vadd.f32 %v3844_v12, %v392_v18  ;;  %v360_v18 = vld [vmem:[%s3828_s22 + $0x60] sm:$0xff] }
  0x38   : > { %526 = vst [vmem:[#allocation2 + $0x150] sm:$0xff] %v3742_v2  ;;  %1090 = vmatpush.bf16.msrb.mxu2 %v3652_v45  ;;  %v396_v22 = vmul.f32 %v3833_v7, %v360_v18 }
  0x39   : > { %527 = vst [vmem:[#allocation2 + $0x158] sm:$0xff] %v3742_v2  ;;  %1324 = vmatpush.bf16.msrb.mxu3 %v3660_v46  ;;  %1558 = vmatpush.bf16.msrb.mxu0 %v3668_v49  ;;  %v3666_v46 = vld [vmem:[%s4667_s3 + $0x110] sm:$0xff] }
  0x3a   : > { %528 = vst [vmem:[#allocation2 + $0x160] sm:$0x3] %v3742_v2  ;;  %1792 = vmatpush.bf16.msrb.mxu1 %v3676_v50 }
  0x3b   : > { %529 = vst [vmem:[#allocation2 + $0x168] sm:$0xff] %v3742_v2  ;;  %801 = vmatmul.bf16.gmra.mxu2 %v676_v59  ;;  %761 = vmatmul.bf16.gmra.mxu0 %v3961_v60 }
  0x3c   : > { %530 = vst [vmem:[#allocation2 + $0x170] sm:$0xff] %v3742_v2  ;;  %1091 = vmatpush.bf16.msrb.mxu2 %v3651_v14 }
  0x3d   : > { %531 = vst [vmem:[#allocation2 + $0x178] sm:$0x3] %v3742_v2  ;;  %1325 = vmatpush.bf16.msrb.mxu3 %v3659_v15  ;;  %1559 = vmatpush.bf16.msrb.mxu0 %v3667_v19  ;;  %v413_v15 = vmul.f32 %v3833_v7, %v377_v10 }
  0x3e   : > { %532 = vst [vmem:[#allocation2 + $0x180] sm:$0xff] %v3742_v2  ;;  %1793 = vmatpush.bf16.msrb.mxu1 %v3675_v20 }
  0x3f   : > { %533 = vst [vmem:[#allocation2 + $0x188] sm:$0xff] %v3742_v2  ;;  %v449_v20 = vadd.f32 %v3844_v12, %v413_v15 }
  0x40   : > { %534 = vst [vmem:[#allocation2 + $0x190] sm:$0x3] %v3742_v2 }
  0x41   : > { %535 = vst [vmem:[#allocation2 + $0x198] sm:$0xff] %v3742_v2  ;;  %1326 = vmatpush.bf16.msrb.mxu3 %v3658_v43  ;;  %1560 = vmatpush.bf16.msrb.mxu0 %v3666_v46 }
  0x42   : > { %536 = vst [vmem:[#allocation2 + $0x1a0] sm:$0xff] %v3742_v2  ;;  %1794 = vmatpush.bf16.msrb.mxu1 %v3674_v47 }
  0x43   : > { %537 = vst [vmem:[#allocation2 + $0x1a8] sm:$0x3] %v3742_v2  ;;  %v424_v2 = vadd.f32 %v3844_v12, %v388_v21  ;;  %v444_v21 = vadd.f32 %v3844_v12, %v408_v16  ;;  %v3665_v16 = vld [vmem:[%s4667_s3 + $0x108] sm:$0xff] }
  0x44   : > { %555 = vst [vmem:[#allocation2 + $0xd9] sm:$0xff] %v468_v55  ;;  %v390_v55 = vmul.f32 %v3833_v7, %v354_v53 }
  0x45   : > { %556 = vst [vmem:[#allocation2 + $0xe1] sm:$0xff] %v469_v56  ;;  %v456_v35 = vmax.f32 %v424_v2, 0.0  ;;  %v391_v56 = vmul.f32 %v3833_v7, %v355_v54  ;;  %v460_v2 = vmax.f32 %v428_v25, 0.0  ;;  %1327 = vmatpush.bf16.msrb.mxu3 %v3657_v13  ;;  %1561 = vmatpush.bf16.msrb.mxu0 %v3665_v16  ;;  %v481_v25 = vmax.f32 %v449_v20, 0.0 }
  0x46   : > { %539 = vst [vmem:[#allocation2 + $0x19] sm:$0xff] %v452_v57  ;;  %v474_v57 = vmax.f32 %v442_v51, 0.0  ;;  %v426_v59 = vadd.f32 %v3844_v12, %v390_v55  ;;  %v359_v51 = vld [vmem:[%s3828_s22 + $0x58] sm:$0xff]  ;;  %1795 = vmatpush.bf16.msrb.mxu1 %v3673_v17 }
  0x47   : > { %540 = vst [vmem:[#allocation2 + $0x21] sm:$0xff] %v453_v58  ;;  %v475_v58 = vmax.f32 %v443_v52, 0.0  ;;  %v427_v61 = vadd.f32 %v3844_v12, %v391_v56  ;;  %v4040_v4 = vpack.c.bf16 %v457_v37, %v456_v35  ;;  %v394_v52 = vmul.f32 %v3833_v7, %v358_v48 }
  0x48   : > { %557 = vst [vmem:[#allocation2 + $0xf1] sm:$0xff] %v470_v24  ;;  %v458_v1 = vmax.f32 %v426_v59, 0.0  ;;  %v393_v24 = vmul.f32 %v3833_v7, %v357_v23  ;;  %v395_v53 = vmul.f32 %v3833_v7, %v359_v51  ;;  %v3687_v51 = vld [vmem:[%s4667_s3 + $0x1b8] sm:$0xff] }
  0x49   : > { %558 = vst [vmem:[#allocation2 + $0xf9] sm:$0xff] %v471_v26  ;;  %v459_v3 = vmax.f32 %v427_v61, 0.0  ;;  %v476_v26 = vmax.f32 %v444_v21, 0.0  ;;  %v430_v56 = vadd.f32 %v3844_v12, %v394_v52  ;;  %v361_v21 = vld [vmem:[%s3828_s22 + $0x68] sm:$0xff]  ;;  %v3695_v52 = vld [vmem:[%s4667_s3 + $0x1f8] sm:$0xff] }
  0x4a   : > { %541 = vst [vmem:[#allocation2 + $0x31] sm:$0xff] %v454_v28  ;;  %v429_v28 = vadd.f32 %v3844_v12, %v393_v24  ;;  %v397_v23 = vmul.f32 %v3833_v7, %v361_v21  ;;  %v3686_v21 = vld [vmem:[%s4667_s3 + $0x1b0] sm:$0xff] }
  0x4b   : > { %v589_v36 = vld [vmem:[#allocation2 + $0xd8] sm:$0xff]  ;;  %542 = vst [vmem:[#allocation2 + $0x39] sm:$0xff] %v455_v29  ;;  %806 = vmatmul.bf16.gmra.mxu2 %v677_v31  ;;  %766 = vmatmul.bf16.gmra.mxu0 %v4010_v33  ;;  %v679_v31 = vpack.c.bf16 %v475_v58, %v474_v57 }
  0x4c   : > { %v590_v38 = vld [vmem:[#allocation2 + $0xe0] sm:$0xff]  ;;  %559 = vst [vmem:[#allocation2 + $0x109] sm:$0xff] %v472_v32  ;;  %v461_v32 = vmax.f32 %v429_v28, 0.0 }
  0x4d   : > { %v573_v39 = vld [vmem:[#allocation2 + $0x18] sm:$0xff]  ;;  %v612_v40 = vpack.c.bf16 %v590_v38, %v589_v36  ;;  %560 = vst [vmem:[#allocation2 + $0x111] sm:$0xff] %v473_v34  ;;  %v4070_v34 = vpack.c.bf16 %v459_v3, %v458_v1 }
  0x4e   : > { %v574_v41 = vld [vmem:[#allocation2 + $0x20] sm:$0xff]  ;;  %543 = vst [vmem:[#allocation2 + $0x49] sm:$0xff] %v456_v35 }
  0x4f   : > { %v4013_v42 = vpack.c.bf16 %v574_v41, %v573_v39  ;;  %938 = vmatmul.bf16.gmra.mxu3 %v612_v40  ;;  %544 = vst [vmem:[#allocation2 + $0x51] sm:$0xff] %v457_v37  ;;  %v591_v62 = vld [vmem:[#allocation2 + $0xf0] sm:$0xff]  ;;  %v375_v40 = vld [vmem:[%s3828_s22 + $0xd8] sm:$0xff]  ;;  %v1677_v17 = vld [vmem:[#allocation2 + $0x22] sm:$0xff] }
  0x50   : > { %561 = vst [vmem:[#allocation2 + $0x121] sm:$0xff] %v474_v57  ;;  %v592_v63 = vld [vmem:[#allocation2 + $0xf8] sm:$0xff]  ;;  %v374_v39 = vld [vmem:[%s3828_s22 + $0xd0] sm:$0xff]  ;;  %v411_v45 = vmul.f32 %v3833_v7, %v375_v40  ;;  %v431_v57 = vadd.f32 %v3844_v12, %v395_v53  ;;  %v3664_v40 = vld [vmem:[%s4667_s3 + $0x100] sm:$0xff] }
  0x51   : > { %898 = vmatmul.bf16.gmra.mxu1 %v4013_v42  ;;  %562 = vst [vmem:[#allocation2 + $0x129] sm:$0xff] %v475_v58  ;;  %v575_v5 = vld [vmem:[#allocation2 + $0x30] sm:$0xff]  ;;  %v613_v8 = vpack.c.bf16 %v592_v63, %v591_v62  ;;  %v410_v44 = vmul.f32 %v3833_v7, %v374_v39  ;;  %v462_v58 = vmax.f32 %v430_v56, 0.0  ;;  %v680_v62 = vpack.c.bf16 %v477_v27, %v476_v26  ;;  %v3656_v39 = vld [vmem:[%s4667_s3 + $0xc0] sm:$0xff]  ;;  %v3703_v53 = vld [vmem:[%s4667_s3 + $0x238] sm:$0xff] }
  0x52   : > { %v576_v6 = vld [vmem:[#allocation2 + $0x38] sm:$0xff]  ;;  %545 = vst [vmem:[#allocation2 + $0x61] sm:$0xff] %v458_v1  ;;  %v3650_v41 = vld [vmem:[%s4667_s3 + $0x90] sm:$0xff]  ;;  %v447_v50 = vadd.f32 %v3844_v12, %v411_v45  ;;  %v463_v63 = vmax.f32 %v431_v57, 0.0  ;;  %1328 = vmatpush.bf16.msrb.mxu3 %v3656_v39  ;;  %1562 = vmatpush.bf16.msrb.mxu0 %v3664_v40  ;;  %v974_v56 = vld [vmem:[#allocation2 + $0x2] sm:$0xff] }
  0x53   : > { %546 = vst [vmem:[#allocation2 + $0x69] sm:$0xff] %v459_v3  ;;  %v4042_v9 = vpack.c.bf16 %v576_v6, %v575_v5  ;;  %v593_v29 = vld [vmem:[#allocation2 + $0x108] sm:$0xff]  ;;  %1092 = vmatpush.bf16.msrb.mxu2 %v3650_v41  ;;  %v446_v49 = vadd.f32 %v3844_v12, %v410_v44  ;;  %v3672_v41 = vld [vmem:[%s4667_s3 + $0x140] sm:$0xff] }
  0x54   : > { %563 = vst [vmem:[#allocation2 + $0x139] sm:$0xff] %v476_v26  ;;  %v594_v30 = vld [vmem:[#allocation2 + $0x110] sm:$0xff]  ;;  %v479_v55 = vmax.f32 %v447_v50, 0.0  ;;  %v432_v26 = vadd.f32 %v3844_v12, %v396_v22  ;;  %1796 = vmatpush.bf16.msrb.mxu1 %v3672_v41  ;;  %v1676_v16 = vld [vmem:[#allocation2 + $0x1a] sm:$0xff] }
  0x55   : > { %564 = vst [vmem:[#allocation2 + $0x141] sm:$0xff] %v477_v27  ;;  %v577_v35 = vld [vmem:[#allocation2 + $0x48] sm:$0xff]  ;;  %v614_v37 = vpack.c.bf16 %v594_v30, %v593_v29  ;;  %v478_v54 = vmax.f32 %v446_v49, 0.0  ;;  %v433_v27 = vadd.f32 %v3844_v12, %v397_v23  ;;  %v3694_v22 = vld [vmem:[%s4667_s3 + $0x1f0] sm:$0xff] }
  0x56   : > { %547 = vst [vmem:[#allocation2 + $0x79] sm:$0xff] %v460_v2  ;;  %v578_v36 = vld [vmem:[#allocation2 + $0x50] sm:$0xff]  ;;  %v464_v28 = vmax.f32 %v432_v26, 0.0  ;;  %2258 = vmatpush.bf16.msra.mxu3 %v3695_v52  ;;  %2492 = vmatpush.bf16.msra.mxu0 %v3703_v53  ;;  %v1679_v26 = vld [vmem:[#allocation2 + $0x3a] sm:$0xff]  ;;  %v3693_v52 = vld [vmem:[%s4667_s3 + $0x1e8] sm:$0xff] }
  0x57   : > { %548 = vst [vmem:[#allocation2 + $0x81] sm:$0xff] %v461_v32  ;;  %v4072_v38 = vpack.c.bf16 %v578_v36, %v577_v35  ;;  %v595_v59 = vld [vmem:[#allocation2 + $0x120] sm:$0xff]  ;;  %1093 = vmatpush.bf16.msrb.mxu2 %v3649_v11  ;;  %v681_v30 = vpack.c.bf16 %v479_v55, %v478_v54  ;;  %v975_v57 = vld [vmem:[#allocation2 + $0xa] sm:$0xff]  ;;  %v1681_v41 = vld [vmem:[#allocation2 + $0x52] sm:$0xff] }
  0x58   : > { %565 = vst [vmem:[#allocation2 + $0x151] sm:$0xff] %v478_v54  ;;  %v596_v61 = vld [vmem:[#allocation2 + $0x128] sm:$0xff]  ;;  %v2802_v54 = vld [vmem:[%s4669_s5] sm:$0x3] }
  0x59   : > { %566 = vst [vmem:[#allocation2 + $0x159] sm:$0xff] %v479_v55  ;;  %v579_v1 = vld [vmem:[#allocation2 + $0x60] sm:$0xff]  ;;  %v615_v5 = vpack.c.bf16 %v596_v61, %v595_v59  ;;  %v2854_v55 = vsel %vm2852_vm0, %v2802_v54, 0  ;;  %v1006_v61 = vpack.c.bf16 %v975_v57, %v974_v56  ;;  %v1680_v40 = vld [vmem:[#allocation2 + $0x4a] sm:$0xff] }
  0x5a   : > { %549 = vst [vmem:[#allocation2 + $0x91] sm:$0xff] %v462_v58  ;;  %v580_v3 = vld [vmem:[#allocation2 + $0x68] sm:$0xff]  ;;  %2863 = vmatpush.bf16.msra.mxu1 %v2854_v55  ;;  %2259 = vmatpush.bf16.msra.mxu3 %v3694_v22 }
  0x5b   : > { %811 = vmatmul.bf16.gmra.mxu2 %v678_v0  ;;  %771 = vmatmul.bf16.gmra.mxu0 %v4040_v4  ;;  %v4100_v0 = vpack.c.bf16 %v461_v32, %v460_v2  ;;  %550 = vst [vmem:[#allocation2 + $0x99] sm:$0xff] %v463_v63  ;;  %v4102_v6 = vpack.c.bf16 %v580_v3, %v579_v1  ;;  %v597_v2 = vld [vmem:[#allocation2 + $0x138] sm:$0xff]  ;;  %v1683_v57 = vld [vmem:[#allocation2 + $0x6a] sm:$0xff] }
  0x5c   : > { %v598_v29 = vld [vmem:[#allocation2 + $0x140] sm:$0xff]  ;;  %568 = vst [vmem:[#allocation2 + $0x171] sm:$0xff] %v481_v25  ;;  %v4130_v32 = vpack.c.bf16 %v463_v63, %v462_v58 }
  0x5d   : > { %551 = vst [vmem:[#allocation2 + $0xa9] sm:$0xff] %v464_v28  ;;  %v581_v35 = vld [vmem:[#allocation2 + $0x78] sm:$0xff] }
  0x5e   : > { %v582_v36 = vld [vmem:[#allocation2 + $0x80] sm:$0xff]  ;;  %2260 = vmatpush.bf16.msra.mxu3 %v3693_v52 }
  0x5f   : > { %943 = vmatmul.bf16.gmra.mxu3 %v613_v8  ;;  %v376_v8 = vld [vmem:[%s3828_s22 + $0xe0] sm:$0xff]  ;;  %v599_v43 = vld [vmem:[#allocation2 + $0x150] sm:$0xff] }
  0x60   : > { %v412_v14 = vmul.f32 %v3833_v7, %v376_v8  ;;  %v616_v7 = vpack.c.bf16 %v598_v29, %v597_v2  ;;  %v600_v44 = vld [vmem:[#allocation2 + $0x158] sm:$0xff] }
  0x61   : > { %903 = vmatmul.bf16.gmra.mxu1 %v4042_v9  ;;  %v583_v47 = vld [vmem:[#allocation2 + $0x90] sm:$0xff]  ;;  %v617_v49 = vpack.c.bf16 %v600_v44, %v599_v43 }
  0x62   : > { %v448_v19 = vadd.f32 %v3844_v12, %v412_v14  ;;  %v3648_v12 = vld [vmem:[%s4667_s3 + $0x80] sm:$0xff]  ;;  %v584_v48 = vld [vmem:[#allocation2 + $0x98] sm:$0xff] }
  0x63   : > { %1094 = vmatpush.bf16.msrb.mxu2 %v3648_v12  ;;  %v4150_v50 = vpack.c.bf16 %v584_v48, %v583_v47 }
  0x64   : > { %v480_v24 = vmax.f32 %v448_v19, 0.0  ;;  %v1708_v19 = vpack.c.bf16 %v1677_v17, %v1676_v16 }
  0x66   : > { %567 = vst [vmem:[#allocation2 + $0x169] sm:$0xff] %v480_v24  ;;  %v682_v45 = vpack.c.bf16 %v481_v25, %v480_v24  ;;  %v1678_v25 = vld [vmem:[#allocation2 + $0x32] sm:$0xff] }
  0x67   : > { %2024 = vmatpush.bf16.msra.mxu2 %v3687_v51  ;;  %v3685_v51 = vld [vmem:[%s4667_s3 + $0x1a8] sm:$0xff] }
  0x6b   : > { %816 = vmatmul.bf16.gmra.mxu2 %v679_v31  ;;  %776 = vmatmul.bf16.gmra.mxu0 %v4070_v34  ;;  %v465_v31 = vmax.f32 %v433_v27, 0.0 }
  0x6c   : > { %2025 = vmatpush.bf16.msra.mxu2 %v3686_v21  ;;  %v1685_v21 = vld [vmem:[#allocation2 + $0x82] sm:$0xff] }
  0x6d   : > { %552 = vst [vmem:[#allocation2 + $0xb1] sm:$0xff] %v465_v31  ;;  %v4148_v46 = vpack.c.bf16 %v465_v31, %v464_v28  ;;  %v601_v58 = vld [vmem:[#allocation2 + $0x168] sm:$0xff]  ;;  %v602_v59 = vld [vmem:[#allocation2 + $0x170] sm:$0xff]  ;;  %v1709_v28 = vpack.c.bf16 %v1679_v26, %v1678_v25 }
  0x6f   : > { %948 = vmatmul.bf16.gmra.mxu3 %v614_v37  ;;  %v4132_v37 = vpack.c.bf16 %v582_v36, %v581_v35 }
  0x70   : > { %2026 = vmatpush.bf16.msra.mxu2 %v3685_v51 }
  0x71   : > { %908 = vmatmul.bf16.gmra.mxu1 %v4072_v38 }
  0x74   : > { %v586_v63 = vld [vmem:[#allocation2 + $0xb0] sm:$0xff] }
  0x7b   : > { %821 = vmatmul.bf16.gmra.mxu2 %v680_v62  ;;  %781 = vmatmul.bf16.gmra.mxu0 %v4100_v0  ;;  %v585_v62 = vld [vmem:[#allocation2 + $0xa8] sm:$0xff] }
  0x7c   : > { %v4168_v10 = vpack.c.bf16 %v586_v63, %v585_v62 }
  0x7f   : > { %953 = vmatmul.bf16.gmra.mxu3 %v615_v5  ;;  %v618_v5 = vpack.c.bf16 %v602_v59, %v601_v58  ;;  %v3701_v59 = vld [vmem:[%s4667_s3 + $0x228] sm:$0xff] }
  0x81   : > { %913 = vmatmul.bf16.gmra.mxu1 %v4102_v6 }
  0x8b   : > { %826 = vmatmul.bf16.gmra.mxu2 %v681_v30  ;;  %786 = vmatmul.bf16.gmra.mxu0 %v4130_v32 }
  0x8f   : > { %958 = vmatmul.bf16.gmra.mxu3 %v616_v7 }
  0x91   : > { %918 = vmatmul.bf16.gmra.mxu1 %v4132_v37 }
  0x9b   : > { %831 = vmatmul.bf16.gmra.mxu2 %v682_v45  ;;  %791 = vmatmul.bf16.gmra.mxu0 %v4148_v46  ;;  %v1710_v45 = vpack.c.bf16 %v1681_v41, %v1680_v40  ;;  %v3700_v41 = vld [vmem:[%s4667_s3 + $0x220] sm:$0xff] }
  0x9f   : > { %963 = vmatmul.bf16.gmra.mxu3 %v617_v49 }
  0xa1   : > { %923 = vmatmul.bf16.gmra.mxu1 %v4150_v50 }
  0xa8   : > { %v757_v3 = vpop.f32.mrf.mxu0 }
  0xa9   : > { %v894_v1 = vpop.f32.mrf.mxu1 }
  0xaa   : > { %v4166_v8 = vadd.f32 %v894_v1, %v757_v3 }
  0xab   : > { %1095 = vmatmul.bf16.vlgmr.msrb.gmra.mxu2 %v1006_v61  ;;  %1563 = vmatmul.bf16.vlgmr.msrb.gmra.mxu0 %v3961_v60 }
  0xae   : > { %v797_v11 = vpop.f32.mrf.mxu2 }
  0xaf   : > { %968 = vmatmul.bf16.gmra.mxu3 %v618_v5 }
  0xb0   : > { %v4174_v15 = vpop.f32.mrf.mxu0 }
  0xb1   : > { %v934_v13 = vpop.f32.mrf.mxu3  ;;  %928 = vmatmul.bf16.gmra.mxu1 %v4168_v10  ;;  %v4186_v24 = vpop.f32.mrf.mxu1 }
  0xb2   : > { %v4172_v14 = vadd.f32 %v934_v13, %v797_v11 }
  0xb6   : > { %v4176_v18 = vpop.f32.mrf.mxu2 }
  0xb8   : > { %v762_v20 = vpop.f32.mrf.mxu0 }
  0xb9   : > { %v4191_v27 = vpop.f32.mrf.mxu3 }
  0xbb   : > { %1100 = vmatmul.bf16.gmra.mxu2 %v1708_v19  ;;  %1568 = vmatmul.bf16.gmra.mxu0 %v4010_v33 }
  0xbe   : > { %v802_v60 = vpop.f32.mrf.mxu2 }
  0xbf   : > { %1329 = vmatmul.bf16.vlgmr.msrb.gmra.mxu3 %v4013_v42  ;;  %v3702_v42 = vld [vmem:[%s4667_s3 + $0x230] sm:$0xff] }
  0xc0   : > { %v764_v23 = vpop.f32.mrf.mxu0  ;;  %2493 = vmatpush.bf16.msra.mxu0 %v3702_v42 }
  0xc1   : > { %1797 = vmatmul.bf16.vlgmr.msrb.gmra.mxu1 %v1708_v19 }
  0xc4   : > { %2494 = vmatpush.bf16.msra.mxu0 %v3701_v59  ;;  %v1688_v59 = vld [vmem:[#allocation2 + $0xaa] sm:$0xff] }
  0xc6   : > { %v804_v33 = vpop.f32.mrf.mxu2 }
  0xc8   : > { %v767_v2 = vpop.f32.mrf.mxu0  ;;  %2495 = vmatpush.bf16.msra.mxu0 %v3700_v41 }
  0xcb   : > { %1105 = vmatmul.bf16.gmra.mxu2 %v1709_v28  ;;  %1573 = vmatmul.bf16.gmra.mxu0 %v4040_v4 }
  0xce   : > { %v899_v29 = vpop.f32.mrf.mxu1  ;;  %v807_v31 = vpop.f32.mrf.mxu2 }
  0xcf   : > { %v4194_v30 = vadd.f32 %v899_v29, %v762_v20  ;;  %1334 = vmatmul.bf16.gmra.mxu3 %v4042_v9 }
  0xd0   : > { %v769_v36 = vpop.f32.mrf.mxu0 }
  0xd1   : > { %1802 = vmatmul.bf16.gmra.mxu1 %v1709_v28  ;;  %v3684_v28 = vld [vmem:[%s4667_s3 + $0x1a0] sm:$0xff] }
  0xd2   : > { %v939_v35 = vpop.f32.mrf.mxu3  ;;  %2027 = vmatpush.bf16.msra.mxu2 %v3684_v28 }
  0xd3   : > { %v4197_v7 = vadd.f32 %v939_v35, %v802_v60  ;;  %v1684_v60 = vld [vmem:[#allocation2 + $0x7a] sm:$0xff] }
  0xd4   : > { %v1712_v25 = vpack.c.bf16 %v1685_v21, %v1684_v60  ;;  %v3683_v60 = vld [vmem:[%s4667_s3 + $0x198] sm:$0xff] }
  0xd5   : > { %v3691_v21 = vld [vmem:[%s4667_s3 + $0x1d8] sm:$0xff] }
  0xd6   : > { %v901_v12 = vpop.f32.mrf.mxu1  ;;  %v809_v43 = vpop.f32.mrf.mxu2  ;;  %2028 = vmatpush.bf16.msra.mxu2 %v3683_v60 }
  0xd7   : > { %v4199_v39 = vadd.f32 %v901_v12, %v764_v23  ;;  %v1687_v12 = vld [vmem:[#allocation2 + $0x9a] sm:$0xff] }
  0xd8   : > { %v772_v4 = vpop.f32.mrf.mxu0 }
  0xda   : > { %v941_v44 = vpop.f32.mrf.mxu3 }
  0xdb   : > { %v4201_v47 = vadd.f32 %v941_v44, %v804_v33  ;;  %1110 = vmatmul.bf16.gmra.mxu2 %v1710_v45  ;;  %1578 = vmatmul.bf16.gmra.mxu0 %v4070_v34 }
  0xde   : > { %v904_v9 = vpop.f32.mrf.mxu1  ;;  %v812_v49 = vpop.f32.mrf.mxu2 }
  0xdf   : > { %v4204_v48 = vadd.f32 %v904_v9, %v767_v2  ;;  %1339 = vmatmul.bf16.gmra.mxu3 %v4072_v38  ;;  %v1682_v38 = vld [vmem:[#allocation2 + $0x62] sm:$0xff] }
  0xe0   : > { %v774_v54 = vpop.f32.mrf.mxu0  ;;  %v1711_v62 = vpack.c.bf16 %v1683_v57, %v1682_v38  ;;  %v3692_v2 = vld [vmem:[%s4667_s3 + $0x1e0] sm:$0xff]  ;;  %v1457_v57 = vld [vmem:[#allocation2 + $0xc9] sm:$0xff] }
  0xe1   : > { %1807 = vmatmul.bf16.gmra.mxu1 %v1710_v45  ;;  %2261 = vmatpush.bf16.msra.mxu3 %v3692_v2  ;;  %v1456_v38 = vld [vmem:[#allocation2 + $0xc1] sm:$0xff] }
  0xe2   : > { %v944_v53 = vpop.f32.mrf.mxu3  ;;  %v1690_v2 = vld [vmem:[#allocation2 + $0xc2] sm:$0xff] }
  0xe3   : > { %v4213_v55 = vadd.f32 %v944_v53, %v807_v31 }
  0xe5   : > { %2262 = vmatpush.bf16.msra.mxu3 %v3691_v21  ;;  %v1224_v21 = vld [vmem:[#allocation2 + $0xd8] sm:$0xff] }
  0xe6   : > { %v906_v34 = vpop.f32.mrf.mxu1  ;;  %v814_v58 = vpop.f32.mrf.mxu2 }
  0xe7   : > { %v4215_v56 = vadd.f32 %v906_v34, %v769_v36 }
  0xe8   : > { %v777_v63 = vpop.f32.mrf.mxu0 }
  0xea   : > { %v946_v61 = vpop.f32.mrf.mxu3 }
  0xeb   : > { %v4220_v1 = vadd.f32 %v946_v61, %v809_v43  ;;  %1115 = vmatmul.bf16.gmra.mxu2 %v1711_v62  ;;  %1583 = vmatmul.bf16.gmra.mxu0 %v4100_v0  ;;  %v1689_v61 = vld [vmem:[#allocation2 + $0xb2] sm:$0xff] }
  0xee   : > { %v909_v3 = vpop.f32.mrf.mxu1  ;;  %v817_v11 = vpop.f32.mrf.mxu2 }
  0xef   : > { %v4223_v5 = vadd.f32 %v909_v3, %v772_v4  ;;  %1344 = vmatmul.bf16.gmra.mxu3 %v4102_v6  ;;  %v1714_v3 = vpack.c.bf16 %v1689_v61, %v1688_v59  ;;  %v897_v59 = vadd.f32 %v4186_v24, %v4174_v15 }
  0xf0   : > { %v779_v16 = vpop.f32.mrf.mxu0 }
  0xf1   : > { %1812 = vmatmul.bf16.gmra.mxu1 %v1711_v62 }
  0xf2   : > { %v949_v13 = vpop.f32.mrf.mxu3 }
  0xf3   : > { %v4226_v17 = vadd.f32 %v949_v13, %v812_v49 }
  0xf6   : > { %v911_v19 = vpop.f32.mrf.mxu1  ;;  %v819_v22 = vpop.f32.mrf.mxu2 }
  0xf7   : > { %v4228_v20 = vadd.f32 %v911_v19, %v774_v54 }
  0xf8   : > { %v782_v0 = vpop.f32.mrf.mxu0 }
  0xfa   : > { %v951_v23 = vpop.f32.mrf.mxu3 }
  0xfb   : > { %v4230_v26 = vadd.f32 %v951_v23, %v814_v58  ;;  %1120 = vmatmul.bf16.gmra.mxu2 %v1712_v25  ;;  %1588 = vmatmul.bf16.gmra.mxu0 %v4130_v32 }
  0xfe   : > { %v914_v6 = vpop.f32.mrf.mxu1  ;;  %v822_v42 = vpop.f32.mrf.mxu2 }
  0xff   : > { %v4233_v33 = vadd.f32 %v914_v6, %v777_v63  ;;  %1349 = vmatmul.bf16.gmra.mxu3 %v4132_v37  ;;  %v1686_v37 = vld [vmem:[#allocation2 + $0x92] sm:$0xff] }
 0x100   : > { %v784_v31 = vpop.f32.mrf.mxu0  ;;  %v1713_v44 = vpack.c.bf16 %v1687_v12, %v1686_v37  ;;  %v1458_v6 = vld [vmem:[#allocation2 + $0xd9] sm:$0xff]  ;;  %v1223_v37 = vld [vmem:[#allocation2 + $0xc8] sm:$0xff] }
 0x101   : > { %1817 = vmatmul.bf16.gmra.mxu1 %v1712_v25 }
 0x102   : > { %v954_v29 = vpop.f32.mrf.mxu3 }
 0x103   : > { %v4242_v35 = vadd.f32 %v954_v29, %v817_v11  ;;  %v1691_v29 = vld [vmem:[#allocation2 + $0xca] sm:$0xff] }
 0x104   : > { %v4282_v41 = vpack.c.bf16 %v1691_v29, %v1690_v2  ;;  %v3682_v29 = vld [vmem:[%s4667_s3 + $0x190] sm:$0xff] }
 0x105   : > { %2029 = vmatpush.bf16.msra.mxu2 %v3682_v29 }
 0x106   : > { %v916_v32 = vpop.f32.mrf.mxu1  ;;  %v824_v40 = vpop.f32.mrf.mxu2 }
 0x107   : > { %v4244_v36 = vadd.f32 %v916_v32, %v779_v16  ;;  %v1222_v32 = vld [vmem:[#allocation2 + $0xc0] sm:$0xff] }
 0x108   : > { %v787_v45 = vpop.f32.mrf.mxu0 }
 0x10a   : > { %v956_v43 = vpop.f32.mrf.mxu3 }
 0x10b   : > { %v4249_v4 = vadd.f32 %v956_v43, %v819_v22  ;;  %1125 = vmatmul.bf16.gmra.mxu2 %v1713_v44  ;;  %1593 = vmatmul.bf16.gmra.mxu0 %v4148_v46  ;;  %v4259_v46 = vpack.c.bf16 %v1457_v57, %v1456_v38 }
 0x10e   : > { %v919_v9 = vpop.f32.mrf.mxu1  ;;  %v827_v51 = vpop.f32.mrf.mxu2 }
 0x10f   : > { %v4252_v49 = vadd.f32 %v919_v9, %v782_v0  ;;  %1354 = vmatmul.bf16.gmra.mxu3 %v4150_v50 }
 0x110   : > { %v789_v53 = vpop.f32.mrf.mxu0 }
 0x111   : > { %1822 = vmatmul.bf16.gmra.mxu1 %v1713_v44 }
 0x112   : > { %v959_v52 = vpop.f32.mrf.mxu3 }
 0x113   : > { %v4255_v54 = vadd.f32 %v959_v52, %v822_v42  ;;  %v1459_v42 = vld [vmem:[#allocation2 + $0xe1] sm:$0xff] }
 0x114   : > { %v4280_v12 = vpack.c.bf16 %v1459_v42, %v1458_v6 }
 0x116   : > { %v921_v34 = vpop.f32.mrf.mxu1  ;;  %v829_v62 = vpop.f32.mrf.mxu2 }
 0x117   : > { %v4257_v58 = vadd.f32 %v921_v34, %v784_v31 }
 0x118   : > { %v792_v11 = vpop.f32.mrf.mxu0 }
 0x11a   : > { %v961_v63 = vpop.f32.mrf.mxu3 }
 0x11b   : > { %v4261_v50 = vadd.f32 %v961_v63, %v824_v40  ;;  %1130 = vmatmul.bf16.gmra.mxu2 %v1714_v3  ;;  %1598 = vmatmul.bf16.gmra.mxu0 %v4259_v46  ;;  %v1461_v63 = vld [vmem:[#allocation2 + $0xf9] sm:$0xff] }
 0x11e   : > { %v924_v13 = vpop.f32.mrf.mxu1  ;;  %v832_v19 = vpop.f32.mrf.mxu2 }
 0x11f   : > { %v4264_v16 = vadd.f32 %v924_v13, %v787_v45  ;;  %1359 = vmatmul.bf16.gmra.mxu3 %v4168_v10  ;;  %v3699_v10 = vld [vmem:[%s4667_s3 + $0x218] sm:$0xff]  ;;  %v4286_v45 = vpack.c.bf16 %v1223_v37, %v1222_v32  ;;  %v1693_v13 = vld [vmem:[#allocation2 + $0xe2] sm:$0xff] }
 0x120   : > { %v794_v23 = vpop.f32.mrf.mxu0  ;;  %2496 = vmatpush.bf16.msra.mxu0 %v3699_v10 }
 0x121   : > { %1827 = vmatmul.bf16.gmra.mxu1 %v1714_v3 }
 0x122   : > { %v964_v22 = vpop.f32.mrf.mxu3 }
 0x123   : > { %v4273_v25 = vadd.f32 %v964_v22, %v827_v51  ;;  %v1225_v22 = vld [vmem:[#allocation2 + $0xe0] sm:$0xff] }
 0x124   : > { %v4305_v2 = vpack.c.bf16 %v1225_v22, %v1224_v21 }
 0x126   : > { %v926_v0 = vpop.f32.mrf.mxu1  ;;  %v834_v31 = vpop.f32.mrf.mxu2 }
 0x127   : > { %v4278_v28 = vadd.f32 %v926_v0, %v789_v53 }
 0x128   : > { %v1564_v43 = vpop.f32.mrf.mxu0 }
 0x12a   : > { %v966_v40 = vpop.f32.mrf.mxu3 }
 0x12b   : > { %v4284_v44 = vadd.f32 %v966_v40, %v829_v62  ;;  %1135 = vmatmul.bf16.gmra.mxu2 %v4282_v41  ;;  %1603 = vmatmul.bf16.gmra.mxu0 %v4280_v12  ;;  %v1460_v62 = vld [vmem:[#allocation2 + $0xf1] sm:$0xff] }
 0x12c   : > { %v4301_v0 = vpack.c.bf16 %v1461_v63, %v1460_v62  ;;  %v1695_v62 = vld [vmem:[#allocation2 + $0xfa] sm:$0xff] }
 0x12e   : > { %v929_v9 = vpop.f32.mrf.mxu1  ;;  %v1096_v52 = vpop.f32.mrf.mxu2 }
 0x12f   : > { %v4290_v51 = vadd.f32 %v929_v9, %v792_v11  ;;  %1364 = vmatmul.bf16.gmra.mxu3 %v4286_v45  ;;  %v1176_v53 = vadd.f32 %v1096_v52, %v4166_v8  ;;  %v1692_v11 = vld [vmem:[#allocation2 + $0xda] sm:$0xff] }
 0x130   : > { %v1566_v38 = vpop.f32.mrf.mxu0  ;;  %v1716_v42 = vpack.c.bf16 %v1693_v13, %v1692_v11  ;;  %v1226_v13 = vld [vmem:[#allocation2 + $0xf0] sm:$0xff] }
 0x131   : > { %1832 = vmatmul.bf16.gmra.mxu1 %v4282_v41 }
 0x132   : > { %v969_v34 = vpop.f32.mrf.mxu3 }
 0x133   : > { %v4295_v57 = vadd.f32 %v969_v34, %v832_v19  ;;  %v1462_v34 = vld [vmem:[#allocation2 + $0x109] sm:$0xff] }
 0x136   : > { %v931_v61 = vpop.f32.mrf.mxu1  ;;  %v1098_v60 = vpop.f32.mrf.mxu2 }
 0x137   : > { %v4299_v3 = vadd.f32 %v931_v61, %v794_v23  ;;  %v1177_v8 = vadd.f32 %v1098_v60, %v897_v59  ;;  %v1463_v59 = vld [vmem:[#allocation2 + $0x111] sm:$0xff] }
 0x138   : > { %v1569_v19 = vpop.f32.mrf.mxu0  ;;  %v1694_v61 = vld [vmem:[#allocation2 + $0xf2] sm:$0xff] }
 0x139   : > { %v1227_v60 = vld [vmem:[#allocation2 + $0xf8] sm:$0xff]  ;;  %v4324_v22 = vpack.c.bf16 %v1695_v62, %v1694_v61  ;;  %v1465_v61 = vld [vmem:[#allocation2 + $0x129] sm:$0xff] }
 0x13a   : > { %v971_v6 = vpop.f32.mrf.mxu3  ;;  %v1697_v62 = vld [vmem:[#allocation2 + $0x112] sm:$0xff] }
 0x13b   : > { %v4303_v10 = vadd.f32 %v971_v6, %v834_v31  ;;  %1140 = vmatmul.bf16.gmra.mxu2 %v1716_v42  ;;  %1608 = vmatmul.bf16.gmra.mxu0 %v4301_v0  ;;  %v3690_v31 = vld [vmem:[%s4667_s3 + $0x1d0] sm:$0xff] }
 0x13c   : > { %2263 = vmatpush.bf16.msra.mxu3 %v3690_v31 }
 0x13e   : > { %v1798_v15 = vpop.f32.mrf.mxu1  ;;  %v1101_v24 = vpop.f32.mrf.mxu2 }
 0x13f   : > { %1369 = vmatmul.bf16.gmra.mxu3 %v4305_v2  ;;  %v1178_v23 = vadd.f32 %v1101_v24, %v4194_v30  ;;  %v3698_v30 = vld [vmem:[%s4667_s3 + $0x210] sm:$0xff]  ;;  %v4326_v24 = vpack.c.bf16 %v1227_v60, %v1226_v13  ;;  %v1228_v60 = vld [vmem:[#allocation2 + $0x108] sm:$0xff] }
 0x140   : > { %v1571_v37 = vpop.f32.mrf.mxu0  ;;  %2497 = vmatpush.bf16.msra.mxu0 %v3698_v30  ;;  %v1464_v30 = vld [vmem:[#allocation2 + $0x121] sm:$0xff] }
 0x141   : > { %1837 = vmatmul.bf16.gmra.mxu1 %v1716_v42 }
 0x142   : > { %v1330_v32 = vpop.f32.mrf.mxu3 }
 0x143   : > { %v1410_v40 = vadd.f32 %v1330_v32, %v1176_v53  ;;  %v4322_v53 = vpack.c.bf16 %v1463_v59, %v1462_v34 }
 0x145   : > { %v1644_v9 = vadd.f32 %v1564_v43, %v1410_v40  ;;  %4675 = vst [vmem:[#allocation3_spill] sm:$0xff] %v4322_v53 }
 0x146   : > { %v1800_v52 = vpop.f32.mrf.mxu1  ;;  %v1103_v63 = vpop.f32.mrf.mxu2 }
 0x147   : > { %v4319_v11 = vadd.f32 %v1798_v15, %v1644_v9  ;;  %v1179_v21 = vadd.f32 %v1103_v63, %v4199_v39 }
 0x148   : > { %v1574_v6 = vpop.f32.mrf.mxu0 }
 0x14a   : > { %v1332_v43 = vpop.f32.mrf.mxu3 }
 0x14b   : > { %v1411_v42 = vadd.f32 %v1332_v43, %v1177_v8  ;;  %1145 = vmatmul.bf16.gmra.mxu2 %v4324_v22  ;;  %1613 = vmatmul.bf16.gmra.mxu0 %v4322_v53  ;;  %v1229_v43 = vld [vmem:[#allocation2 + $0x110] sm:$0xff] }
 0x14d   : > { %v1645_v29 = vadd.f32 %v1566_v38, %v1411_v42  ;;  %v1696_v38 = vld [vmem:[#allocation2 + $0x10a] sm:$0xff]  ;;  %v4338_v42 = vpack.c.bf16 %v1465_v61, %v1464_v30 }
 0x14e   : > { %v1803_v15 = vpop.f32.mrf.mxu1  ;;  %v1106_v31 = vpop.f32.mrf.mxu2 }
 0x14f   : > { %1374 = vmatmul.bf16.gmra.mxu3 %v4326_v24  ;;  %v4331_v39 = vadd.f32 %v1800_v52, %v1645_v29  ;;  %v1180_v32 = vadd.f32 %v1106_v31, %v4204_v48  ;;  %4678 = vst [vmem:[#allocation6_spill] sm:$0xff] %v4338_v42  ;;  %v1718_v29 = vpack.c.bf16 %v1697_v62, %v1696_v38  ;;  %v1467_v62 = vld [vmem:[#allocation2 + $0x141] sm:$0xff] }
 0x150   : > { %v1576_v9 = vpop.f32.mrf.mxu0 }
 0x151   : > { %4676 = vst [vmem:[#allocation4_spill] sm:$0xff] %v4331_v39  ;;  %1842 = vmatmul.bf16.gmra.mxu1 %v4324_v22 }
 0x152   : > { %v1335_v40 = vpop.f32.mrf.mxu3 }
 0x153   : > { %v1412_v8 = vadd.f32 %v1335_v40, %v1178_v23  ;;  %v4340_v23 = vpack.c.bf16 %v1229_v43, %v1228_v60  ;;  %v1699_v60 = vld [vmem:[#allocation2 + $0x12a] sm:$0xff] }
 0x155   : > { %v1646_v34 = vadd.f32 %v1569_v19, %v1412_v8 }
 0x156   : > { %v1805_v59 = vpop.f32.mrf.mxu1  ;;  %v1108_v63 = vpop.f32.mrf.mxu2 }
 0x157   : > { %v4335_v13 = vadd.f32 %v1803_v15, %v1646_v34  ;;  %v1181_v52 = vadd.f32 %v1108_v63, %v4215_v56  ;;  %v3681_v34 = vld [vmem:[%s4667_s3 + $0x188] sm:$0xff] }
 0x158   : > { %v1579_v31 = vpop.f32.mrf.mxu0  ;;  %2030 = vmatpush.bf16.msra.mxu2 %v3681_v34  ;;  %v1698_v63 = vld [vmem:[#allocation2 + $0x122] sm:$0xff] }
 0x159   : > { %4677 = vst [vmem:[#allocation5_spill] sm:$0xff] %v4335_v13 }
 0x15a   : > { %v1337_v48 = vpop.f32.mrf.mxu3 }
 0x15b   : > { %v1413_v53 = vadd.f32 %v1337_v48, %v1179_v21  ;;  %1150 = vmatmul.bf16.gmra.mxu2 %v1718_v29  ;;  %1618 = vmatmul.bf16.gmra.mxu0 %v4338_v42  ;;  %v3689_v21 = vld [vmem:[%s4667_s3 + $0x1c8] sm:$0xff] }
 0x15c   : > { %2264 = vmatpush.bf16.msra.mxu3 %v3689_v21 }
 0x15d   : > { %v1647_v19 = vadd.f32 %v1571_v37, %v1413_v53 }
 0x15e   : > { %v1808_v40 = vpop.f32.mrf.mxu1  ;;  %v1111_v15 = vpop.f32.mrf.mxu2 }
 0x15f   : > { %1379 = vmatmul.bf16.gmra.mxu3 %v4340_v23  ;;  %v4344_v8 = vadd.f32 %v1805_v59, %v1647_v19  ;;  %v1182_v56 = vadd.f32 %v1111_v15, %v4223_v5  ;;  %v1466_v59 = vld [vmem:[#allocation2 + $0x139] sm:$0xff]  ;;  %v3697_v5 = vld [vmem:[%s4667_s3 + $0x208] sm:$0xff] }
 0x160   : > { %v1581_v53 = vpop.f32.mrf.mxu0  ;;  %v1231_v19 = vld [vmem:[#allocation2 + $0x128] sm:$0xff]  ;;  %2498 = vmatpush.bf16.msra.mxu0 %v3697_v5 }
 0x161   : > { %4679 = vst [vmem:[#allocation7_spill] sm:$0xff] %v4344_v8  ;;  %1847 = vmatmul.bf16.gmra.mxu1 %v1718_v29  ;;  %v1230_v29 = vld [vmem:[#allocation2 + $0x120] sm:$0xff] }
 0x162   : > { %v1340_v37 = vpop.f32.mrf.mxu3 }
 0x163   : > { %v1414_v30 = vadd.f32 %v1340_v37, %v1180_v32  ;;  %v1486_v32 = vpack.c.bf16 %v1467_v62, %v1466_v59 }
 0x165   : > { %v1648_v61 = vadd.f32 %v1574_v6, %v1414_v30  ;;  %v1719_v6 = vpack.c.bf16 %v1699_v60, %v1698_v63  ;;  %v1251_v30 = vpack.c.bf16 %v1231_v19, %v1230_v29  ;;  %v1468_v63 = vld [vmem:[#allocation2 + $0x151] sm:$0xff]  ;;  %v1700_v60 = vld [vmem:[#allocation2 + $0x13a] sm:$0xff] }
 0x166   : > { %v1810_v38 = vpop.f32.mrf.mxu1  ;;  %v1113_v43 = vpop.f32.mrf.mxu2  ;;  %v1232_v19 = vld [vmem:[#allocation2 + $0x138] sm:$0xff] }
 0x167   : > { %v4356_v48 = vadd.f32 %v1808_v40, %v1648_v61  ;;  %v1183_v15 = vadd.f32 %v1113_v43, %v4228_v20  ;;  %v1701_v43 = vld [vmem:[#allocation2 + $0x142] sm:$0xff] }
 0x168   : > { %v1584_v21 = vpop.f32.mrf.mxu0 }
 0x16a   : > { %v1342_v34 = vpop.f32.mrf.mxu3 }
 0x16b   : > { %v1415_v37 = vadd.f32 %v1342_v34, %v1181_v52  ;;  %1155 = vmatmul.bf16.gmra.mxu2 %v1719_v6  ;;  %1623 = vmatmul.bf16.gmra.mxu0 %v1486_v32  ;;  %v1469_v52 = vld [vmem:[#allocation2 + $0x159] sm:$0xff] }
 0x16c   : > { %v1233_v32 = vld [vmem:[#allocation2 + $0x140] sm:$0xff] }
 0x16d   : > { %v1649_v42 = vadd.f32 %v1576_v9, %v1415_v37 }
 0x16e   : > { %v1813_v8 = vpop.f32.mrf.mxu1  ;;  %v1116_v13 = vpop.f32.mrf.mxu2 }
 0x16f   : > { %1384 = vmatmul.bf16.gmra.mxu3 %v1251_v30  ;;  %v4359_v39 = vadd.f32 %v1810_v38, %v1649_v42  ;;  %v1184_v40 = vadd.f32 %v1116_v13, %v4233_v33  ;;  %v1487_v33 = vpack.c.bf16 %v1469_v52, %v1468_v63  ;;  %v1720_v38 = vpack.c.bf16 %v1701_v43, %v1700_v60  ;;  %v3732_v43 = vld [vmem:[%s4666_s2] ss:$0 sm:$0xff] }
 0x170   : > { %v4362_v20 = vpop.f32.mrf.mxu0 }
 0x171   : > { %1852 = vmatmul.bf16.gmra.mxu1 %v1719_v6 }
 0x172   : > { %v1345_v61 = vpop.f32.mrf.mxu3 }
 0x173   : > { %v1416_v59 = vadd.f32 %v1345_v61, %v1182_v56 }
 0x175   : > { %v1650_v62 = vadd.f32 %v1579_v31, %v1416_v59  ;;  %v1252_v31 = vpack.c.bf16 %v1233_v32, %v1232_v19  ;;  %v378_v59 = vld [vmem:[%s3828_s22 + $0xf0] sm:$0xff] }
 0x176   : > { %v1815_v5 = vpop.f32.mrf.mxu1  ;;  %v1118_v9 = vpop.f32.mrf.mxu2 }
 0x177   : > { %v4364_v29 = vadd.f32 %v1813_v8, %v1650_v62  ;;  %v1185_v42 = vadd.f32 %v1118_v9, %v4244_v36  ;;  %v3680_v36 = vld [vmem:[%s4667_s3 + $0x180] sm:$0xff]  ;;  %v379_v62 = vld [vmem:[%s3828_s22 + $0xf8] sm:$0xff] }
 0x178   : > { %v1589_v34 = vpop.f32.mrf.mxu0  ;;  %2031 = vmatpush.bf16.msra.mxu2 %v3680_v36 }
 0x17a   : > { %v1347_v13 = vpop.f32.mrf.mxu3 }
 0x17b   : > { %v1417_v56 = vadd.f32 %v1347_v13, %v1183_v15  ;;  %1160 = vmatmul.bf16.gmra.mxu2 %v1720_v38  ;;  %1628 = vmatmul.bf16.gmra.mxu0 %v1487_v33  ;;  %v3688_v15 = vld [vmem:[%s4667_s3 + $0x1c0] sm:$0xff] }
 0x17c   : > { %2265 = vmatpush.bf16.msra.mxu3 %v3688_v15  ;;  %v1234_v15 = vld [vmem:[#allocation2 + $0x150] sm:$0xff] }
 0x17d   : > { %v1651_v6 = vadd.f32 %v1581_v53, %v1417_v56  ;;  %v3731_v53 = vld [vmem:[%s4665_s1] ss:$0 sm:$0xff]  ;;  %v1471_v56 = vld [vmem:[#allocation2 + $0x171] sm:$0xff] }
 0x17e   : > { %v1818_v37 = vpop.f32.mrf.mxu1  ;;  %v1121_v30 = vpop.f32.mrf.mxu2  ;;  %v414_v63 = vmul.f32 %v3731_v53, %v378_v59  ;;  %v415_v60 = vmul.f32 %v3731_v53, %v379_v62  ;;  %v1235_v62 = vld [vmem:[#allocation2 + $0x158] sm:$0xff] }
 0x17f   : > { %1389 = vmatmul.bf16.gmra.mxu3 %v1252_v31  ;;  %v4367_v8 = vadd.f32 %v1815_v5, %v1651_v6  ;;  %v1186_v61 = vadd.f32 %v1121_v30, %v4252_v49  ;;  %v3696_v31 = vld [vmem:[%s4667_s3 + $0x200] sm:$0xff]  ;;  %v1702_v30 = vld [vmem:[#allocation2 + $0x152] sm:$0xff] }
 0x180   : > { %v1591_v52 = vpop.f32.mrf.mxu0  ;;  %v450_v9 = vadd.f32 %v3732_v43, %v414_v63  ;;  %v451_v19 = vadd.f32 %v3732_v43, %v415_v60  ;;  %2499 = vmatpush.bf16.msra.mxu0 %v3696_v31  ;;  %v1253_v43 = vpack.c.bf16 %v1235_v62, %v1234_v15  ;;  %v1237_v62 = vld [vmem:[#allocation2 + $0x170] sm:$0xff] }
 0x181   : > { %1857 = vmatmul.bf16.gmra.mxu1 %v1720_v38  ;;  %v1470_v38 = vld [vmem:[#allocation2 + $0x169] sm:$0xff] }
 0x182   : > { %v1350_v5 = vpop.f32.mrf.mxu3  ;;  %v482_v33 = vmax.f32 %v450_v9, 0.0  ;;  %v483_v6 = vmax.f32 %v451_v19, 0.0 }
 0x183   : > { %v1418_v49 = vadd.f32 %v1350_v5, %v1184_v40  ;;  %v1703_v40 = vld [vmem:[#allocation2 + $0x15a] sm:$0xff] }
 0x184   : > { %569 = vst [vmem:[#allocation2 + $0x181] sm:$0xff] %v482_v33  ;;  %v1721_v5 = vpack.c.bf16 %v1703_v40, %v1702_v30  ;;  %v1704_v40 = vld [vmem:[#allocation2 + $0x16a] sm:$0xff] }
 0x185   : > { %v1652_v32 = vadd.f32 %v1584_v21, %v1418_v49  ;;  %570 = vst [vmem:[#allocation2 + $0x189] sm:$0xff] %v483_v6  ;;  %v1488_v21 = vpack.c.bf16 %v1471_v56, %v1470_v38 }
 0x186   : > { %v1820_v13 = vpop.f32.mrf.mxu1  ;;  %v1123_v59 = vpop.f32.mrf.mxu2 }
 0x187   : > { %v4387_v36 = vadd.f32 %v1818_v37, %v1652_v32  ;;  %v1187_v53 = vadd.f32 %v1123_v59, %v4257_v58 }
 0x188   : > { %v1594_v60 = vpop.f32.mrf.mxu0 }
 0x189   : > { %4680 = vst [vmem:[#allocation8_spill] sm:$0xff] %v4387_v36 }
 0x18a   : > { %v1352_v63 = vpop.f32.mrf.mxu3 }
 0x18b   : > { %v1419_v49 = vadd.f32 %v1352_v63, %v1185_v42  ;;  %1165 = vmatmul.bf16.gmra.mxu2 %v1721_v5  ;;  %1633 = vmatmul.bf16.gmra.mxu0 %v1488_v21  ;;  %v1705_v42 = vld [vmem:[#allocation2 + $0x172] sm:$0xff]  ;;  %v1489_v63 = vpack.c.bf16 %v483_v6, %v482_v33 }
 0x18c   : > { %v1911_v6 = vld [vmem:[#allocation2 + $0x30] sm:$0xff] }
 0x18d   : > { %v1653_v9 = vadd.f32 %v4362_v20, %v1419_v49  ;;  %v1236_v20 = vld [vmem:[#allocation2 + $0x168] sm:$0xff]  ;;  %v1722_v49 = vpack.c.bf16 %v1705_v42, %v1704_v40  ;;  %v2380_v42 = vld [vmem:[#allocation2 + $0x3a] sm:$0xff] }
 0x18e   : > { %v1823_v19 = vpop.f32.mrf.mxu1  ;;  %v1126_v37 = vpop.f32.mrf.mxu2 }
 0x18f   : > { %1394 = vmatmul.bf16.gmra.mxu3 %v1253_v43  ;;  %v4391_v32 = vadd.f32 %v1820_v13, %v1653_v9  ;;  %v1188_v36 = vadd.f32 %v1126_v37, %v4264_v16 }
 0x190   : > { %v1596_v31 = vpop.f32.mrf.mxu0 }
 0x191   : > { %1862 = vmatmul.bf16.gmra.mxu1 %v1721_v5  ;;  %v1254_v5 = vpack.c.bf16 %v1237_v62, %v1236_v20  ;;  %v1238_v20 = vld [vmem:[#allocation2 + $0x180] sm:$0xff]  ;;  %v1239_v62 = vld [vmem:[#allocation2 + $0x188] sm:$0xff] }
 0x192   : > { %v1355_v58 = vpop.f32.mrf.mxu3 }
 0x193   : > { %v1420_v38 = vadd.f32 %v1355_v58, %v1186_v61 }
 0x195   : > { %v1654_v56 = vadd.f32 %v1589_v34, %v1420_v38 }
 0x196   : > { %v1825_v30 = vpop.f32.mrf.mxu1  ;;  %v1128_v59 = vpop.f32.mrf.mxu2 }
 0x197   : > { %v4394_v15 = vadd.f32 %v1823_v19, %v1654_v56  ;;  %v1189_v21 = vadd.f32 %v1128_v59, %v4278_v28  ;;  %v1912_v56 = vld [vmem:[#allocation2 + $0x38] sm:$0xff] }
 0x198   : > { %v1599_v43 = vpop.f32.mrf.mxu0 }
 0x19a   : > { %v1357_v13 = vpop.f32.mrf.mxu3 }
 0x19b   : > { %v1421_v16 = vadd.f32 %v1357_v13, %v1187_v53  ;;  %1170 = vmatmul.bf16.gmra.mxu2 %v1722_v49  ;;  %1638 = vmatmul.bf16.gmra.mxu0 %v1489_v63  ;;  %v2379_v53 = vld [vmem:[#allocation2 + $0x32] sm:$0xff]  ;;  %v1943_v63 = vpack.c.bf16 %v1912_v56, %v1911_v6 }
 0x19c   : > { %v2411_v13 = vpack.c.bf16 %v2380_v42, %v2379_v53  ;;  %v1913_v42 = vld [vmem:[#allocation2 + $0x48] sm:$0xff] }
 0x19d   : > { %v1655_v9 = vadd.f32 %v1591_v52, %v1421_v16  ;;  %v1707_v16 = vld [vmem:[#allocation2 + $0x18a] sm:$0xff] }
 0x19e   : > { %v1828_v34 = vpop.f32.mrf.mxu1  ;;  %v1131_v61 = vpop.f32.mrf.mxu2 }
 0x19f   : > { %1399 = vmatmul.bf16.gmra.mxu3 %v1254_v5  ;;  %v4397_v37 = vadd.f32 %v1825_v30, %v1655_v9  ;;  %v1190_v19 = vadd.f32 %v1131_v61, %v4290_v51 }
 0x1a0   : > { %v1601_v38 = vpop.f32.mrf.mxu0 }
 0x1a1   : > { %1867 = vmatmul.bf16.gmra.mxu1 %v1722_v49  ;;  %v1706_v49 = vld [vmem:[#allocation2 + $0x182] sm:$0xff] }
 0x1a2   : > { %v1360_v58 = vpop.f32.mrf.mxu3  ;;  %v1723_v61 = vpack.c.bf16 %v1707_v16, %v1706_v49 }
 0x1a3   : > { %v1422_v28 = vadd.f32 %v1360_v58, %v1188_v36 }
 0x1a5   : > { %v1656_v33 = vadd.f32 %v1594_v60, %v1422_v28  ;;  %v1255_v60 = vpack.c.bf16 %v1239_v62, %v1238_v20  ;;  %v2381_v20 = vld [vmem:[#allocation2 + $0x4a] sm:$0xff]  ;;  %v2382_v62 = vld [vmem:[#allocation2 + $0x52] sm:$0xff] }
 0x1a6   : > { %v1830_v40 = vpop.f32.mrf.mxu1  ;;  %v1133_v59 = vpop.f32.mrf.mxu2 }
 0x1a7   : > { %v4400_v52 = vadd.f32 %v1828_v34, %v1656_v33  ;;  %v1191_v30 = vadd.f32 %v1133_v59, %v4299_v3 }
 0x1a8   : > { %v1604_v5 = vpop.f32.mrf.mxu0 }
 0x1aa   : > { %v1362_v51 = vpop.f32.mrf.mxu3 }
 0x1ab   : > { %v1423_v36 = vadd.f32 %v1362_v51, %v1189_v21  ;;  %2032 = vmatmul.bf16.vlgmr.msra.gmra.mxu2 %v1943_v63  ;;  %2500 = vmatmul.bf16.vlgmr.msra.gmra.mxu0 %v2411_v13  ;;  %v1914_v21 = vld [vmem:[#allocation2 + $0x50] sm:$0xff]  ;;  %v2412_v51 = vpack.c.bf16 %v2382_v62, %v2381_v20  ;;  %v2383_v62 = vld [vmem:[#allocation2 + $0x62] sm:$0xff] }
 0x1ac   : > { %v1944_v13 = vpack.c.bf16 %v1914_v21, %v1913_v42 }
 0x1ad   : > { %v1657_v9 = vadd.f32 %v1596_v31, %v1423_v36  ;;  %v937_v31 = vadd.f32 %v4191_v27, %v4176_v18  ;;  %v2754_v18 = vld [vmem:[%s4412_s21] sm:$0xff]  ;;  %v2755_v27 = vld [vmem:[%s4412_s21 + $0x8] sm:$0xff] }
 0x1ae   : > { %v1833_v58 = vpop.f32.mrf.mxu1  ;;  %v1136_v34 = vpop.f32.mrf.mxu2 }
 0x1af   : > { %1404 = vmatmul.bf16.gmra.mxu3 %v1255_v60  ;;  %v4403_v28 = vadd.f32 %v1830_v40, %v1657_v9  ;;  %v1192_v3 = vadd.f32 %v1136_v34, %v4172_v14 }
 0x1b0   : > { %v1606_v6 = vpop.f32.mrf.mxu0 }
 0x1b1   : > { %1872 = vmatmul.bf16.gmra.mxu1 %v1723_v61  ;;  %v2786_v61 = vpack.c.bf16 %v2755_v27, %v2754_v18  ;;  %v2756_v27 = vld [vmem:[%s4412_s21 + $0x10] sm:$0xff] }
 0x1b2   : > { %v1365_v33 = vpop.f32.mrf.mxu3 }
 0x1b3   : > { %v1424_v56 = vadd.f32 %v1365_v33, %v1190_v19  ;;  %v2145_v19 = vld [vmem:[#allocation2 + $0x31] sm:$0xff] }
 0x1b5   : > { %v1658_v53 = vadd.f32 %v1599_v43, %v1424_v56  ;;  %v2146_v43 = vld [vmem:[#allocation2 + $0x39] sm:$0xff] }
 0x1b6   : > { %v1835_v59 = vpop.f32.mrf.mxu1  ;;  %v1138_v14 = vpop.f32.mrf.mxu2  ;;  %v2177_v60 = vpack.c.bf16 %v2146_v43, %v2145_v19 }
 0x1b7   : > { %v4414_v40 = vadd.f32 %v1833_v58, %v1658_v53  ;;  %v1193_v63 = vadd.f32 %v1138_v14, %v937_v31  ;;  %v1915_v31 = vld [vmem:[#allocation2 + $0x60] sm:$0xff]  ;;  %v2384_v14 = vld [vmem:[#allocation2 + $0x6a] sm:$0xff] }
 0x1b8   : > { %v1609_v16 = vpop.f32.mrf.mxu0 }
 0x1ba   : > { %v1367_v49 = vpop.f32.mrf.mxu3 }
 0x1bb   : > { %v1425_v36 = vadd.f32 %v1367_v49, %v1191_v30  ;;  %2037 = vmatmul.bf16.gmra.mxu2 %v1944_v13  ;;  %2505 = vmatmul.bf16.gmra.mxu0 %v2412_v51  ;;  %v2148_v13 = vld [vmem:[#allocation2 + $0x51] sm:$0xff]  ;;  %v2413_v49 = vpack.c.bf16 %v2384_v14, %v2383_v62  ;;  %v1918_v62 = vld [vmem:[#allocation2 + $0x80] sm:$0xff] }
 0x1bc   : > { %v2385_v14 = vld [vmem:[#allocation2 + $0x7a] sm:$0xff] }
 0x1bd   : > { %v1659_v9 = vadd.f32 %v1601_v38, %v1425_v36  ;;  %v1916_v38 = vld [vmem:[#allocation2 + $0x68] sm:$0xff]  ;;  %v2757_v36 = vld [vmem:[%s4412_s21 + $0x18] sm:$0xff] }
 0x1be   : > { %v1838_v34 = vpop.f32.mrf.mxu1  ;;  %v1141_v58 = vpop.f32.mrf.mxu2  ;;  %v1945_v51 = vpack.c.bf16 %v1916_v38, %v1915_v31  ;;  %v1917_v38 = vld [vmem:[#allocation2 + $0x78] sm:$0xff] }
 0x1bf   : > { %2266 = vmatmul.bf16.vlgmr.msra.gmra.mxu3 %v2177_v60  ;;  %v4418_v33 = vadd.f32 %v1835_v59, %v1659_v9  ;;  %v1194_v56 = vadd.f32 %v1141_v58, %v4197_v7  ;;  %v2147_v59 = vld [vmem:[#allocation2 + $0x49] sm:$0xff] }
 0x1c0   : > { %v1611_v42 = vpop.f32.mrf.mxu0 }
 0x1c1   : > { %3611 = vmatmul.msk.bf16.vlgmr.msra.gmra.mxu1 %vm2803_vm1, %v2786_v61  ;;  %v2787_v61 = vpack.c.bf16 %v2757_v36, %v2756_v27  ;;  %v2758_v36 = vld [vmem:[%s4412_s21 + $0x20] sm:$0xff] }
 0x1c2   : > { %v1370_v53 = vpop.f32.mrf.mxu3 }
 0x1c3   : > { %v1426_v21 = vadd.f32 %v1370_v53, %v1192_v3 }
 0x1c5   : > { %v1660_v30 = vadd.f32 %v1604_v5, %v1426_v21  ;;  %v2178_v5 = vpack.c.bf16 %v2148_v13, %v2147_v59 }
 0x1c6   : > { %v1840_v20 = vpop.f32.mrf.mxu1  ;;  %v1143_v19 = vpop.f32.mrf.mxu2 }
 0x1c7   : > { %v4422_v43 = vadd.f32 %v1838_v34, %v1660_v30  ;;  %v1195_v7 = vadd.f32 %v1143_v19, %v4201_v47  ;;  %v2386_v19 = vld [vmem:[#allocation2 + $0x82] sm:$0xff] }
 0x1c8   : > { %v1614_v3 = vpop.f32.mrf.mxu0 }
 0x1ca   : > { %v1372_v18 = vpop.f32.mrf.mxu3 }
 0x1cb   : > { %v1427_v60 = vadd.f32 %v1372_v18, %v1193_v63  ;;  %2042 = vmatmul.bf16.gmra.mxu2 %v1945_v51  ;;  %2510 = vmatmul.bf16.gmra.mxu0 %v2413_v49  ;;  %v2150_v51 = vld [vmem:[#allocation2 + $0x69] sm:$0xff]  ;;  %v1946_v49 = vpack.c.bf16 %v1918_v62, %v1917_v38  ;;  %v2414_v18 = vpack.c.bf16 %v2386_v19, %v2385_v14  ;;  %v1920_v14 = vld [vmem:[#allocation2 + $0x98] sm:$0xff] }
 0x1cc   : > { %v1919_v62 = vld [vmem:[#allocation2 + $0x90] sm:$0xff] }
 0x1cd   : > { %v1661_v9 = vadd.f32 %v1606_v6, %v1427_v60  ;;  %v2759_v60 = vld [vmem:[%s4412_s21 + $0x28] sm:$0xff]  ;;  %v2387_v19 = vld [vmem:[#allocation2 + $0x92] sm:$0xff] }
 0x1ce   : > { %v1843_v58 = vpop.f32.mrf.mxu1  ;;  %v1146_v34 = vpop.f32.mrf.mxu2 }
 0x1cf   : > { %2271 = vmatmul.bf16.gmra.mxu3 %v2178_v5  ;;  %v4427_v53 = vadd.f32 %v1840_v20, %v1661_v9  ;;  %v1196_v21 = vadd.f32 %v1146_v34, %v4213_v55  ;;  %v2149_v20 = vld [vmem:[#allocation2 + $0x61] sm:$0xff] }
 0x1d0   : > { %v1616_v30 = vpop.f32.mrf.mxu0 }
 0x1d1   : > { %3612 = vmatmul.msk.bf16.gmra.mxu1 %vm2803_vm1, %v2787_v61  ;;  %v2788_v61 = vpack.c.bf16 %v2759_v60, %v2758_v36  ;;  %v2760_v60 = vld [vmem:[%s4412_s21 + $0x30] sm:$0xff] }
 0x1d2   : > { %v1375_v47 = vpop.f32.mrf.mxu3 }
 0x1d3   : > { %v1428_v31 = vadd.f32 %v1375_v47, %v1194_v56 }
 0x1d5   : > { %v1662_v63 = vadd.f32 %v1609_v16, %v1428_v31  ;;  %v2179_v16 = vpack.c.bf16 %v2150_v51, %v2149_v20 }
 0x1d6   : > { %v1845_v6 = vpop.f32.mrf.mxu1  ;;  %v1148_v59 = vpop.f32.mrf.mxu2 }
 0x1d7   : > { %v4431_v13 = vadd.f32 %v1843_v58, %v1662_v63  ;;  %v1197_v55 = vadd.f32 %v1148_v59, %v4220_v1  ;;  %v2388_v59 = vld [vmem:[#allocation2 + $0x9a] sm:$0xff] }
 0x1d8   : > { %v1619_v56 = vpop.f32.mrf.mxu0 }
 0x1da   : > { %v1377_v27 = vpop.f32.mrf.mxu3 }
 0x1db   : > { %v1429_v5 = vadd.f32 %v1377_v27, %v1195_v7  ;;  %2047 = vmatmul.bf16.gmra.mxu2 %v1946_v49  ;;  %2515 = vmatmul.bf16.gmra.mxu0 %v2414_v18  ;;  %v2152_v49 = vld [vmem:[#allocation2 + $0x81] sm:$0xff]  ;;  %v1947_v18 = vpack.c.bf16 %v1920_v14, %v1919_v62  ;;  %v2415_v27 = vpack.c.bf16 %v2388_v59, %v2387_v19  ;;  %v1922_v19 = vld [vmem:[#allocation2 + $0xb0] sm:$0xff] }
 0x1dc   : > { %v1921_v14 = vld [vmem:[#allocation2 + $0xa8] sm:$0xff] }
 0x1dd   : > { %v1663_v9 = vadd.f32 %v1611_v42, %v1429_v5  ;;  %v2761_v5 = vld [vmem:[%s4412_s21 + $0x38] sm:$0xff]  ;;  %v2389_v59 = vld [vmem:[#allocation2 + $0xaa] sm:$0xff] }
 0x1de   : > { %v1848_v34 = vpop.f32.mrf.mxu1  ;;  %v1151_v58 = vpop.f32.mrf.mxu2 }
 0x1df   : > { %2276 = vmatmul.bf16.gmra.mxu3 %v2179_v16  ;;  %v4436_v47 = vadd.f32 %v1845_v6, %v1663_v9  ;;  %v1198_v31 = vadd.f32 %v1151_v58, %v4226_v17  ;;  %v2151_v6 = vld [vmem:[#allocation2 + $0x79] sm:$0xff] }
 0x1e0   : > { %v1621_v63 = vpop.f32.mrf.mxu0 }
 0x1e1   : > { %3613 = vmatmul.msk.bf16.gmra.mxu1 %vm2803_vm1, %v2788_v61  ;;  %v2789_v61 = vpack.c.bf16 %v2761_v5, %v2760_v60  ;;  %v2762_v5 = vld [vmem:[%s4412_s21 + $0x40] sm:$0xff] }
 0x1e2   : > { %v1380_v1 = vpop.f32.mrf.mxu3 }
 0x1e3   : > { %v1430_v38 = vadd.f32 %v1380_v1, %v1196_v21 }
 0x1e5   : > { %v1664_v7 = vadd.f32 %v1614_v3, %v1430_v38  ;;  %v2180_v3 = vpack.c.bf16 %v2152_v49, %v2151_v6 }
 0x1e6   : > { %v1850_v42 = vpop.f32.mrf.mxu1  ;;  %v1153_v20 = vpop.f32.mrf.mxu2 }
 0x1e7   : > { %v4440_v51 = vadd.f32 %v1848_v34, %v1664_v7  ;;  %v1199_v17 = vadd.f32 %v1153_v20, %v4230_v26  ;;  %v2390_v20 = vld [vmem:[#allocation2 + $0xb2] sm:$0xff] }
 0x1e8   : > { %v1624_v21 = vpop.f32.mrf.mxu0 }
 0x1ea   : > { %v1382_v36 = vpop.f32.mrf.mxu3 }
 0x1eb   : > { %v1431_v16 = vadd.f32 %v1382_v36, %v1197_v55  ;;  %2052 = vmatmul.bf16.gmra.mxu2 %v1947_v18  ;;  %2520 = vmatmul.bf16.gmra.mxu0 %v2415_v27  ;;  %v2154_v18 = vld [vmem:[#allocation2 + $0x99] sm:$0xff]  ;;  %v1948_v27 = vpack.c.bf16 %v1922_v19, %v1921_v14  ;;  %v2416_v36 = vpack.c.bf16 %v2390_v20, %v2389_v59  ;;  %v2155_v20 = vld [vmem:[#allocation2 + $0xa9] sm:$0xff] }
 0x1ed   : > { %v1665_v9 = vadd.f32 %v1616_v30, %v1431_v16  ;;  %v2763_v16 = vld [vmem:[%s4412_s21 + $0x48] sm:$0xff] }
 0x1ee   : > { %v1853_v58 = vpop.f32.mrf.mxu1  ;;  %v1156_v34 = vpop.f32.mrf.mxu2 }
 0x1ef   : > { %2281 = vmatmul.bf16.gmra.mxu3 %v2180_v3  ;;  %v4445_v1 = vadd.f32 %v1850_v42, %v1665_v9  ;;  %v1200_v38 = vadd.f32 %v1156_v34, %v4242_v35  ;;  %v2153_v42 = vld [vmem:[#allocation2 + $0x91] sm:$0xff] }
 0x1f0   : > { %v1626_v7 = vpop.f32.mrf.mxu0 }
 0x1f1   : > { %3614 = vmatmul.msk.bf16.gmra.mxu1 %vm2803_vm1, %v2789_v61  ;;  %v2790_v61 = vpack.c.bf16 %v2763_v16, %v2762_v5 }
 0x1f2   : > { %v1385_v26 = vpop.f32.mrf.mxu3 }
 0x1f3   : > { %v1432_v62 = vadd.f32 %v1385_v26, %v1198_v31 }
 0x1f5   : > { %v1666_v55 = vadd.f32 %v1619_v56, %v1432_v62  ;;  %v2181_v56 = vpack.c.bf16 %v2154_v18, %v2153_v42 }
 0x1f6   : > { %v1855_v30 = vpop.f32.mrf.mxu1  ;;  %v1158_v6 = vpop.f32.mrf.mxu2 }
 0x1f7   : > { %v4449_v49 = vadd.f32 %v1853_v58, %v1666_v55  ;;  %v1201_v35 = vadd.f32 %v1158_v6, %v4249_v4  ;;  %v2156_v6 = vld [vmem:[#allocation2 + $0xb1] sm:$0xff] }
 0x1f8   : > { %v1629_v31 = vpop.f32.mrf.mxu0 }
 0x1fa   : > { %v1387_v60 = vpop.f32.mrf.mxu3 }
 0x1fb   : > { %v1433_v3 = vadd.f32 %v1387_v60, %v1199_v17  ;;  %2057 = vmatmul.bf16.gmra.mxu2 %v1948_v27  ;;  %2525 = vmatmul.bf16.gmra.mxu0 %v2416_v36  ;;  %v2764_v27 = vld [vmem:[%s4412_s21 + $0x50] sm:$0xff] }
 0x1fd   : > { %v1667_v9 = vadd.f32 %v1621_v63, %v1433_v3 }
 0x1fe   : > { %v1858_v34 = vpop.f32.mrf.mxu1  ;;  %v1161_v58 = vpop.f32.mrf.mxu2 }
 0x1ff   : > { %2286 = vmatmul.bf16.gmra.mxu3 %v2181_v56  ;;  %v4454_v26 = vadd.f32 %v1855_v30, %v1667_v9  ;;  %v1202_v4 = vadd.f32 %v1161_v58, %v4255_v54  ;;  %v2765_v30 = vld [vmem:[%s4412_s21 + $0x58] sm:$0xff]  ;;  %v2182_v54 = vpack.c.bf16 %v2156_v6, %v2155_v20 }
 0x200   : > { %v1631_v55 = vpop.f32.mrf.mxu0  ;;  %v2791_v16 = vpack.c.bf16 %v2765_v30, %v2764_v27 }
 0x201   : > { %3615 = vmatmul.msk.bf16.gmra.mxu1 %vm2803_vm1, %v2790_v61 }
 0x202   : > { %v1390_v62 = vpop.f32.mrf.mxu3 }
 0x203   : > { %v1434_v14 = vadd.f32 %v1390_v62, %v1200_v38 }
 0x205   : > { %v1668_v17 = vadd.f32 %v1624_v21, %v1434_v14 }
 0x206   : > { %v1860_v19 = vpop.f32.mrf.mxu1  ;;  %v1163_v59 = vpop.f32.mrf.mxu2 }
 0x207   : > { %v4458_v63 = vadd.f32 %v1858_v34, %v1668_v17  ;;  %v1203_v42 = vadd.f32 %v1163_v59, %v4261_v50  ;;  %v2394_v34 = vld [vmem:[#allocation2 + $0xe2] sm:$0xff] }
 0x208   : > { %v1634_v36 = vpop.f32.mrf.mxu0  ;;  %v2767_v59 = vld [vmem:[%s4412_s21 + $0x68] sm:$0xff] }
 0x20a   : > { %v1392_v18 = vpop.f32.mrf.mxu3 }
 0x20b   : > { %v1435_v60 = vadd.f32 %v1392_v18, %v1201_v35  ;;  %2062 = vmatmul.bf16.gmra.mxu2 %v4286_v45  ;;  %2530 = vmatmul.bf16.gmra.mxu0 %v4282_v41 }
 0x20d   : > { %v1669_v5 = vadd.f32 %v1626_v7, %v1435_v60  ;;  %v2393_v7 = vld [vmem:[#allocation2 + $0xda] sm:$0xff] }
 0x20e   : > { %v1863_v21 = vpop.f32.mrf.mxu1  ;;  %v1166_v38 = vpop.f32.mrf.mxu2  ;;  %v2418_v14 = vpack.c.bf16 %v2394_v34, %v2393_v7 }
 0x20f   : > { %2291 = vmatmul.bf16.gmra.mxu3 %v2182_v54  ;;  %v4465_v3 = vadd.f32 %v1860_v19, %v1669_v5  ;;  %v1204_v50 = vadd.f32 %v1166_v38, %v4273_v25  ;;  %v2766_v19 = vld [vmem:[%s4412_s21 + $0x60] sm:$0xff]  ;;  %v2768_v38 = vld [vmem:[%s4412_s21 + $0x70] sm:$0xff] }
 0x210   : > { %v1636_v35 = vpop.f32.mrf.mxu0  ;;  %v2792_v18 = vpack.c.bf16 %v2767_v59, %v2766_v19  ;;  %v2770_v59 = vld [vmem:[%s4412_s21 + $0x80] sm:$0xff] }
 0x211   : > { %3616 = vmatmul.msk.bf16.gmra.mxu1 %vm2803_vm1, %v2791_v16 }
 0x212   : > { %v1395_v56 = vpop.f32.mrf.mxu3 }
 0x213   : > { %v1436_v9 = vadd.f32 %v1395_v56, %v1202_v4 }
 0x215   : > { %v1670_v61 = vadd.f32 %v1629_v31, %v1436_v9 }
 0x216   : > { %v1865_v45 = vpop.f32.mrf.mxu1  ;;  %v1168_v58 = vpop.f32.mrf.mxu2 }
 0x217   : > { %v4469_v41 = vadd.f32 %v1863_v21, %v1670_v61  ;;  %v1205_v62 = vadd.f32 %v1168_v58, %v4284_v44 }
 0x218   : > { %v1639_v20 = vpop.f32.mrf.mxu0 }
 0x21a   : > { %v1397_v17 = vpop.f32.mrf.mxu3 }
 0x21b   : > { %v1437_v25 = vadd.f32 %v1397_v17, %v1203_v42  ;;  %2067 = vmatmul.bf16.gmra.mxu2 %v4305_v2  ;;  %2535 = vmatmul.bf16.gmra.mxu0 %v2418_v14 }
 0x21d   : > { %v1671_v6 = vadd.f32 %v1631_v55, %v1437_v25 }
 0x21e   : > { %v1868_v31 = vpop.f32.mrf.mxu1  ;;  %v1171_v4 = vpop.f32.mrf.mxu2 }
 0x21f   : > { %2296 = vmatmul.bf16.gmra.mxu3 %v4259_v46  ;;  %v4476_v27 = vadd.f32 %v1865_v45, %v1671_v6  ;;  %v1206_v44 = vadd.f32 %v1171_v4, %v4295_v57  ;;  %v2769_v46 = vld [vmem:[%s4412_s21 + $0x78] sm:$0xff] }
 0x220   : > { %v1641_v60 = vpop.f32.mrf.mxu0  ;;  %v2793_v61 = vpack.c.bf16 %v2769_v46, %v2768_v38 }
 0x221   : > { %3617 = vmatmul.msk.bf16.gmra.mxu1 %vm2803_vm1, %v2792_v18 }
 0x222   : > { %v1400_v30 = vpop.f32.mrf.mxu3 }
 0x223   : > { %v1438_v42 = vadd.f32 %v1400_v30, %v1204_v50 }
 0x225   : > { %v1672_v54 = vadd.f32 %v1634_v36, %v1438_v42 }
 0x226   : > { %v1870_v2 = vpop.f32.mrf.mxu1  ;;  %v1173_v55 = vpop.f32.mrf.mxu2 }
 0x227   : > { %v4480_v5 = vadd.f32 %v1868_v31, %v1672_v54  ;;  %v1207_v16 = vadd.f32 %v1173_v55, %v4303_v10 }
 0x228   : > { %v2501_v56 = vpop.f32.mrf.mxu0 }
 0x22a   : > { %v1402_v21 = vpop.f32.mrf.mxu3 }
 0x22b   : > { %v1439_v9 = vadd.f32 %v1402_v21, %v1205_v62  ;;  %2072 = vmatmul.bf16.gmra.mxu2 %v4326_v24  ;;  %2540 = vmatmul.bf16.gmra.mxu0 %v4324_v22  ;;  %v2397_v24 = vld [vmem:[#allocation2 + $0x10a] sm:$0xff] }
 0x22c   : > { %v2400_v21 = vld [vmem:[#allocation2 + $0x12a] sm:$0xff] }
 0x22d   : > { %v1673_v57 = vadd.f32 %v1636_v35, %v1439_v9  ;;  %v2398_v35 = vld [vmem:[#allocation2 + $0x112] sm:$0xff] }
 0x22e   : > { %v1873_v45 = vpop.f32.mrf.mxu1  ;;  %v2033_v36 = vpop.f32.mrf.mxu2  ;;  %v2420_v22 = vpack.c.bf16 %v2398_v35, %v2397_v24  ;;  %v4681_v9 = vld [vmem:[#allocation4_spill] sm:$0xff] }
 0x22f   : > { %2301 = vmatmul.bf16.gmra.mxu3 %v4280_v12  ;;  %v4488_v50 = vadd.f32 %v1870_v2, %v1673_v57  ;;  %v2771_v12 = vld [vmem:[%s4412_s21 + $0x88] sm:$0xff] }
 0x230   : > { %v2503_v7 = vpop.f32.mrf.mxu0  ;;  %v2794_v31 = vpack.c.bf16 %v2771_v12, %v2770_v59  ;;  %v4682_v12 = vld [vmem:[#allocation5_spill] sm:$0xff] }
 0x231   : > { %3618 = vmatmul.msk.bf16.gmra.mxu1 %vm2803_vm1, %v2793_v61 }
 0x232   : > { %v1405_v10 = vpop.f32.mrf.mxu3 }
 0x233   : > { %v1440_v34 = vadd.f32 %v1405_v10, %v1206_v44 }
 0x235   : > { %v1674_v58 = vadd.f32 %v1639_v20, %v1440_v34  ;;  %v2113_v20 = vadd.f32 %v2033_v36, %v4319_v11  ;;  %v1931_v11 = vld [vmem:[#allocation2 + $0x120] sm:$0xff] }
 0x236   : > { %v1875_v62 = vpop.f32.mrf.mxu1  ;;  %v2035_v14 = vpop.f32.mrf.mxu2 }
 0x237   : > { %v4491_v17 = vadd.f32 %v1873_v45, %v1674_v58  ;;  %v2114_v57 = vadd.f32 %v2035_v14, %v4681_v9  ;;  %v2772_v58 = vld [vmem:[%s4412_s21 + $0x90] sm:$0xff]  ;;  %v2402_v9 = vld [vmem:[#allocation2 + $0x142] sm:$0xff] }
 0x238   : > { %v2506_v25 = vpop.f32.mrf.mxu0 }
 0x23a   : > { %v1407_v19 = vpop.f32.mrf.mxu3 }
 0x23b   : > { %v1441_v6 = vadd.f32 %v1407_v19, %v1207_v16  ;;  %2077 = vmatmul.bf16.gmra.mxu2 %v4340_v23  ;;  %2545 = vmatmul.bf16.gmra.mxu0 %v2420_v22  ;;  %v2399_v16 = vld [vmem:[#allocation2 + $0x122] sm:$0xff] }
 0x23c   : > { %v2421_v10 = vpack.c.bf16 %v2400_v21, %v2399_v16  ;;  %v1933_v16 = vld [vmem:[#allocation2 + $0x138] sm:$0xff]  ;;  %v4684_v21 = vld [vmem:[#allocation7_spill] sm:$0xff] }
 0x23d   : > { %v1675_v18 = vadd.f32 %v1641_v60, %v1441_v6  ;;  %v1932_v60 = vld [vmem:[#allocation2 + $0x128] sm:$0xff] }
 0x23e   : > { %v2865_v4 = vpop.f32.mrf.mxu1  ;;  %v2038_v44 = vpop.f32.mrf.mxu2  ;;  %v1953_v45 = vpack.c.bf16 %v1932_v60, %v1931_v11 }
 0x23f   : > { %2306 = vmatmul.bf16.gmra.mxu3 %v4301_v0  ;;  %v4498_v30 = vadd.f32 %v1875_v62, %v1675_v18  ;;  %v2982_v23 = vmul.f32 %v2865_v4, %v2865_v4  ;;  %v2773_v62 = vld [vmem:[%s4412_s21 + $0x98] sm:$0xff]  ;;  %v2115_v6 = vadd.f32 %v2038_v44, %v4682_v12  ;;  %v1934_v44 = vld [vmem:[#allocation2 + $0x140] sm:$0xff] }
 0x240   : > { %v4501_v54 = vpop.f32.mrf.mxu0  ;;  %v2795_v22 = vpack.c.bf16 %v2773_v62, %v2772_v58  ;;  %v1954_v58 = vpack.c.bf16 %v1934_v44, %v1933_v16 }
 0x241   : > { %3619 = vmatmul.msk.bf16.gmra.mxu1 %vm2803_vm1, %v2794_v31 }
 0x242   : > { %v2267_v42 = vpop.f32.mrf.mxu3 }
 0x243   : > { %v2347_v2 = vadd.f32 %v2267_v42, %v2113_v20  ;;  %v4683_v42 = vld [vmem:[#allocation3_spill] sm:$0xff] }
 0x245   : > { %v2581_v0 = vadd.f32 %v2501_v56, %v2347_v2 }
 0x246   : > { %v2867_v55 = vpop.f32.mrf.mxu1  ;;  %v2040_v61 = vpop.f32.mrf.mxu2 }
 0x247   : > { %2613 = vst [vmem:[%s4507_s25] sm:$0xff] %v2581_v0  ;;  %v2945_v38 = vadd.f32 %v2867_v55, %v2865_v4  ;;  %v2983_v46 = vmul.f32 %v2867_v55, %v2867_v55  ;;  %v2682_v19 = vmul.f32 %v2581_v0, %v2581_v0 }
 0x248   : > { %v4513_v56 = vpop.f32.mrf.mxu0 }
 0x249   : > { %v3014_v36 = vadd.f32 %v2983_v46, %v2982_v23  ;;  %v2401_v46 = vld [vmem:[#allocation2 + $0x13a] sm:$0xff] }
 0x24a   : > { %v2269_v34 = vpop.f32.mrf.mxu3 }
 0x24b   : > { %v2348_v24 = vadd.f32 %v2269_v34, %v2114_v57  ;;  %2082 = vmatmul.bf16.gmra.mxu2 %v1953_v45  ;;  %2550 = vmatmul.bf16.gmra.mxu0 %v2421_v10 }
 0x24d   : > { %v2582_v35 = vadd.f32 %v2503_v7, %v2348_v24 }
 0x24e   : > { %v2870_v59 = vpop.f32.mrf.mxu1  ;;  %v2043_v20 = vpop.f32.mrf.mxu2 }
 0x24f   : > { %2614 = vst [vmem:[%s4507_s25 + $0x8] sm:$0xff] %v2582_v35  ;;  %v2645_v14 = vadd.f32 %v2582_v35, %v2581_v0  ;;  %v2683_v18 = vmul.f32 %v2582_v35, %v2582_v35  ;;  %v2946_v31 = vadd.f32 %v2945_v38, %v2870_v59  ;;  %v2984_v4 = vmul.f32 %v2870_v59, %v2870_v59 }
 0x250   : > { %2311 = vmatmul.bf16.gmra.mxu3 %v4683_v42  ;;  %v4519_v11 = vpop.f32.mrf.mxu0  ;;  %v2116_v38 = vadd.f32 %v2040_v61, %v4684_v21 }
 0x251   : > { %v2714_v2 = vadd.f32 %v2683_v18, %v2682_v19  ;;  %v3015_v23 = vadd.f32 %v3014_v36, %v2984_v4  ;;  %3620 = vmatmul.msk.bf16.gmra.mxu1 %vm2803_vm1, %v2795_v22  ;;  %v2774_v22 = vld [vmem:[%s4412_s21 + $0xa0] sm:$0xff]  ;;  %v2775_v19 = vld [vmem:[%s4412_s21 + $0xa8] sm:$0xff]  ;;  %v2117_v18 = vadd.f32 %v2043_v20, %v4356_v48  ;;  %v1935_v48 = vld [vmem:[#allocation2 + $0x150] sm:$0xff] }
 0x252   : > { %v2272_v7 = vpop.f32.mrf.mxu3  ;;  %v1936_v20 = vld [vmem:[#allocation2 + $0x158] sm:$0xff] }
 0x253   : > { %v2349_v60 = vadd.f32 %v2272_v7, %v2115_v6  ;;  %v2796_v6 = vpack.c.bf16 %v2775_v19, %v2774_v22  ;;  %v4685_v7 = vld [vmem:[#allocation6_spill] sm:$0xff] }
 0x255   : > { %v2583_v55 = vadd.f32 %v2506_v25, %v2349_v60  ;;  %v2422_v25 = vpack.c.bf16 %v2402_v9, %v2401_v46  ;;  %v2403_v46 = vld [vmem:[#allocation2 + $0x152] sm:$0xff]  ;;  %v2404_v9 = vld [vmem:[#allocation2 + $0x15a] sm:$0xff] }
 0x256   : > { %v2872_v0 = vpop.f32.mrf.mxu1  ;;  %v2045_v34 = vpop.f32.mrf.mxu2  ;;  %v2423_v22 = vpack.c.bf16 %v2404_v9, %v2403_v46  ;;  %v2405_v46 = vld [vmem:[#allocation2 + $0x16a] sm:$0xff]  ;;  %v2406_v9 = vld [vmem:[#allocation2 + $0x172] sm:$0xff] }
 0x257   : > { %2615 = vst [vmem:[%s4507_s25 + $0x10] sm:$0xff] %v2583_v55  ;;  %v2646_v57 = vadd.f32 %v2645_v14, %v2583_v55  ;;  %v2684_v45 = vmul.f32 %v2583_v55, %v2583_v55  ;;  %v2947_v36 = vadd.f32 %v2946_v31, %v2872_v0  ;;  %v2985_v10 = vmul.f32 %v2872_v0, %v2872_v0 }
 0x258   : > { %v4525_v59 = vpop.f32.mrf.mxu0 }
 0x259   : > { %v2715_v62 = vadd.f32 %v2714_v2, %v2684_v45  ;;  %v3016_v24 = vadd.f32 %v3015_v23, %v2985_v10 }
 0x25a   : > { %v2274_v35 = vpop.f32.mrf.mxu3 }
 0x25b   : > { %v2350_v12 = vadd.f32 %v2274_v35, %v2116_v38  ;;  %2087 = vmatmul.bf16.gmra.mxu2 %v1954_v58  ;;  %2555 = vmatmul.bf16.gmra.mxu0 %v2422_v25  ;;  %v2118_v38 = vadd.f32 %v2045_v34, %v4359_v39  ;;  %v2168_v35 = vld [vmem:[#allocation2 + $0x141] sm:$0xff]  ;;  %v2777_v39 = vld [vmem:[%s4412_s21 + $0xb8] sm:$0xff] }
 0x25d   : > { %v2584_v61 = vadd.f32 %v4501_v54, %v2350_v12  ;;  %v2776_v12 = vld [vmem:[%s4412_s21 + $0xb0] sm:$0xff] }
 0x25e   : > { %v2875_v14 = vpop.f32.mrf.mxu1  ;;  %v2048_v23 = vpop.f32.mrf.mxu2 }
 0x25f   : > { %2616 = vst [vmem:[%s4507_s25 + $0x18] sm:$0xff] %v2584_v61  ;;  %v2647_v31 = vadd.f32 %v2646_v57, %v2584_v61  ;;  %v2685_v4 = vmul.f32 %v2584_v61, %v2584_v61  ;;  %v2948_v42 = vadd.f32 %v2947_v36, %v2875_v14  ;;  %v2986_v2 = vmul.f32 %v2875_v14, %v2875_v14 }
 0x260   : > { %2316 = vmatmul.bf16.gmra.mxu3 %v4685_v7  ;;  %v4532_v54 = vpop.f32.mrf.mxu0 }
 0x261   : > { %v2716_v60 = vadd.f32 %v2715_v62, %v2685_v4  ;;  %v3017_v55 = vadd.f32 %v3016_v24, %v2986_v2  ;;  %3621 = vmatmul.msk.bf16.gmra.mxu1 %vm2803_vm1, %v2796_v6  ;;  %v1955_v62 = vpack.c.bf16 %v1936_v20, %v1935_v48  ;;  %v2119_v4 = vadd.f32 %v2048_v23, %v4364_v29  ;;  %v1938_v29 = vld [vmem:[#allocation2 + $0x170] sm:$0xff] }
 0x262   : > { %v2277_v16 = vpop.f32.mrf.mxu3 }
 0x263   : > { %v2351_v44 = vadd.f32 %v2277_v16, %v2117_v18  ;;  %v2797_v18 = vpack.c.bf16 %v2777_v39, %v2776_v12  ;;  %v2778_v12 = vld [vmem:[%s4412_s21 + $0xc0] sm:$0xff] }
 0x265   : > { %v2585_v0 = vadd.f32 %v4513_v56, %v2351_v44  ;;  %v2167_v56 = vld [vmem:[#allocation2 + $0x139] sm:$0xff] }
 0x266   : > { %v2877_v21 = vpop.f32.mrf.mxu1  ;;  %v2050_v58 = vpop.f32.mrf.mxu2  ;;  %v2188_v6 = vpack.c.bf16 %v2168_v35, %v2167_v56  ;;  %v2170_v35 = vld [vmem:[#allocation2 + $0x159] sm:$0xff] }
 0x267   : > { %2617 = vst [vmem:[%s4507_s25 + $0x20] sm:$0xff] %v2585_v0  ;;  %v2648_v57 = vadd.f32 %v2647_v31, %v2585_v0  ;;  %v2686_v45 = vmul.f32 %v2585_v0, %v2585_v0  ;;  %v2949_v36 = vadd.f32 %v2948_v42, %v2877_v21  ;;  %v2987_v10 = vmul.f32 %v2877_v21, %v2877_v21  ;;  %v1937_v21 = vld [vmem:[#allocation2 + $0x168] sm:$0xff] }
 0x268   : > { %v4539_v34 = vpop.f32.mrf.mxu0 }
 0x269   : > { %v2717_v24 = vadd.f32 %v2716_v60, %v2686_v45  ;;  %v3018_v25 = vadd.f32 %v3017_v55, %v2987_v10 }
 0x26a   : > { %v2279_v19 = vpop.f32.mrf.mxu3 }
 0x26b   : > { %v2352_v61 = vadd.f32 %v2279_v19, %v2118_v38  ;;  %2092 = vmatmul.bf16.gmra.mxu2 %v1955_v62  ;;  %2560 = vmatmul.bf16.gmra.mxu0 %v2423_v22  ;;  %v2120_v38 = vadd.f32 %v2050_v58, %v4367_v8  ;;  %v2424_v22 = vpack.c.bf16 %v2406_v9, %v2405_v46  ;;  %v2779_v8 = vld [vmem:[%s4412_s21 + $0xc8] sm:$0xff] }
 0x26c   : > { %v2407_v46 = vld [vmem:[#allocation2 + $0x182] sm:$0xff]  ;;  %v2408_v9 = vld [vmem:[#allocation2 + $0x18a] sm:$0xff] }
 0x26d   : > { %v2586_v14 = vadd.f32 %v4519_v11, %v2352_v61 }
 0x26e   : > { %v2880_v31 = vpop.f32.mrf.mxu1  ;;  %v2053_v55 = vpop.f32.mrf.mxu2 }
 0x26f   : > { %2618 = vst [vmem:[%s4507_s25 + $0x28] sm:$0xff] %v2586_v14  ;;  %v2649_v42 = vadd.f32 %v2648_v57, %v2586_v14  ;;  %v2687_v2 = vmul.f32 %v2586_v14, %v2586_v14  ;;  %v2950_v7 = vadd.f32 %v2949_v36, %v2880_v31  ;;  %v2988_v60 = vmul.f32 %v2880_v31, %v2880_v31  ;;  %v4686_v31 = vld [vmem:[#allocation8_spill] sm:$0xff] }
 0x270   : > { %2321 = vmatmul.bf16.gmra.mxu3 %v2188_v6  ;;  %v4545_v48 = vpop.f32.mrf.mxu0  ;;  %v2798_v14 = vpack.c.bf16 %v2779_v8, %v2778_v12  ;;  %v2780_v12 = vld [vmem:[%s4412_s21 + $0xd0] sm:$0xff] }
 0x271   : > { %v2718_v16 = vadd.f32 %v2717_v24, %v2687_v2  ;;  %v3019_v44 = vadd.f32 %v3018_v25, %v2988_v60  ;;  %3622 = vmatmul.msk.bf16.gmra.mxu1 %vm2803_vm1, %v2797_v18  ;;  %v1956_v24 = vpack.c.bf16 %v1938_v29, %v1937_v21  ;;  %v1939_v29 = vld [vmem:[#allocation2 + $0x180] sm:$0xff] }
 0x272   : > { %v2282_v0 = vpop.f32.mrf.mxu3 }
 0x273   : > { %v2353_v11 = vadd.f32 %v2282_v0, %v2119_v4  ;;  %v2121_v4 = vadd.f32 %v2053_v55, %v4686_v31  ;;  %v1940_v55 = vld [vmem:[#allocation2 + $0x188] sm:$0xff] }
 0x275   : > { %v2587_v20 = vadd.f32 %v4525_v59, %v2353_v11  ;;  %v2169_v59 = vld [vmem:[#allocation2 + $0x151] sm:$0xff] }
 0x276   : > { %v2882_v23 = vpop.f32.mrf.mxu1  ;;  %v2055_v62 = vpop.f32.mrf.mxu2  ;;  %v2189_v61 = vpack.c.bf16 %v2170_v35, %v2169_v59  ;;  %v2172_v35 = vld [vmem:[#allocation2 + $0x171] sm:$0xff] }
 0x277   : > { %2619 = vst [vmem:[%s4507_s25 + $0x30] sm:$0xff] %v2587_v20  ;;  %v2650_v57 = vadd.f32 %v2649_v42, %v2587_v20  ;;  %v2688_v45 = vmul.f32 %v2587_v20, %v2587_v20  ;;  %v2951_v36 = vadd.f32 %v2950_v7, %v2882_v23  ;;  %v2989_v10 = vmul.f32 %v2882_v23, %v2882_v23 }
 0x278   : > { %v4552_v58 = vpop.f32.mrf.mxu0 }
 0x279   : > { %v2719_v25 = vadd.f32 %v2718_v16, %v2688_v45  ;;  %v3020_v56 = vadd.f32 %v3019_v44, %v2989_v10 }
 0x27a   : > { %v2284_v19 = vpop.f32.mrf.mxu3 }
 0x27b   : > { %v2354_v39 = vadd.f32 %v2284_v19, %v2120_v38  ;;  %2097 = vmatmul.bf16.gmra.mxu2 %v1956_v24  ;;  %2565 = vmatmul.bf16.gmra.mxu0 %v2424_v22  ;;  %v2122_v38 = vadd.f32 %v2055_v62, %v4391_v32  ;;  %v2425_v22 = vpack.c.bf16 %v2408_v9, %v2407_v46  ;;  %v2781_v32 = vld [vmem:[%s4412_s21 + $0xd8] sm:$0xff] }
 0x27d   : > { %v2588_v6 = vadd.f32 %v4532_v54, %v2354_v39 }
 0x27e   : > { %v2885_v18 = vpop.f32.mrf.mxu1  ;;  %v2058_v16 = vpop.f32.mrf.mxu2 }
 0x27f   : > { %2620 = vst [vmem:[%s4507_s25 + $0x38] sm:$0xff] %v2588_v6  ;;  %v2651_v42 = vadd.f32 %v2650_v57, %v2588_v6  ;;  %v2689_v2 = vmul.f32 %v2588_v6, %v2588_v6  ;;  %v2952_v7 = vadd.f32 %v2951_v36, %v2885_v18  ;;  %v2990_v60 = vmul.f32 %v2885_v18, %v2885_v18 }
 0x280   : > { %2326 = vmatmul.bf16.gmra.mxu3 %v2189_v61  ;;  %v4558_v20 = vpop.f32.mrf.mxu0  ;;  %v2799_v6 = vpack.c.bf16 %v2781_v32, %v2780_v12  ;;  %v2123_v18 = vadd.f32 %v2058_v16, %v4394_v15  ;;  %v2409_v16 = vld [vmem:[#allocation2 + $0x19a] sm:$0xff] }
 0x281   : > { %v2720_v44 = vadd.f32 %v2719_v25, %v2689_v2  ;;  %v3021_v0 = vadd.f32 %v3020_v56, %v2990_v60  ;;  %3623 = vmatmul.msk.bf16.gmra.mxu1 %vm2803_vm1, %v2798_v14  ;;  %v1957_v25 = vpack.c.bf16 %v1940_v55, %v1939_v29  ;;  %v2410_v29 = vld [vmem:[#allocation2 + $0x1a2] sm:$0xff] }
 0x282   : > { %v2287_v11 = vpop.f32.mrf.mxu3 }
 0x283   : > { %v2355_v54 = vadd.f32 %v2287_v11, %v2121_v4 }
 0x285   : > { %v2589_v21 = vadd.f32 %v4539_v34, %v2355_v54  ;;  %v2171_v34 = vld [vmem:[#allocation2 + $0x169] sm:$0xff] }
 0x286   : > { %v2887_v23 = vpop.f32.mrf.mxu1  ;;  %v2060_v24 = vpop.f32.mrf.mxu2  ;;  %v2190_v39 = vpack.c.bf16 %v2172_v35, %v2171_v34 }
 0x287   : > { %2621 = vst [vmem:[%s4507_s25 + $0x40] sm:$0xff] %v2589_v21  ;;  %v2652_v57 = vadd.f32 %v2651_v42, %v2589_v21  ;;  %v2690_v45 = vmul.f32 %v2589_v21, %v2589_v21  ;;  %v2953_v36 = vadd.f32 %v2952_v7, %v2887_v23  ;;  %v2991_v10 = vmul.f32 %v2887_v23, %v2887_v23 }
 0x288   : > { %v4565_v62 = vpop.f32.mrf.mxu0  ;;  %v2124_v15 = vadd.f32 %v2060_v24, %v4397_v37  ;;  %v2782_v37 = vld [vmem:[%s4412_s21 + $0xe0] sm:$0xff]  ;;  %v2783_v24 = vld [vmem:[%s4412_s21 + $0xe8] sm:$0xff] }
 0x289   : > { %v2721_v56 = vadd.f32 %v2720_v44, %v2690_v45  ;;  %v3022_v59 = vadd.f32 %v3021_v0, %v2991_v10  ;;  %v2800_v12 = vpack.c.bf16 %v2783_v24, %v2782_v37 }
 0x28a   : > { %v2289_v19 = vpop.f32.mrf.mxu3 }
 0x28b   : > { %v2356_v8 = vadd.f32 %v2289_v19, %v2122_v38  ;;  %2102 = vmatmul.bf16.gmra.mxu2 %v1957_v25  ;;  %2570 = vmatmul.bf16.gmra.mxu0 %v2425_v22  ;;  %v2173_v25 = vld [vmem:[#allocation2 + $0x181] sm:$0xff] }
 0x28d   : > { %v2590_v61 = vadd.f32 %v4545_v48, %v2356_v8 }
 0x28e   : > { %v2890_v14 = vpop.f32.mrf.mxu1  ;;  %v2063_v7 = vpop.f32.mrf.mxu2 }
 0x28f   : > { %2622 = vst [vmem:[%s4507_s25 + $0x48] sm:$0xff] %v2590_v61  ;;  %v2653_v31 = vadd.f32 %v2652_v57, %v2590_v61  ;;  %v2691_v4 = vmul.f32 %v2590_v61, %v2590_v61  ;;  %v2954_v42 = vadd.f32 %v2953_v36, %v2890_v14  ;;  %v2992_v2 = vmul.f32 %v2890_v14, %v2890_v14  ;;  %v3733_v57 = vld [vmem:[#allocation2] sm:$0xff] }
 0x290   : > { %2331 = vmatmul.bf16.gmra.mxu3 %v2190_v39  ;;  %v4571_v11 = vpop.f32.mrf.mxu0  ;;  %v1958_v45 = vpack.c.bf16 %v3733_v57, %v3733_v57  ;;  %v2125_v8 = vadd.f32 %v2063_v7, %v4400_v52 }
 0x291   : > { %v2722_v60 = vadd.f32 %v2721_v56, %v2691_v4  ;;  %v3023_v44 = vadd.f32 %v3022_v59, %v2992_v2  ;;  %3624 = vmatmul.msk.bf16.gmra.mxu1 %vm2803_vm1, %v2799_v6  ;;  %v2426_v56 = vpack.c.bf16 %v2410_v29, %v2409_v16  ;;  %v2175_v29 = vld [vmem:[#allocation2 + $0x199] sm:$0xff] }
 0x292   : > { %v2292_v0 = vpop.f32.mrf.mxu3 }
 0x293   : > { %v2357_v48 = vadd.f32 %v2292_v0, %v2123_v18 }
 0x295   : > { %v2591_v54 = vadd.f32 %v4552_v58, %v2357_v48  ;;  %v2174_v58 = vld [vmem:[#allocation2 + $0x189] sm:$0xff] }
 0x296   : > { %v2892_v21 = vpop.f32.mrf.mxu1  ;;  %v2065_v9 = vpop.f32.mrf.mxu2  ;;  %v2191_v22 = vpack.c.bf16 %v2174_v58, %v2173_v25 }
 0x297   : > { %2623 = vst [vmem:[%s4507_s25 + $0x50] sm:$0xff] %v2591_v54  ;;  %v2654_v55 = vadd.f32 %v2653_v31, %v2591_v54  ;;  %v2692_v23 = vmul.f32 %v2591_v54, %v2591_v54  ;;  %v2955_v38 = vadd.f32 %v2954_v42, %v2892_v21  ;;  %v2993_v46 = vmul.f32 %v2892_v21, %v2892_v21 }
 0x298   : > { %v2536_v34 = vpop.f32.mrf.mxu0  ;;  %v2126_v7 = vadd.f32 %v2065_v9, %v4403_v28 }
 0x299   : > { %v2723_v36 = vadd.f32 %v2722_v60, %v2692_v23  ;;  %v3024_v10 = vadd.f32 %v3023_v44, %v2993_v46  ;;  %v2785_v46 = vld [vmem:[%s4412_s21 + $0xf8] sm:$0xff] }
 0x29a   : > { %v2294_v59 = vpop.f32.mrf.mxu3 }
 0x29b   : > { %v2358_v35 = vadd.f32 %v2294_v59, %v2124_v15  ;;  %2107 = vmatmul.bf16.gmra.mxu2 %v1958_v45  ;;  %2575 = vmatmul.bf16.gmra.mxu0 %v2426_v56 }
 0x29d   : > { %v2592_v19 = vadd.f32 %v4558_v20, %v2358_v35 }
 0x29e   : > { %v2895_v32 = vpop.f32.mrf.mxu1  ;;  %v2068_v18 = vpop.f32.mrf.mxu2 }
 0x29f   : > { %2624 = vst [vmem:[%s4507_s25 + $0x58] sm:$0xff] %v2592_v19  ;;  %v2655_v39 = vadd.f32 %v2654_v55, %v2592_v19  ;;  %v2693_v61 = vmul.f32 %v2592_v19, %v2592_v19  ;;  %v2956_v6 = vadd.f32 %v2955_v38, %v2895_v32  ;;  %v2994_v14 = vmul.f32 %v2895_v32, %v2895_v32  ;;  %v2176_v55 = vld [vmem:[#allocation2 + $0x1a1] sm:$0xff]  ;;  %v2784_v38 = vld [vmem:[%s4412_s21 + $0xf0] sm:$0xff] }
 0x2a0   : > { %2336 = vmatmul.bf16.gmra.mxu3 %v2191_v22  ;;  %v2538_v2 = vpop.f32.mrf.mxu0  ;;  %v2801_v28 = vpack.c.bf16 %v2785_v46, %v2784_v38 }
 0x2a1   : > { %v2724_v31 = vadd.f32 %v2723_v36, %v2693_v61  ;;  %v3025_v4 = vadd.f32 %v3024_v10, %v2994_v14  ;;  %3625 = vmatmul.msk.bf16.gmra.mxu1 %vm2803_vm1, %v2800_v12  ;;  %v2127_v10 = vadd.f32 %v2068_v18, %v4414_v40 }
 0x2a2   : > { %v2297_v42 = vpop.f32.mrf.mxu3 }
 0x2a3   : > { %v2359_v20 = vadd.f32 %v2297_v42, %v2125_v8 }
 0x2a5   : > { %v2593_v60 = vadd.f32 %v4565_v62, %v2359_v20  ;;  %v2192_v62 = vpack.c.bf16 %v2176_v55, %v2175_v29 }
 0x2a6   : > { %v2897_v52 = vpop.f32.mrf.mxu1  ;;  %v2070_v21 = vpop.f32.mrf.mxu2 }
 0x2a7   : > { %2625 = vst [vmem:[%s4507_s25 + $0x60] sm:$0xff] %v2593_v60  ;;  %v2656_v44 = vadd.f32 %v2655_v39, %v2593_v60  ;;  %v2694_v0 = vmul.f32 %v2593_v60, %v2593_v60  ;;  %v2957_v48 = vadd.f32 %v2956_v6, %v2897_v52  ;;  %v2995_v54 = vmul.f32 %v2897_v52, %v2897_v52 }
 0x2a8   : > { %v2541_v57 = vpop.f32.mrf.mxu0  ;;  %v2128_v40 = vadd.f32 %v2070_v21, %v4418_v33 }
 0x2a9   : > { %v2725_v15 = vadd.f32 %v2724_v31, %v2694_v0  ;;  %v3026_v16 = vadd.f32 %v3025_v4, %v2995_v54 }
 0x2aa   : > { %v2299_v23 = vpop.f32.mrf.mxu3 }
 0x2ab   : > { %v2360_v45 = vadd.f32 %v2299_v23, %v2126_v7 }
 0x2ad   : > { %v2594_v36 = vadd.f32 %v4571_v11, %v2360_v45 }
 0x2ae   : > { %v2900_v9 = vpop.f32.mrf.mxu1  ;;  %v2073_v37 = vpop.f32.mrf.mxu2 }
 0x2af   : > { %2626 = vst [vmem:[%s4507_s25 + $0x68] sm:$0xff] %v2594_v36  ;;  %v2657_v25 = vadd.f32 %v2656_v44, %v2594_v36  ;;  %v2695_v58 = vmul.f32 %v2594_v36, %v2594_v36  ;;  %v2958_v56 = vadd.f32 %v2957_v48, %v2900_v9  ;;  %v2996_v59 = vmul.f32 %v2900_v9, %v2900_v9 }
 0x2b0   : > { %2341 = vmatmul.bf16.gmra.mxu3 %v2192_v62  ;;  %v2543_v19 = vpop.f32.mrf.mxu0 }
 0x2b1   : > { %v2726_v24 = vadd.f32 %v2725_v15, %v2695_v58  ;;  %v3027_v35 = vadd.f32 %v3026_v16, %v2996_v59  ;;  %3626 = vmatmul.msk.bf16.gmra.mxu1 %vm2803_vm1, %v2801_v28 }
 0x2b2   : > { %v2302_v22 = vpop.f32.mrf.mxu3 }
 0x2b3   : > { %v2361_v12 = vadd.f32 %v2302_v22, %v2127_v10 }
 0x2b5   : > { %v2595_v11 = vadd.f32 %v2536_v34, %v2361_v12  ;;  %v2129_v34 = vadd.f32 %v2073_v37, %v4422_v43 }
 0x2b6   : > { %v2902_v32 = vpop.f32.mrf.mxu1  ;;  %v2075_v14 = vpop.f32.mrf.mxu2 }
 0x2b7   : > { %2627 = vst [vmem:[%s4507_s25 + $0x70] sm:$0xff] %v2595_v11  ;;  %v2658_v8 = vadd.f32 %v2657_v25, %v2595_v11  ;;  %v2696_v39 = vmul.f32 %v2595_v11, %v2595_v11  ;;  %v2959_v61 = vadd.f32 %v2958_v56, %v2902_v32  ;;  %v2997_v6 = vmul.f32 %v2902_v32, %v2902_v32 }
 0x2b8   : > { %v2546_v20 = vpop.f32.mrf.mxu0 }
 0x2b9   : > { %v2727_v18 = vadd.f32 %v2726_v24, %v2696_v39  ;;  %v3028_v31 = vadd.f32 %v3027_v35, %v2997_v6 }
 0x2ba   : > { %v2304_v4 = vpop.f32.mrf.mxu3 }
 0x2bb   : > { %v2362_v42 = vadd.f32 %v2304_v4, %v2128_v40 }
 0x2bd   : > { %v2596_v60 = vadd.f32 %v2538_v2, %v2362_v42  ;;  %v2130_v2 = vadd.f32 %v2075_v14, %v4427_v53 }
 0x2be   : > { %v2905_v52 = vpop.f32.mrf.mxu1  ;;  %v2078_v48 = vpop.f32.mrf.mxu2 }
 0x2bf   : > { %2628 = vst [vmem:[%s4507_s25 + $0x78] sm:$0xff] %v2596_v60  ;;  %v2659_v7 = vadd.f32 %v2658_v8, %v2596_v60  ;;  %v2697_v44 = vmul.f32 %v2596_v60, %v2596_v60  ;;  %v2960_v33 = vadd.f32 %v2959_v61, %v2905_v52  ;;  %v2998_v0 = vmul.f32 %v2905_v52, %v2905_v52 }
 0x2c0   : > { %v2548_v55 = vpop.f32.mrf.mxu0  ;;  %v2131_v35 = vadd.f32 %v2078_v48, %v4431_v13 }
 0x2c1   : > { %v2728_v54 = vadd.f32 %v2727_v18, %v2697_v44  ;;  %v3029_v21 = vadd.f32 %v3028_v31, %v2998_v0 }
 0x2c2   : > { %v2307_v15 = vpop.f32.mrf.mxu3 }
 0x2c3   : > { %v2363_v16 = vadd.f32 %v2307_v15, %v2129_v34 }
 0x2c5   : > { %v2597_v29 = vadd.f32 %v2541_v57, %v2363_v16 }
 0x2c6   : > { %v2907_v23 = vpop.f32.mrf.mxu1  ;;  %v2080_v62 = vpop.f32.mrf.mxu2 }
 0x2c7   : > { %2629 = vst [vmem:[%s4507_s25 + $0x80] sm:$0xff] %v2597_v29  ;;  %v2660_v38 = vadd.f32 %v2659_v7, %v2597_v29  ;;  %v2698_v46 = vmul.f32 %v2597_v29, %v2597_v29  ;;  %v2961_v43 = vadd.f32 %v2960_v33, %v2907_v23  ;;  %v2999_v45 = vmul.f32 %v2907_v23, %v2907_v23 }
 0x2c8   : > { %v2551_v24 = vpop.f32.mrf.mxu0  ;;  %v2132_v18 = vadd.f32 %v2080_v62, %v4436_v47 }
 0x2c9   : > { %v2729_v36 = vadd.f32 %v2728_v54, %v2698_v46  ;;  %v3030_v28 = vadd.f32 %v3029_v21, %v2999_v45 }
 0x2ca   : > { %v2309_v9 = vpop.f32.mrf.mxu3 }
 0x2cb   : > { %v2364_v10 = vadd.f32 %v2309_v9, %v2130_v2 }
 0x2cd   : > { %v2598_v25 = vadd.f32 %v2543_v19, %v2364_v10 }
 0x2ce   : > { %v2910_v58 = vpop.f32.mrf.mxu1  ;;  %v2083_v53 = vpop.f32.mrf.mxu2 }
 0x2cf   : > { %2630 = vst [vmem:[%s4507_s25 + $0x88] sm:$0xff] %v2598_v25  ;;  %v2661_v56 = vadd.f32 %v2660_v38, %v2598_v25  ;;  %v2699_v57 = vmul.f32 %v2598_v25, %v2598_v25  ;;  %v2962_v59 = vadd.f32 %v2961_v43, %v2910_v58  ;;  %v3000_v37 = vmul.f32 %v2910_v58, %v2910_v58 }
 0x2d0   : > { %v2553_v4 = vpop.f32.mrf.mxu0  ;;  %v2133_v48 = vadd.f32 %v2083_v53, %v4440_v51 }
 0x2d1   : > { %v2730_v22 = vadd.f32 %v2729_v36, %v2699_v57  ;;  %v3031_v12 = vadd.f32 %v3030_v28, %v3000_v37 }
 0x2d3   : > { %v2312_v11 = vpop.f32.mrf.mxu3 }
 0x2d4   : > { %v2365_v32 = vadd.f32 %v2312_v11, %v2131_v35 }
 0x2d6   : > { %v2599_v40 = vadd.f32 %v2546_v20, %v2365_v32  ;;  %v2912_v8 = vpop.f32.mrf.mxu1  ;;  %v2085_v19 = vpop.f32.mrf.mxu2 }
 0x2d7   : > { %v2963_v39 = vadd.f32 %v2962_v59, %v2912_v8  ;;  %v3001_v61 = vmul.f32 %v2912_v8, %v2912_v8  ;;  %v2134_v46 = vadd.f32 %v2085_v19, %v4445_v1 }
 0x2d8   : > { %2631 = vst [vmem:[%s4507_s25 + $0x90] sm:$0xff] %v2599_v40  ;;  %v2662_v6 = vadd.f32 %v2661_v56, %v2599_v40  ;;  %v2700_v14 = vmul.f32 %v2599_v40, %v2599_v40  ;;  %v2556_v15 = vpop.f32.mrf.mxu0 }
 0x2d9   : > { %v3032_v31 = vadd.f32 %v3031_v12, %v3001_v61 }
 0x2da   : > { %v2731_v42 = vadd.f32 %v2730_v22, %v2700_v14 }
 0x2db   : > { %v2314_v60 = vpop.f32.mrf.mxu3 }
 0x2dc   : > { %v2366_v13 = vadd.f32 %v2314_v60, %v2132_v18 }
 0x2de   : > { %v2600_v52 = vadd.f32 %v2548_v55, %v2366_v13  ;;  %v2915_v34 = vpop.f32.mrf.mxu1  ;;  %v2088_v44 = vpop.f32.mrf.mxu2 }
 0x2df   : > { %v4601_v7 = vadd.f32 %v2963_v39, %v2915_v34  ;;  %v3002_v20 = vmul.f32 %v2915_v34, %v2915_v34  ;;  %v2135_v58 = vadd.f32 %v2088_v44, %v4449_v49 }
 0x2e0   : > { %2632 = vst [vmem:[%s4507_s25 + $0x98] sm:$0xff] %v2600_v52  ;;  %v2663_v33 = vadd.f32 %v2662_v6, %v2600_v52  ;;  %v2701_v0 = vmul.f32 %v2600_v52, %v2600_v52  ;;  %v2558_v62 = vpop.f32.mrf.mxu0 }
 0x2e1   : > { %v4605_v54 = vadd.f32 %v3032_v31, %v3002_v20 }
 0x2e2   : > { %v2732_v47 = vadd.f32 %v2731_v42, %v2701_v0 }
 0x2e3   : > { %v2317_v21 = vpop.f32.mrf.mxu3 }
 0x2e4   : > { %v2367_v16 = vadd.f32 %v2317_v21, %v2133_v48 }
 0x2e6   : > { %v2601_v29 = vadd.f32 %v2551_v24, %v2367_v16  ;;  %v4607_v55 = vpop.f32.mrf.mxu1  ;;  %v2090_v23 = vpop.f32.mrf.mxu2 }
 0x2e7   : > { %v2136_v22 = vadd.f32 %v2090_v23, %v4454_v26 }
 0x2e8   : > { %2633 = vst [vmem:[%s4507_s25 + $0xa0] sm:$0xff] %v2601_v29  ;;  %v2664_v2 = vadd.f32 %v2663_v33, %v2601_v29  ;;  %v2702_v38 = vmul.f32 %v2601_v29, %v2601_v29  ;;  %v2561_v24 = vpop.f32.mrf.mxu0 }
 0x2ea   : > { %v2733_v43 = vadd.f32 %v2732_v47, %v2702_v38 }
 0x2eb   : > { %v2319_v45 = vpop.f32.mrf.mxu3 }
 0x2ec   : > { %v2368_v51 = vadd.f32 %v2319_v45, %v2134_v46 }
 0x2ee   : > { %v2602_v36 = vadd.f32 %v2553_v4, %v2368_v51  ;;  %v4611_v28 = vpop.f32.mrf.mxu1  ;;  %v2093_v9 = vpop.f32.mrf.mxu2 }
 0x2ef   : > { %v2137_v19 = vadd.f32 %v2093_v9, %v4458_v63 }
 0x2f0   : > { %2634 = vst [vmem:[%s4507_s25 + $0xa8] sm:$0xff] %v2602_v36  ;;  %v2665_v10 = vadd.f32 %v2664_v2, %v2602_v36  ;;  %v2703_v25 = vmul.f32 %v2602_v36, %v2602_v36  ;;  %v2563_v6 = vpop.f32.mrf.mxu0 }
 0x2f2   : > { %v2734_v56 = vadd.f32 %v2733_v43, %v2703_v25 }
 0x2f3   : > { %v2322_v57 = vpop.f32.mrf.mxu3 }
 0x2f4   : > { %v2369_v59 = vadd.f32 %v2322_v57, %v2135_v58 }
 0x2f6   : > { %v2603_v37 = vadd.f32 %v2556_v15, %v2369_v59  ;;  %v4615_v1 = vpop.f32.mrf.mxu1  ;;  %v2095_v12 = vpop.f32.mrf.mxu2  ;;  %v3003_v59 = vmul.f32 %v4607_v55, %v4607_v55 }
 0x2f7   : > { %v2138_v52 = vadd.f32 %v2095_v12, %v4465_v3 }
 0x2f8   : > { %2635 = vst [vmem:[%s4507_s25 + $0xb0] sm:$0xff] %v2603_v37  ;;  %v2666_v53 = vadd.f32 %v2665_v10, %v2603_v37  ;;  %v2704_v35 = vmul.f32 %v2603_v37, %v2603_v37  ;;  %v2566_v44 = vpop.f32.mrf.mxu0  ;;  %v3034_v12 = vadd.f32 %v4605_v54, %v3003_v59 }
 0x2fa   : > { %v2735_v11 = vadd.f32 %v2734_v56, %v2704_v35 }
 0x2fb   : > { %v2324_v32 = vpop.f32.mrf.mxu3 }
 0x2fc   : > { %v2370_v40 = vadd.f32 %v2324_v32, %v2136_v22 }
 0x2fe   : > { %v2604_v8 = vadd.f32 %v2558_v62, %v2370_v40  ;;  %v4619_v49 = vpop.f32.mrf.mxu1  ;;  %v2098_v31 = vpop.f32.mrf.mxu2 }
 0x2ff   : > { %v2139_v15 = vadd.f32 %v2098_v31, %v4469_v41 }
 0x300   : > { %2636 = vst [vmem:[%s4507_s25 + $0xb8] sm:$0xff] %v2604_v8  ;;  %v2667_v39 = vadd.f32 %v2666_v53, %v2604_v8  ;;  %v2705_v61 = vmul.f32 %v2604_v8, %v2604_v8  ;;  %v2568_v2 = vpop.f32.mrf.mxu0  ;;  %v3004_v53 = vmul.f32 %v4611_v28, %v4611_v28 }
 0x302   : > { %v2736_v14 = vadd.f32 %v2735_v11, %v2705_v61  ;;  %v3035_v8 = vadd.f32 %v3034_v12, %v3004_v53 }
 0x303   : > { %v2327_v18 = vpop.f32.mrf.mxu3 }
 0x304   : > { %v2371_v4 = vadd.f32 %v2327_v18, %v2137_v19 }
 0x306   : > { %v2605_v26 = vadd.f32 %v2561_v24, %v2371_v4  ;;  %v2927_v42 = vpop.f32.mrf.mxu1  ;;  %v2100_v0 = vpop.f32.mrf.mxu2 }
 0x307   : > { %v2140_v51 = vadd.f32 %v2100_v0, %v4476_v27  ;;  %v2965_v27 = vadd.f32 %v4601_v7, %v4607_v55  ;;  %v3006_v7 = vmul.f32 %v4619_v49, %v4619_v49 }
 0x308   : > { %2637 = vst [vmem:[%s4507_s25 + $0xc0] sm:$0xff] %v2605_v26  ;;  %v2668_v60 = vadd.f32 %v2667_v39, %v2605_v26  ;;  %v2706_v13 = vmul.f32 %v2605_v26, %v2605_v26  ;;  %v2571_v58 = vpop.f32.mrf.mxu0 }
 0x309   : > { %v2966_v11 = vadd.f32 %v2965_v27, %v4611_v28  ;;  %v3007_v28 = vmul.f32 %v2927_v42, %v2927_v42 }
 0x30a   : > { %v2737_v34 = vadd.f32 %v2736_v14, %v2706_v13 }
 0x30b   : > { %v2329_v20 = vpop.f32.mrf.mxu3  ;;  %v2967_v39 = vadd.f32 %v2966_v11, %v4615_v1 }
 0x30c   : > { %v2372_v33 = vadd.f32 %v2329_v20, %v2138_v52 }
 0x30d   : > { %v2968_v54 = vadd.f32 %v2967_v39, %v4619_v49 }
 0x30e   : > { %v2606_v63 = vadd.f32 %v2563_v6, %v2372_v33  ;;  %v2930_v48 = vpop.f32.mrf.mxu1  ;;  %v2103_v46 = vpop.f32.mrf.mxu2 }
 0x30f   : > { %v2141_v57 = vadd.f32 %v2103_v46, %v4480_v5  ;;  %v3005_v5 = vmul.f32 %v4615_v1, %v4615_v1  ;;  %v2969_v4 = vadd.f32 %v2968_v54, %v2927_v42  ;;  %v3008_v26 = vmul.f32 %v2930_v48, %v2930_v48 }
 0x310   : > { %2638 = vst [vmem:[%s4507_s25 + $0xc8] sm:$0xff] %v2606_v63  ;;  %v2669_v47 = vadd.f32 %v2668_v60, %v2606_v63  ;;  %v2707_v21 = vmul.f32 %v2606_v63, %v2606_v63  ;;  %v2573_v14 = vpop.f32.mrf.mxu0 }
 0x311   : > { %v3036_v6 = vadd.f32 %v3035_v8, %v3005_v5 }
 0x312   : > { %v2738_v16 = vadd.f32 %v2737_v34, %v2707_v21  ;;  %v2970_v34 = vadd.f32 %v2969_v4, %v2930_v48 }
 0x313   : > { %v2332_v29 = vpop.f32.mrf.mxu3  ;;  %v3037_v31 = vadd.f32 %v3036_v6, %v3006_v7 }
 0x314   : > { %v2373_v23 = vadd.f32 %v2332_v29, %v2139_v15 }
 0x315   : > { %v3038_v52 = vadd.f32 %v3037_v31, %v3007_v28 }
 0x316   : > { %v2607_v38 = vadd.f32 %v2566_v44, %v2373_v23  ;;  %v2932_v3 = vpop.f32.mrf.mxu1  ;;  %v2105_v37 = vpop.f32.mrf.mxu2 }
 0x317   : > { %v2142_v19 = vadd.f32 %v2105_v37, %v4488_v50  ;;  %v3009_v20 = vmul.f32 %v2932_v3, %v2932_v3  ;;  %v3039_v0 = vadd.f32 %v3038_v52, %v3008_v26  ;;  %v2971_v50 = vadd.f32 %v2970_v34, %v2932_v3 }
 0x318   : > { %2639 = vst [vmem:[%s4507_s25 + $0xd0] sm:$0xff] %v2607_v38  ;;  %v2670_v43 = vadd.f32 %v2669_v47, %v2607_v38  ;;  %v2708_v45 = vmul.f32 %v2607_v38, %v2607_v38  ;;  %v2576_v48 = vpop.f32.mrf.mxu0 }
 0x319   : > { %v3040_v15 = vadd.f32 %v3039_v0, %v3009_v20 }
 0x31a   : > { %v2739_v62 = vadd.f32 %v2738_v16, %v2708_v45 }
 0x31b   : > { %v2334_v36 = vpop.f32.mrf.mxu3 }
 0x31c   : > { %v2374_v9 = vadd.f32 %v2334_v36, %v2140_v51 }
 0x31e   : > { %v2608_v10 = vadd.f32 %v2568_v2, %v2374_v9  ;;  %v2935_v25 = vpop.f32.mrf.mxu1  ;;  %v2108_v1 = vpop.f32.mrf.mxu2 }
 0x31f   : > { %v3010_v63 = vmul.f32 %v2935_v25, %v2935_v25  ;;  %v2143_v21 = vadd.f32 %v2108_v1, %v4491_v17  ;;  %v2972_v16 = vadd.f32 %v2971_v50, %v2935_v25 }
 0x320   : > { %2640 = vst [vmem:[%s4507_s25 + $0xd8] sm:$0xff] %v2608_v10  ;;  %v2671_v41 = vadd.f32 %v2670_v43, %v2608_v10  ;;  %v2709_v56 = vmul.f32 %v2608_v10, %v2608_v10  ;;  %v2578_v12 = vpop.f32.mrf.mxu0 }
 0x321   : > { %v3041_v23 = vadd.f32 %v3040_v15, %v3010_v63 }
 0x322   : > { %v2740_v24 = vadd.f32 %v2739_v62, %v2709_v56 }
 0x323   : > { %v2337_v35 = vpop.f32.mrf.mxu3 }
 0x324   : > { %v2375_v22 = vadd.f32 %v2337_v35, %v2141_v57 }
 0x326   : > { %v2609_v32 = vadd.f32 %v2571_v58, %v2375_v22  ;;  %v2937_v40 = vpop.f32.mrf.mxu1  ;;  %v2110_v3 = vpop.f32.mrf.mxu2 }
 0x327   : > { %v3011_v42 = vmul.f32 %v2937_v40, %v2937_v40  ;;  %v2973_v2 = vadd.f32 %v2972_v16, %v2937_v40 }
 0x328   : > { %2641 = vst [vmem:[%s4507_s25 + $0xe0] sm:$0xff] %v2609_v32  ;;  %v2672_v55 = vadd.f32 %v2671_v41, %v2609_v32  ;;  %v2710_v61 = vmul.f32 %v2609_v32, %v2609_v32  ;;  %v2144_v41 = vadd.f32 %v2110_v3, %v4498_v30 }
 0x329   : > { %v3042_v45 = vadd.f32 %v3041_v23, %v3011_v42 }
 0x32a   : > { %v2741_v18 = vadd.f32 %v2740_v24, %v2710_v61 }
 0x32b   : > { %v2339_v60 = vpop.f32.mrf.mxu3 }
 0x32c   : > { %v2376_v13 = vadd.f32 %v2339_v60, %v2142_v19 }
 0x32e   : > { %v2610_v44 = vadd.f32 %v2573_v14, %v2376_v13  ;;  %v2940_v33 = vpop.f32.mrf.mxu1 }
 0x32f   : > { %v3012_v38 = vmul.f32 %v2940_v33, %v2940_v33  ;;  %v2974_v51 = vadd.f32 %v2973_v2, %v2940_v33 }
 0x330   : > { %2642 = vst [vmem:[%s4507_s25 + $0xe8] sm:$0xff] %v2610_v44  ;;  %v2673_v49 = vadd.f32 %v2672_v55, %v2610_v44  ;;  %v2711_v47 = vmul.f32 %v2610_v44, %v2610_v44 }
 0x331   : > { %v3043_v9 = vadd.f32 %v3042_v45, %v3012_v38 }
 0x332   : > { %v2742_v29 = vadd.f32 %v2741_v18, %v2711_v47 }
 0x333   : > { %v2342_v46 = vpop.f32.mrf.mxu3 }
 0x334   : > { %v2377_v43 = vadd.f32 %v2342_v46, %v2143_v21 }
 0x336   : > { %v2611_v62 = vadd.f32 %v2576_v48, %v2377_v43  ;;  %v2942_v36 = vpop.f32.mrf.mxu1 }
 0x337   : > { %v2975_v10 = vadd.f32 %v2974_v51, %v2942_v36  ;;  %v3013_v58 = vmul.f32 %v2942_v36, %v2942_v36 }
 0x338   : > { %2643 = vst [vmem:[%s4507_s25 + $0xf0] sm:$0xff] %v2611_v62  ;;  %v2674_v17 = vadd.f32 %v2673_v49, %v2611_v62  ;;  %v2712_v25 = vmul.f32 %v2611_v62, %v2611_v62 }
 0x339   : > { %v2976_v56 = vrot.slane %v2975_v10, 4  ;;  %v3044_v57 = vadd.f32 %v3043_v9, %v3013_v58 }
 0x33a   : > { %v2743_v59 = vadd.f32 %v2742_v29, %v2712_v25 }
 0x33b   : > { %v2977_v37 = vadd.f32 %v2976_v56, %v2975_v10  ;;  %v3045_v24 = vrot.slane %v3044_v57, 4  ;;  %v2344_v27 = vpop.f32.mrf.mxu3 }
 0x33c   : > { %v2378_v53 = vadd.f32 %v2344_v27, %v2144_v41 }
 0x33d   : > { %v2978_v35 = vrot.slane %v2977_v37, 2  ;;  %v3046_v22 = vadd.f32 %v3045_v24, %v3044_v57 }
 0x33e   : > { %v2612_v11 = vadd.f32 %v2578_v12, %v2378_v53 }
 0x33f   : > { %v2979_v5 = vadd.f32 %v2978_v35, %v2977_v37  ;;  %v3047_v32 = vrot.slane %v3046_v22, 2 }
 0x340   : > { %2644 = vst [vmem:[%s4507_s25 + $0xf8] sm:$0xff] %v2612_v11  ;;  %v2675_v40 = vadd.f32 %v2674_v17, %v2612_v11  ;;  %v2713_v8 = vmul.f32 %v2612_v11, %v2612_v11 }
 0x341   : > { %v2980_v39 = vrot.slane %v2979_v5, 1  ;;  %v3048_v7 = vadd.f32 %v3047_v32, %v3046_v22 }
 0x342   : > { %v2676_v30 = vrot.slane %v2675_v40, 4  ;;  %v2744_v55 = vadd.f32 %v2743_v59, %v2713_v8 }
 0x343   : > { %v3049_v61 = vrot.slane %v3048_v7, 1  ;;  %v2981_v54 = vadd.f32 %v2980_v39, %v2979_v5 }
 0x344   : > { %v2677_v19 = vadd.f32 %v2676_v30, %v2675_v40  ;;  %v2745_v6 = vrot.slane %v2744_v55, 4 }
 0x345   : > { %v3050_v28 = vadd.f32 %v3049_v61, %v3048_v7 }
 0x346   : > { %v2678_v14 = vrot.slane %v2677_v19, 2  ;;  %v2746_v18 = vadd.f32 %v2745_v6, %v2744_v55 }
 0x347   : > { %v3051_v31 = vsel %vm2751_vm2, %v2981_v54, %v3050_v28 }
 0x348   : > { %3052 = vst [vmem:[%s346_s30] sm:$0x3] %v3051_v31  ;;  %v2679_v4 = vadd.f32 %v2678_v14, %v2677_v19  ;;  %v2747_v26 = vrot.slane %v2746_v18, 2 }
 0x34a   : > { %v2680_v60 = vrot.slane %v2679_v4, 1  ;;  %v2748_v1 = vadd.f32 %v2747_v26, %v2746_v18 }
 0x34c   : > { %v2749_v13 = vrot.slane %v2748_v1, 1  ;;  %v2681_v52 = vadd.f32 %v2680_v60, %v2679_v4 }
 0x34e   : > { %v2750_v34 = vadd.f32 %v2749_v13, %v2748_v1 }
 0x350   : > { %v2752_v20 = vsel %vm2751_vm2, %v2681_v52, %v2750_v34 }
 0x351   : > { %2753 = vst [vmem:[%s342_s10] sm:$0x3] %v2752_v20 }
 0x352 PF: > { %s19_s27 = sadd.s32 1, %s3740_s27  }
 0x353   : > { %p16_p4 = scmp.ge.s32.totalorder %s19_s27, 4  }
 0x355   :  { %18 = sbr.rel (!%p16_p4) target bundleno = 1 (0x1), region = 111 }

</bundles_post_ra>
